<compile_context>
chip_gen: v5e
topology: v5e:2x2
jax: 0.10.0
libtpu: 0.0.40
codegen_flags: <defaults>
</compile_context>

<pallas_src>
import math
import functools

import jax
import jax.numpy as jnp
from jax.experimental import pallas as pl
from jax.experimental.pallas import tpu as pltpu


def det_kernel(hty_ref, hth_ref, x0_ref, h0_ref,
               wh_ref, bh_ref, wx_ref, bx_ref,
               xout_ref, hout_ref, outs_ref,
               *, iterations, project_times, k_winners, n_x, hidden, tb):
    """One grid step == one batch tile of TB columns, feature-major layout:
       x:(N,TB)  h:(Hd,TB)  hty:(N,TB)  hth:(N,N,TB)  (both pre-scaled by 2*step_size)
       wh:(Hd, N+Hd)  wx:(N, Hd)  biases (·,1)."""
    f32 = jnp.float32

    hty = hty_ref[...]                        # (N, TB)     already scaled by 2*s
    hth = hth_ref[...]                        # (N, N, TB)  already scaled by 2*s

    wh = wh_ref[...]                          # (Hd, N+Hd)  fused [Whx | Whh]
    wx = wx_ref[...]                          # (N, Hd)
    # Hoist bias broadcasts out of the projection loop (JAX does not CSE them).
    bh = jnp.broadcast_to(bh_ref[...], (hidden, tb))   # (Hd, TB)
    bx = jnp.broadcast_to(bx_ref[...], (n_x, tb))      # (N, TB)

    x = x0_ref[...]                           # (N, TB)  f32
    h = h0_ref[...]                           # (Hd, TB) f32

    # Trip counts are tiny and static (project_times x iterations = 3 x 2);
    # keep them unrolled.  Switch to lax.fori_loop if they ever become large.
    for p in range(project_times):
        # ---- gradient descent: x <- x + (2s*Hty) - (2s*HtH) x ----
        for _ in range(iterations):
            acc = hth[0] * x[0:1, :]                   # lane-dense (N,TB) VPU work
            for n in range(1, n_x):
                acc = acc + hth[n] * x[n:n+1, :]
            x = x + hty - acc

        # ---- RecurrentCell: h = kWTA(Wh @ [x; h] + bh); x = Wx @ h + bx ----
        # x is exactly 1 sublane-tile (8 rows) and h is 4, so this concat is
        # pure vreg stacking; one K=40 MXU matmul replaces the former two.
        zh = jnp.concatenate([x, h], axis=0)            # (N+Hd, TB)
        pre = jnp.dot(wh, zh, preferred_element_type=f32) + bh   # (Hd, TB)

        # k-winner-take-all (eval mode): rank[i,b] = #{j : pre[j,b] > pre[i,b]},
        # keep units with rank < k (ties at the k-th value are all kept).
        # TODO(synk): per review, if the bundle dump shows cmp+vsel+vadd (3 VALU
        # ops/vreg) here, switch to a 2-op accumulation; and if the per-j sublane
        # broadcasts hit XLU, route them via a VMEM scratch + stride-0 loads
        # (pre_scr[pl.ds(j, hidden, stride=0), :]). Needs a bundle dump to verify.
        # TODO(synk): ActivationSparsity boosting/duty-cycle (training mode) omitted;
        # exact-top-k tie-breaking (if the original uses it) not reproduced.
        rank = jnp.zeros_like(pre)
        for j in range(hidden):
            rank = rank + jnp.where(pre[j:j+1, :] > pre, 1.0, 0.0)
        h = jnp.where(rank < f32(k_winners), pre, 0.0)

        x = jnp.dot(wx, h, preferred_element_type=f32) + bx      # (N, TB)

        outs_ref[p, :, :] = x                 # lane-dense unmasked store

    xout_ref[...] = x
    hout_ref[...] = h


def _pick_batch_tile(B, batch_tile, num_tensorcores):
    """Largest lane-dense batch tile that divides B, capped at batch_tile, while
    keeping >= num_tensorcores grid steps when that can be done with 128-lane
    multiples (so ("parallel",) splits the grid across both v7x TensorCores;
    on single-TC v5e/v6e an extra grid step costs ~0.35us, i.e. noise)."""
    tb = min(int(batch_tile), B)
    if tb < B:
        tb = (tb // 128) * 128
        while tb >= 128 and B % tb != 0:
            tb -= 128
        if tb < 128:
            tb = B
    if num_tensorcores > 1 and tb == B:
        per_core = B // num_tensorcores
        if per_core >= 128 and per_core % 128 == 0 and B % per_core == 0:
            tb = per_core
    return tb


def det_model_forward(y, H, x0, h0, params, *, step_size, iterations,
                      project_times, k_winners, batch_tile=512,
                      num_tensorcores=2):
    B, M = y.shape
    N = H.shape[-1]
    Hd = h0.shape[-1]
    P = int(project_times)
    wh, bh, wx_w, bx = params          # (Hd,N+Hd), (Hd,1), (N,Hd), (N,1)

    # Hoisted batched contractions, emitted directly in the kernel's lane-dense
    # (features, batch) layout with the GD step scale folded in (free in XLA).
    two_s = jnp.float32(2.0 * step_size)
    htyT = (two_s * jnp.einsum('bm,bmn->nb', y, H)).astype(jnp.float32)     # (N, B)
    hthT = (two_s * jnp.einsum('bmn,bmk->nkb', H, H)).astype(jnp.float32)   # (N, N, B)
    # TODO(synk): at large B, check the HLO -- if XLA computes these batch-major and
    # inserts a (B,N,N)->(N,N,B) transpose, emit a dot_general with batch-minor
    # output ordering (or cache HtH when H is reused across calls).
    x0T = jnp.transpose(x0).astype(jnp.float32)                             # (N, B)
    h0T = jnp.transpose(h0).astype(jnp.float32)                             # (Hd, B)

    wh_c = wh.astype(jnp.float32)
    wx_c = wx_w.astype(jnp.float32)
    bh_c = bh.astype(jnp.float32)
    bx_c = bx.astype(jnp.float32)

    tb = _pick_batch_tile(B, batch_tile, num_tensorcores)
    if tb < B and (tb % 128 != 0 or B % tb != 0):
        raise ValueError(f"batch tile {tb} must be a multiple of 128 dividing B={B}")
    grid = (B // tb,)

    kernel = functools.partial(
        det_kernel, iterations=int(iterations), project_times=P,
        k_winners=int(k_winners), n_x=N, hidden=Hd, tb=tb)

    grid_spec = pltpu.PrefetchScalarGridSpec(
        num_scalar_prefetch=0,
        grid=grid,
        in_specs=[
            pl.BlockSpec((N, tb), lambda b: (0, b)),          # 2s*Hty (transposed)
            pl.BlockSpec((N, N, tb), lambda b: (0, 0, b)),    # 2s*HtH (transposed)
            pl.BlockSpec((N, tb), lambda b: (0, b)),          # x0  (transposed)
            pl.BlockSpec((Hd, tb), lambda b: (0, b)),         # h0  (transposed)
            pl.BlockSpec((Hd, N + Hd), lambda b: (0, 0)),     # fused Wh (shared)
            pl.BlockSpec((Hd, 1), lambda b: (0, 0)),          # bh       (shared)
            pl.BlockSpec((N, Hd), lambda b: (0, 0)),          # Wx       (shared)
            pl.BlockSpec((N, 1), lambda b: (0, 0)),           # bx       (shared)
        ],
        out_specs=[
            pl.BlockSpec((N, tb), lambda b: (0, b)),          # final x (transposed)
            pl.BlockSpec((Hd, tb), lambda b: (0, b)),         # final h (transposed)
            pl.BlockSpec((P, N, tb), lambda b: (0, 0, b)),    # per-projection x
        ],
    )

    x_outT, h_outT, outsT = pl.pallas_call(
        kernel,
        out_shape=(jax.ShapeDtypeStruct((N, B), jnp.float32),
                   jax.ShapeDtypeStruct((Hd, B), jnp.float32),
                   jax.ShapeDtypeStruct((P, N, B), jnp.float32)),
        grid_spec=grid_spec,
        compiler_params=pltpu.CompilerParams(dimension_semantics=("parallel",)),
    )(htyT, hthT, x0T, h0T, wh_c, bh_c, wx_c, bx_c)

    # Back to the PyTorch-facing batch-major layout: single transposes only.
    x_out = jnp.transpose(x_outT)                        # (B, N)
    h_out = jnp.transpose(h_outT)                        # (B, Hd)
    outs_bm = jnp.transpose(outsT, (0, 2, 1))            # (P, B, N)
    outputs = [outs_bm[p] for p in range(P)]
    return x_out, h_out, outputs


# ---------------- pure-JAX reference (mirrors the PyTorch forward) ----------------

def reference_forward(y, H, x, h, params, *, step_size, iterations,
                      project_times, k_winners):
    wh, bh, wx_w, bx = params
    hty = jnp.einsum('bm,bmn->bn', y, H)
    hth = jnp.einsum('bmn,bmk->bnk', H, H)
    outs = []
    for _ in range(project_times):
        for _ in range(iterations):
            x = x + 2.0 * step_size * (hty - jnp.einsum('bn,bnk->bk', x, hth))
        pre = jnp.concatenate([x, h], axis=-1) @ wh.T + bh[:, 0]
        rank = jnp.sum((pre[:, :, None] < pre[:, None, :]).astype(jnp.float32), -1)
        h = jnp.where(rank < float(k_winners), pre, 0.0)
        x = h @ wx_w.T + bx[:, 0]
        outs.append(x)
    return x, h, outs


def _match_fraction(a, b, rtol=1e-3, atol=1e-3):
    ok = jnp.abs(a - b) <= (atol + rtol * jnp.abs(b))
    return float(jnp.mean(ok.astype(jnp.float32)))


# ---------------- deterministic parameter construction (synthetic) ----------------

def _sparsify_rows(key, w, sparsity):
    """SparseWeights: zero round((1-sparsity)*in) weights per output row."""
    out, inp = w.shape
    num_zeros = int(round((1.0 - sparsity) * inp))
    r = jax.random.uniform(key, (out, inp))
    ranks = jnp.argsort(jnp.argsort(r, axis=1), axis=1)
    mask = (ranks >= num_zeros).astype(w.dtype)
    return w * mask


def init_params(key, tx, hidden, sparsity):
    N = 2 * tx
    in_h = hidden + N
    gain = math.sqrt(2.0 / (1.0 + 5.0))       # calculate_gain('leaky_relu', sqrt(5))

    fan_h = int(in_h * sparsity)
    bound_wh = math.sqrt(3.0) * gain / math.sqrt(fan_h)
    bound_bh = 1.0 / math.sqrt(fan_h)
    fan_x = int(hidden * sparsity)
    bound_wx = math.sqrt(3.0) * gain / math.sqrt(fan_x)
    bound_bx = 1.0 / math.sqrt(fan_x)

    k = jax.random.split(key, 6)
    wh = jax.random.uniform(k[0], (hidden, in_h), minval=-bound_wh, maxval=bound_wh)
    bh = jax.random.uniform(k[1], (hidden,), minval=-bound_bh, maxval=bound_bh)
    wx = jax.random.uniform(k[2], (N, hidden), minval=-bound_wx, maxval=bound_wx)
    bx = jax.random.uniform(k[3], (N,), minval=-bound_bx, maxval=bound_bx)

    wh = _sparsify_rows(k[4], wh, sparsity)
    wx = _sparsify_rows(k[5], wx, sparsity)

    # cat order in RecurrentCell is [x (2tx), h_pre (Hd)]; keep the PyTorch
    # (out, in) orientation — exactly what the fused kernel matmul wants.
    return (wh.astype(jnp.float32),
            bh.reshape(hidden, 1).astype(jnp.float32),
            wx.astype(jnp.float32),
            bx.reshape(N, 1).astype(jnp.float32))


if __name__ == "__main__":
    tx, rx = 4, 8
    hidden = 32
    project_times = 3
    weight_sparsity = 0.4
    iterations = 2
    step_size = 0.01
    B = 256                       # tile picker -> 2 tiles of 128: both v7x TCs busy

    N = 2 * tx                    # 8
    M = 2 * rx + 2 * tx           # 24

    key = jax.random.PRNGKey(0)
    k1, k2, k3, kp = jax.random.split(key, 4)
    y = jax.random.normal(k1, (B, M), dtype=jnp.float32)
    H = jax.random.normal(k2, (B, M, N), dtype=jnp.float32) / math.sqrt(M)
    x0 = jax.random.normal(k3, (B, N), dtype=jnp.float32)
    h0 = jnp.zeros((B, hidden), dtype=jnp.float32)

    params = init_params(kp, tx, hidden, weight_sparsity)
    k_winners = max(1, int(round((1.0 - weight_sparsity) * hidden)))
    kwargs = dict(step_size=step_size, iterations=iterations,
                  project_times=project_times, k_winners=k_winners)

    x_out, h_out, outputs = det_model_forward(y, H, x0, h0, params, **kwargs)
    jax.block_until_ready((x_out, h_out, outputs))

    # Correctness vs pure-JAX reference (criterion tolerant of rare k-WTA
    # boundary flips caused by MXU vs XLA float reassociation).
    xr, hr, outr = reference_forward(y, H, x0, h0, params, **kwargs)
    frac = min([_match_fraction(x_out, xr), _match_fraction(h_out, hr)]
               + [_match_fraction(a, b) for a, b in zip(outputs, outr)])
    assert frac > 0.99, f"kernel/reference mismatch fraction too high: {1.0 - frac:.4f}"

    assert x_out.shape == (B, N) and h_out.shape == (B, hidden)
    assert len(outputs) == project_times and outputs[0].shape == (B, N)
    assert bool(jnp.all(jnp.isfinite(x_out))) and bool(jnp.all(jnp.isfinite(h_out)))
    print("KERNEL_OK")
</pallas_src>

<mosaic_0001>
module attributes {stable_mosaic.version = 11 : i64} {
  func.func @det_kernel(%arg0: i32, %arg1: memref<8x128xf32, #tpu.memory_space<vmem>>, %arg2: memref<8x8x128xf32, #tpu.memory_space<vmem>>, %arg3: memref<8x128xf32, #tpu.memory_space<vmem>>, %arg4: memref<32x128xf32, #tpu.memory_space<vmem>>, %arg5: memref<32x40xf32, #tpu.memory_space<vmem>>, %arg6: memref<32x1xf32, #tpu.memory_space<vmem>>, %arg7: memref<8x32xf32, #tpu.memory_space<vmem>>, %arg8: memref<8x1xf32, #tpu.memory_space<vmem>>, %arg9: memref<8x128xf32, #tpu.memory_space<vmem>>, %arg10: memref<32x128xf32, #tpu.memory_space<vmem>>, %arg11: memref<3x8x128xf32, #tpu.memory_space<vmem>>) attributes {dimension_semantics = [#tpu.dimension_semantics<parallel>], iteration_bounds = array<i64: 2>, scalar_prefetch = 0 : i64, scratch_operands = 0 : i64, tpu.core_type = #tpu.core_type<tc>, window_params = [{transform_indices = @transform_0, window_bounds = array<i64: 8, 128>}, {transform_indices = @transform_1, window_bounds = array<i64: 8, 8, 128>}, {transform_indices = @transform_2, window_bounds = array<i64: 8, 128>}, {transform_indices = @transform_3, window_bounds = array<i64: 32, 128>}, {pipeline_mode = #tpu.pipeline_mode<synchronous>, transform_indices = @transform_4, window_bounds = array<i64: 32, 40>}, {pipeline_mode = #tpu.pipeline_mode<synchronous>, transform_indices = @transform_5, window_bounds = array<i64: 32, 1>}, {pipeline_mode = #tpu.pipeline_mode<synchronous>, transform_indices = @transform_6, window_bounds = array<i64: 8, 32>}, {pipeline_mode = #tpu.pipeline_mode<synchronous>, transform_indices = @transform_7, window_bounds = array<i64: 8, 1>}, {transform_indices = @transform_8, window_bounds = array<i64: 8, 128>}, {transform_indices = @transform_9, window_bounds = array<i64: 32, 128>}, {transform_indices = @transform_10, window_bounds = array<i64: 3, 8, 128>}]} {
    %c0 = arith.constant 0 : index
    %c0_0 = arith.constant 0 : index
    %0 = vector.load %arg1[%c0, %c0_0] : memref<8x128xf32, #tpu.memory_space<vmem>>, vector<8x128xf32>
    %c0_1 = arith.constant 0 : index
    %c0_2 = arith.constant 0 : index
    %c0_3 = arith.constant 0 : index
    %1 = vector.load %arg2[%c0_1, %c0_2, %c0_3] : memref<8x8x128xf32, #tpu.memory_space<vmem>>, vector<8x8x128xf32>
    %c0_4 = arith.constant 0 : index
    %c0_5 = arith.constant 0 : index
    %2 = vector.load %arg5[%c0_4, %c0_5] : memref<32x40xf32, #tpu.memory_space<vmem>>, vector<32x40xf32>
    %c0_6 = arith.constant 0 : index
    %c0_7 = arith.constant 0 : index
    %3 = vector.load %arg7[%c0_6, %c0_7] : memref<8x32xf32, #tpu.memory_space<vmem>>, vector<8x32xf32>
    %c0_8 = arith.constant 0 : index
    %c0_9 = arith.constant 0 : index
    %4 = vector.load %arg6[%c0_8, %c0_9] : memref<32x1xf32, #tpu.memory_space<vmem>>, vector<32x1xf32>
    %5 = vector.shape_cast %4 : vector<32x1xf32> to vector<32x1xf32>
    %6 = vector.broadcast %5 : vector<32x1xf32> to vector<32x128xf32>
    %c0_10 = arith.constant 0 : index
    %c0_11 = arith.constant 0 : index
    %7 = vector.load %arg8[%c0_10, %c0_11] : memref<8x1xf32, #tpu.memory_space<vmem>>, vector<8x1xf32>
    %8 = vector.shape_cast %7 : vector<8x1xf32> to vector<8x1xf32>
    %9 = vector.broadcast %8 : vector<8x1xf32> to vector<8x128xf32>
    %c0_12 = arith.constant 0 : index
    %c0_13 = arith.constant 0 : index
    %10 = vector.load %arg3[%c0_12, %c0_13] : memref<8x128xf32, #tpu.memory_space<vmem>>, vector<8x128xf32>
    %c0_14 = arith.constant 0 : index
    %c0_15 = arith.constant 0 : index
    %11 = vector.load %arg4[%c0_14, %c0_15] : memref<32x128xf32, #tpu.memory_space<vmem>>, vector<32x128xf32>
    %12 = vector.extract_strided_slice %1 {offsets = [0, 0, 0], sizes = [1, 8, 128], strides = [1, 1, 1]} : vector<8x8x128xf32> to vector<1x8x128xf32>
    %13 = vector.shape_cast %12 : vector<1x8x128xf32> to vector<8x128xf32>
    %14 = vector.extract_strided_slice %10 {offsets = [0, 0], sizes = [1, 128], strides = [1, 1]} : vector<8x128xf32> to vector<1x128xf32>
    %15 = vector.broadcast %14 : vector<1x128xf32> to vector<8x128xf32>
    %16 = arith.mulf %13, %15 : vector<8x128xf32>
    %17 = vector.extract_strided_slice %1 {offsets = [1, 0, 0], sizes = [1, 8, 128], strides = [1, 1, 1]} : vector<8x8x128xf32> to vector<1x8x128xf32>
    %18 = vector.shape_cast %17 : vector<1x8x128xf32> to vector<8x128xf32>
    %19 = vector.extract_strided_slice %10 {offsets = [1, 0], sizes = [1, 128], strides = [1, 1]} : vector<8x128xf32> to vector<1x128xf32>
    %20 = vector.broadcast %19 : vector<1x128xf32> to vector<8x128xf32>
    %21 = arith.mulf %18, %20 : vector<8x128xf32>
    %22 = arith.addf %16, %21 : vector<8x128xf32>
    %23 = vector.extract_strided_slice %1 {offsets = [2, 0, 0], sizes = [1, 8, 128], strides = [1, 1, 1]} : vector<8x8x128xf32> to vector<1x8x128xf32>
    %24 = vector.shape_cast %23 : vector<1x8x128xf32> to vector<8x128xf32>
    %25 = vector.extract_strided_slice %10 {offsets = [2, 0], sizes = [1, 128], strides = [1, 1]} : vector<8x128xf32> to vector<1x128xf32>
    %26 = vector.broadcast %25 : vector<1x128xf32> to vector<8x128xf32>
    %27 = arith.mulf %24, %26 : vector<8x128xf32>
    %28 = arith.addf %22, %27 : vector<8x128xf32>
    %29 = vector.extract_strided_slice %1 {offsets = [3, 0, 0], sizes = [1, 8, 128], strides = [1, 1, 1]} : vector<8x8x128xf32> to vector<1x8x128xf32>
    %30 = vector.shape_cast %29 : vector<1x8x128xf32> to vector<8x128xf32>
    %31 = vector.extract_strided_slice %10 {offsets = [3, 0], sizes = [1, 128], strides = [1, 1]} : vector<8x128xf32> to vector<1x128xf32>
    %32 = vector.broadcast %31 : vector<1x128xf32> to vector<8x128xf32>
    %33 = arith.mulf %30, %32 : vector<8x128xf32>
    %34 = arith.addf %28, %33 : vector<8x128xf32>
    %35 = vector.extract_strided_slice %1 {offsets = [4, 0, 0], sizes = [1, 8, 128], strides = [1, 1, 1]} : vector<8x8x128xf32> to vector<1x8x128xf32>
    %36 = vector.shape_cast %35 : vector<1x8x128xf32> to vector<8x128xf32>
    %37 = vector.extract_strided_slice %10 {offsets = [4, 0], sizes = [1, 128], strides = [1, 1]} : vector<8x128xf32> to vector<1x128xf32>
    %38 = vector.broadcast %37 : vector<1x128xf32> to vector<8x128xf32>
    %39 = arith.mulf %36, %38 : vector<8x128xf32>
    %40 = arith.addf %34, %39 : vector<8x128xf32>
    %41 = vector.extract_strided_slice %1 {offsets = [5, 0, 0], sizes = [1, 8, 128], strides = [1, 1, 1]} : vector<8x8x128xf32> to vector<1x8x128xf32>
    %42 = vector.shape_cast %41 : vector<1x8x128xf32> to vector<8x128xf32>
    %43 = vector.extract_strided_slice %10 {offsets = [5, 0], sizes = [1, 128], strides = [1, 1]} : vector<8x128xf32> to vector<1x128xf32>
    %44 = vector.broadcast %43 : vector<1x128xf32> to vector<8x128xf32>
    %45 = arith.mulf %42, %44 : vector<8x128xf32>
    %46 = arith.addf %40, %45 : vector<8x128xf32>
    %47 = vector.extract_strided_slice %1 {offsets = [6, 0, 0], sizes = [1, 8, 128], strides = [1, 1, 1]} : vector<8x8x128xf32> to vector<1x8x128xf32>
    %48 = vector.shape_cast %47 : vector<1x8x128xf32> to vector<8x128xf32>
    %49 = vector.extract_strided_slice %10 {offsets = [6, 0], sizes = [1, 128], strides = [1, 1]} : vector<8x128xf32> to vector<1x128xf32>
    %50 = vector.broadcast %49 : vector<1x128xf32> to vector<8x128xf32>
    %51 = arith.mulf %48, %50 : vector<8x128xf32>
    %52 = arith.addf %46, %51 : vector<8x128xf32>
    %53 = vector.extract_strided_slice %1 {offsets = [7, 0, 0], sizes = [1, 8, 128], strides = [1, 1, 1]} : vector<8x8x128xf32> to vector<1x8x128xf32>
    %54 = vector.shape_cast %53 : vector<1x8x128xf32> to vector<8x128xf32>
    %55 = vector.extract_strided_slice %10 {offsets = [7, 0], sizes = [1, 128], strides = [1, 1]} : vector<8x128xf32> to vector<1x128xf32>
    %56 = vector.broadcast %55 : vector<1x128xf32> to vector<8x128xf32>
    %57 = arith.mulf %54, %56 : vector<8x128xf32>
    %58 = arith.addf %52, %57 : vector<8x128xf32>
    %59 = arith.addf %10, %0 : vector<8x128xf32>
    %60 = arith.subf %59, %58 : vector<8x128xf32>
    %61 = vector.extract_strided_slice %1 {offsets = [0, 0, 0], sizes = [1, 8, 128], strides = [1, 1, 1]} : vector<8x8x128xf32> to vector<1x8x128xf32>
    %62 = vector.shape_cast %61 : vector<1x8x128xf32> to vector<8x128xf32>
    %63 = vector.extract_strided_slice %60 {offsets = [0, 0], sizes = [1, 128], strides = [1, 1]} : vector<8x128xf32> to vector<1x128xf32>
    %64 = vector.broadcast %63 : vector<1x128xf32> to vector<8x128xf32>
    %65 = arith.mulf %62, %64 : vector<8x128xf32>
    %66 = vector.extract_strided_slice %1 {offsets = [1, 0, 0], sizes = [1, 8, 128], strides = [1, 1, 1]} : vector<8x8x128xf32> to vector<1x8x128xf32>
    %67 = vector.shape_cast %66 : vector<1x8x128xf32> to vector<8x128xf32>
    %68 = vector.extract_strided_slice %60 {offsets = [1, 0], sizes = [1, 128], strides = [1, 1]} : vector<8x128xf32> to vector<1x128xf32>
    %69 = vector.broadcast %68 : vector<1x128xf32> to vector<8x128xf32>
    %70 = arith.mulf %67, %69 : vector<8x128xf32>
    %71 = arith.addf %65, %70 : vector<8x128xf32>
    %72 = vector.extract_strided_slice %1 {offsets = [2, 0, 0], sizes = [1, 8, 128], strides = [1, 1, 1]} : vector<8x8x128xf32> to vector<1x8x128xf32>
    %73 = vector.shape_cast %72 : vector<1x8x128xf32> to vector<8x128xf32>
    %74 = vector.extract_strided_slice %60 {offsets = [2, 0], sizes = [1, 128], strides = [1, 1]} : vector<8x128xf32> to vector<1x128xf32>
    %75 = vector.broadcast %74 : vector<1x128xf32> to vector<8x128xf32>
    %76 = arith.mulf %73, %75 : vector<8x128xf32>
    %77 = arith.addf %71, %76 : vector<8x128xf32>
    %78 = vector.extract_strided_slice %1 {offsets = [3, 0, 0], sizes = [1, 8, 128], strides = [1, 1, 1]} : vector<8x8x128xf32> to vector<1x8x128xf32>
    %79 = vector.shape_cast %78 : vector<1x8x128xf32> to vector<8x128xf32>
    %80 = vector.extract_strided_slice %60 {offsets = [3, 0], sizes = [1, 128], strides = [1, 1]} : vector<8x128xf32> to vector<1x128xf32>
    %81 = vector.broadcast %80 : vector<1x128xf32> to vector<8x128xf32>
    %82 = arith.mulf %79, %81 : vector<8x128xf32>
    %83 = arith.addf %77, %82 : vector<8x128xf32>
    %84 = vector.extract_strided_slice %1 {offsets = [4, 0, 0], sizes = [1, 8, 128], strides = [1, 1, 1]} : vector<8x8x128xf32> to vector<1x8x128xf32>
    %85 = vector.shape_cast %84 : vector<1x8x128xf32> to vector<8x128xf32>
    %86 = vector.extract_strided_slice %60 {offsets = [4, 0], sizes = [1, 128], strides = [1, 1]} : vector<8x128xf32> to vector<1x128xf32>
    %87 = vector.broadcast %86 : vector<1x128xf32> to vector<8x128xf32>
    %88 = arith.mulf %85, %87 : vector<8x128xf32>
    %89 = arith.addf %83, %88 : vector<8x128xf32>
    %90 = vector.extract_strided_slice %1 {offsets = [5, 0, 0], sizes = [1, 8, 128], strides = [1, 1, 1]} : vector<8x8x128xf32> to vector<1x8x128xf32>
    %91 = vector.shape_cast %90 : vector<1x8x128xf32> to vector<8x128xf32>
    %92 = vector.extract_strided_slice %60 {offsets = [5, 0], sizes = [1, 128], strides = [1, 1]} : vector<8x128xf32> to vector<1x128xf32>
    %93 = vector.broadcast %92 : vector<1x128xf32> to vector<8x128xf32>
    %94 = arith.mulf %91, %93 : vector<8x128xf32>
    %95 = arith.addf %89, %94 : vector<8x128xf32>
    %96 = vector.extract_strided_slice %1 {offsets = [6, 0, 0], sizes = [1, 8, 128], strides = [1, 1, 1]} : vector<8x8x128xf32> to vector<1x8x128xf32>
    %97 = vector.shape_cast %96 : vector<1x8x128xf32> to vector<8x128xf32>
    %98 = vector.extract_strided_slice %60 {offsets = [6, 0], sizes = [1, 128], strides = [1, 1]} : vector<8x128xf32> to vector<1x128xf32>
    %99 = vector.broadcast %98 : vector<1x128xf32> to vector<8x128xf32>
    %100 = arith.mulf %97, %99 : vector<8x128xf32>
    %101 = arith.addf %95, %100 : vector<8x128xf32>
    %102 = vector.extract_strided_slice %1 {offsets = [7, 0, 0], sizes = [1, 8, 128], strides = [1, 1, 1]} : vector<8x8x128xf32> to vector<1x8x128xf32>
    %103 = vector.shape_cast %102 : vector<1x8x128xf32> to vector<8x128xf32>
    %104 = vector.extract_strided_slice %60 {offsets = [7, 0], sizes = [1, 128], strides = [1, 1]} : vector<8x128xf32> to vector<1x128xf32>
    %105 = vector.broadcast %104 : vector<1x128xf32> to vector<8x128xf32>
    %106 = arith.mulf %103, %105 : vector<8x128xf32>
    %107 = arith.addf %101, %106 : vector<8x128xf32>
    %108 = arith.addf %60, %0 : vector<8x128xf32>
    %109 = arith.subf %108, %107 : vector<8x128xf32>
    %110 = tpu.concatenate %109, %11 in 0 : vector<8x128xf32>, vector<32x128xf32> -> vector<40x128xf32>
    %cst = arith.constant dense<0.000000e+00> : vector<32x128xf32>
    %111 = tpu.matmul %2, %110, %cst {dimension_numbers = #tpu.dot_dimension_numbers<[1], [0], [0], [1], [0, 0, 1, 1], [], []>} : vector<32x40xf32>, vector<40x128xf32>, vector<32x128xf32> -> vector<32x128xf32>
    %112 = arith.addf %111, %6 : vector<32x128xf32>
    %cst_16 = arith.constant 0.000000e+00 : f32
    %113 = vector.broadcast %cst_16 : f32 to vector<32x128xf32>
    %114 = vector.extract_strided_slice %112 {offsets = [0, 0], sizes = [1, 128], strides = [1, 1]} : vector<32x128xf32> to vector<1x128xf32>
    %115 = vector.broadcast %114 : vector<1x128xf32> to vector<32x128xf32>
    %116 = arith.cmpf ogt, %115, %112 : vector<32x128xf32>
    %cst_17 = arith.constant 1.000000e+00 : f32
    %cst_18 = arith.constant 0.000000e+00 : f32
    %117 = vector.broadcast %cst_17 : f32 to vector<32x128xf32>
    %118 = vector.broadcast %cst_18 : f32 to vector<32x128xf32>
    %119 = arith.select %116, %117, %118 : vector<32x128xi1>, vector<32x128xf32>
    %120 = arith.addf %113, %119 : vector<32x128xf32>
    %121 = vector.extract_strided_slice %112 {offsets = [1, 0], sizes = [1, 128], strides = [1, 1]} : vector<32x128xf32> to vector<1x128xf32>
    %122 = vector.broadcast %121 : vector<1x128xf32> to vector<32x128xf32>
    %123 = arith.cmpf ogt, %122, %112 : vector<32x128xf32>
    %cst_19 = arith.constant 1.000000e+00 : f32
    %cst_20 = arith.constant 0.000000e+00 : f32
    %124 = vector.broadcast %cst_19 : f32 to vector<32x128xf32>
    %125 = vector.broadcast %cst_20 : f32 to vector<32x128xf32>
    %126 = arith.select %123, %124, %125 : vector<32x128xi1>, vector<32x128xf32>
    %127 = arith.addf %120, %126 : vector<32x128xf32>
    %128 = vector.extract_strided_slice %112 {offsets = [2, 0], sizes = [1, 128], strides = [1, 1]} : vector<32x128xf32> to vector<1x128xf32>
    %129 = vector.broadcast %128 : vector<1x128xf32> to vector<32x128xf32>
    %130 = arith.cmpf ogt, %129, %112 : vector<32x128xf32>
    %cst_21 = arith.constant 1.000000e+00 : f32
    %cst_22 = arith.constant 0.000000e+00 : f32
    %131 = vector.broadcast %cst_21 : f32 to vector<32x128xf32>
    %132 = vector.broadcast %cst_22 : f32 to vector<32x128xf32>
    %133 = arith.select %130, %131, %132 : vector<32x128xi1>, vector<32x128xf32>
    %134 = arith.addf %127, %133 : vector<32x128xf32>
    %135 = vector.extract_strided_slice %112 {offsets = [3, 0], sizes = [1, 128], strides = [1, 1]} : vector<32x128xf32> to vector<1x128xf32>
    %136 = vector.broadcast %135 : vector<1x128xf32> to vector<32x128xf32>
    %137 = arith.cmpf ogt, %136, %112 : vector<32x128xf32>
    %cst_23 = arith.constant 1.000000e+00 : f32
    %cst_24 = arith.constant 0.000000e+00 : f32
    %138 = vector.broadcast %cst_23 : f32 to vector<32x128xf32>
    %139 = vector.broadcast %cst_24 : f32 to vector<32x128xf32>
    %140 = arith.select %137, %138, %139 : vector<32x128xi1>, vector<32x128xf32>
    %141 = arith.addf %134, %140 : vector<32x128xf32>
    %142 = vector.extract_strided_slice %112 {offsets = [4, 0], sizes = [1, 128], strides = [1, 1]} : vector<32x128xf32> to vector<1x128xf32>
    %143 = vector.broadcast %142 : vector<1x128xf32> to vector<32x128xf32>
    %144 = arith.cmpf ogt, %143, %112 : vector<32x128xf32>
    %cst_25 = arith.constant 1.000000e+00 : f32
    %cst_26 = arith.constant 0.000000e+00 : f32
    %145 = vector.broadcast %cst_25 : f32 to vector<32x128xf32>
    %146 = vector.broadcast %cst_26 : f32 to vector<32x128xf32>
    %147 = arith.select %144, %145, %146 : vector<32x128xi1>, vector<32x128xf32>
    %148 = arith.addf %141, %147 : vector<32x128xf32>
    %149 = vector.extract_strided_slice %112 {offsets = [5, 0], sizes = [1, 128], strides = [1, 1]} : vector<32x128xf32> to vector<1x128xf32>
    %150 = vector.broadcast %149 : vector<1x128xf32> to vector<32x128xf32>
    %151 = arith.cmpf ogt, %150, %112 : vector<32x128xf32>
    %cst_27 = arith.constant 1.000000e+00 : f32
    %cst_28 = arith.constant 0.000000e+00 : f32
    %152 = vector.broadcast %cst_27 : f32 to vector<32x128xf32>
    %153 = vector.broadcast %cst_28 : f32 to vector<32x128xf32>
    %154 = arith.select %151, %152, %153 : vector<32x128xi1>, vector<32x128xf32>
    %155 = arith.addf %148, %154 : vector<32x128xf32>
    %156 = vector.extract_strided_slice %112 {offsets = [6, 0], sizes = [1, 128], strides = [1, 1]} : vector<32x128xf32> to vector<1x128xf32>
    %157 = vector.broadcast %156 : vector<1x128xf32> to vector<32x128xf32>
    %158 = arith.cmpf ogt, %157, %112 : vector<32x128xf32>
    %cst_29 = arith.constant 1.000000e+00 : f32
    %cst_30 = arith.constant 0.000000e+00 : f32
    %159 = vector.broadcast %cst_29 : f32 to vector<32x128xf32>
    %160 = vector.broadcast %cst_30 : f32 to vector<32x128xf32>
    %161 = arith.select %158, %159, %160 : vector<32x128xi1>, vector<32x128xf32>
    %162 = arith.addf %155, %161 : vector<32x128xf32>
    %163 = vector.extract_strided_slice %112 {offsets = [7, 0], sizes = [1, 128], strides = [1, 1]} : vector<32x128xf32> to vector<1x128xf32>
    %164 = vector.broadcast %163 : vector<1x128xf32> to vector<32x128xf32>
    %165 = arith.cmpf ogt, %164, %112 : vector<32x128xf32>
    %cst_31 = arith.constant 1.000000e+00 : f32
    %cst_32 = arith.constant 0.000000e+00 : f32
    %166 = vector.broadcast %cst_31 : f32 to vector<32x128xf32>
    %167 = vector.broadcast %cst_32 : f32 to vector<32x128xf32>
    %168 = arith.select %165, %166, %167 : vector<32x128xi1>, vector<32x128xf32>
    %169 = arith.addf %162, %168 : vector<32x128xf32>
    %170 = vector.extract_strided_slice %112 {offsets = [8, 0], sizes = [1, 128], strides = [1, 1]} : vector<32x128xf32> to vector<1x128xf32>
    %171 = vector.broadcast %170 : vector<1x128xf32> to vector<32x128xf32>
    %172 = arith.cmpf ogt, %171, %112 : vector<32x128xf32>
    %cst_33 = arith.constant 1.000000e+00 : f32
    %cst_34 = arith.constant 0.000000e+00 : f32
    %173 = vector.broadcast %cst_33 : f32 to vector<32x128xf32>
    %174 = vector.broadcast %cst_34 : f32 to vector<32x128xf32>
    %175 = arith.select %172, %173, %174 : vector<32x128xi1>, vector<32x128xf32>
    %176 = arith.addf %169, %175 : vector<32x128xf32>
    %177 = vector.extract_strided_slice %112 {offsets = [9, 0], sizes = [1, 128], strides = [1, 1]} : vector<32x128xf32> to vector<1x128xf32>
    %178 = vector.broadcast %177 : vector<1x128xf32> to vector<32x128xf32>
    %179 = arith.cmpf ogt, %178, %112 : vector<32x128xf32>
    %cst_35 = arith.constant 1.000000e+00 : f32
    %cst_36 = arith.constant 0.000000e+00 : f32
    %180 = vector.broadcast %cst_35 : f32 to vector<32x128xf32>
    %181 = vector.broadcast %cst_36 : f32 to vector<32x128xf32>
    %182 = arith.select %179, %180, %181 : vector<32x128xi1>, vector<32x128xf32>
    %183 = arith.addf %176, %182 : vector<32x128xf32>
    %184 = vector.extract_strided_slice %112 {offsets = [10, 0], sizes = [1, 128], strides = [1, 1]} : vector<32x128xf32> to vector<1x128xf32>
    %185 = vector.broadcast %184 : vector<1x128xf32> to vector<32x128xf32>
    %186 = arith.cmpf ogt, %185, %112 : vector<32x128xf32>
    %cst_37 = arith.constant 1.000000e+00 : f32
    %cst_38 = arith.constant 0.000000e+00 : f32
    %187 = vector.broadcast %cst_37 : f32 to vector<32x128xf32>
    %188 = vector.broadcast %cst_38 : f32 to vector<32x128xf32>
    %189 = arith.select %186, %187, %188 : vector<32x128xi1>, vector<32x128xf32>
    %190 = arith.addf %183, %189 : vector<32x128xf32>
    %191 = vector.extract_strided_slice %112 {offsets = [11, 0], sizes = [1, 128], strides = [1, 1]} : vector<32x128xf32> to vector<1x128xf32>
    %192 = vector.broadcast %191 : vector<1x128xf32> to vector<32x128xf32>
    %193 = arith.cmpf ogt, %192, %112 : vector<32x128xf32>
    %cst_39 = arith.constant 1.000000e+00 : f32
    %cst_40 = arith.constant 0.000000e+00 : f32
    %194 = vector.broadcast %cst_39 : f32 to vector<32x128xf32>
    %195 = vector.broadcast %cst_40 : f32 to vector<32x128xf32>
    %196 = arith.select %193, %194, %195 : vector<32x128xi1>, vector<32x128xf32>
    %197 = arith.addf %190, %196 : vector<32x128xf32>
    %198 = vector.extract_strided_slice %112 {offsets = [12, 0], sizes = [1, 128], strides = [1, 1]} : vector<32x128xf32> to vector<1x128xf32>
    %199 = vector.broadcast %198 : vector<1x128xf32> to vector<32x128xf32>
    %200 = arith.cmpf ogt, %199, %112 : vector<32x128xf32>
    %cst_41 = arith.constant 1.000000e+00 : f32
    %cst_42 = arith.constant 0.000000e+00 : f32
    %201 = vector.broadcast %cst_41 : f32 to vector<32x128xf32>
    %202 = vector.broadcast %cst_42 : f32 to vector<32x128xf32>
    %203 = arith.select %200, %201, %202 : vector<32x128xi1>, vector<32x128xf32>
    %204 = arith.addf %197, %203 : vector<32x128xf32>
    %205 = vector.extract_strided_slice %112 {offsets = [13, 0], sizes = [1, 128], strides = [1, 1]} : vector<32x128xf32> to vector<1x128xf32>
    %206 = vector.broadcast %205 : vector<1x128xf32> to vector<32x128xf32>
    %207 = arith.cmpf ogt, %206, %112 : vector<32x128xf32>
    %cst_43 = arith.constant 1.000000e+00 : f32
    %cst_44 = arith.constant 0.000000e+00 : f32
    %208 = vector.broadcast %cst_43 : f32 to vector<32x128xf32>
    %209 = vector.broadcast %cst_44 : f32 to vector<32x128xf32>
    %210 = arith.select %207, %208, %209 : vector<32x128xi1>, vector<32x128xf32>
    %211 = arith.addf %204, %210 : vector<32x128xf32>
    %212 = vector.extract_strided_slice %112 {offsets = [14, 0], sizes = [1, 128], strides = [1, 1]} : vector<32x128xf32> to vector<1x128xf32>
    %213 = vector.broadcast %212 : vector<1x128xf32> to vector<32x128xf32>
    %214 = arith.cmpf ogt, %213, %112 : vector<32x128xf32>
    %cst_45 = arith.constant 1.000000e+00 : f32
    %cst_46 = arith.constant 0.000000e+00 : f32
    %215 = vector.broadcast %cst_45 : f32 to vector<32x128xf32>
    %216 = vector.broadcast %cst_46 : f32 to vector<32x128xf32>
    %217 = arith.select %214, %215, %216 : vector<32x128xi1>, vector<32x128xf32>
    %218 = arith.addf %211, %217 : vector<32x128xf32>
    %219 = vector.extract_strided_slice %112 {offsets = [15, 0], sizes = [1, 128], strides = [1, 1]} : vector<32x128xf32> to vector<1x128xf32>
    %220 = vector.broadcast %219 : vector<1x128xf32> to vector<32x128xf32>
    %221 = arith.cmpf ogt, %220, %112 : vector<32x128xf32>
    %cst_47 = arith.constant 1.000000e+00 : f32
    %cst_48 = arith.constant 0.000000e+00 : f32
    %222 = vector.broadcast %cst_47 : f32 to vector<32x128xf32>
    %223 = vector.broadcast %cst_48 : f32 to vector<32x128xf32>
    %224 = arith.select %221, %222, %223 : vector<32x128xi1>, vector<32x128xf32>
    %225 = arith.addf %218, %224 : vector<32x128xf32>
    %226 = vector.extract_strided_slice %112 {offsets = [16, 0], sizes = [1, 128], strides = [1, 1]} : vector<32x128xf32> to vector<1x128xf32>
    %227 = vector.broadcast %226 : vector<1x128xf32> to vector<32x128xf32>
    %228 = arith.cmpf ogt, %227, %112 : vector<32x128xf32>
    %cst_49 = arith.constant 1.000000e+00 : f32
    %cst_50 = arith.constant 0.000000e+00 : f32
    %229 = vector.broadcast %cst_49 : f32 to vector<32x128xf32>
    %230 = vector.broadcast %cst_50 : f32 to vector<32x128xf32>
    %231 = arith.select %228, %229, %230 : vector<32x128xi1>, vector<32x128xf32>
    %232 = arith.addf %225, %231 : vector<32x128xf32>
    %233 = vector.extract_strided_slice %112 {offsets = [17, 0], sizes = [1, 128], strides = [1, 1]} : vector<32x128xf32> to vector<1x128xf32>
    %234 = vector.broadcast %233 : vector<1x128xf32> to vector<32x128xf32>
    %235 = arith.cmpf ogt, %234, %112 : vector<32x128xf32>
    %cst_51 = arith.constant 1.000000e+00 : f32
    %cst_52 = arith.constant 0.000000e+00 : f32
    %236 = vector.broadcast %cst_51 : f32 to vector<32x128xf32>
    %237 = vector.broadcast %cst_52 : f32 to vector<32x128xf32>
    %238 = arith.select %235, %236, %237 : vector<32x128xi1>, vector<32x128xf32>
    %239 = arith.addf %232, %238 : vector<32x128xf32>
    %240 = vector.extract_strided_slice %112 {offsets = [18, 0], sizes = [1, 128], strides = [1, 1]} : vector<32x128xf32> to vector<1x128xf32>
    %241 = vector.broadcast %240 : vector<1x128xf32> to vector<32x128xf32>
    %242 = arith.cmpf ogt, %241, %112 : vector<32x128xf32>
    %cst_53 = arith.constant 1.000000e+00 : f32
    %cst_54 = arith.constant 0.000000e+00 : f32
    %243 = vector.broadcast %cst_53 : f32 to vector<32x128xf32>
    %244 = vector.broadcast %cst_54 : f32 to vector<32x128xf32>
    %245 = arith.select %242, %243, %244 : vector<32x128xi1>, vector<32x128xf32>
    %246 = arith.addf %239, %245 : vector<32x128xf32>
    %247 = vector.extract_strided_slice %112 {offsets = [19, 0], sizes = [1, 128], strides = [1, 1]} : vector<32x128xf32> to vector<1x128xf32>
    %248 = vector.broadcast %247 : vector<1x128xf32> to vector<32x128xf32>
    %249 = arith.cmpf ogt, %248, %112 : vector<32x128xf32>
    %cst_55 = arith.constant 1.000000e+00 : f32
    %cst_56 = arith.constant 0.000000e+00 : f32
    %250 = vector.broadcast %cst_55 : f32 to vector<32x128xf32>
    %251 = vector.broadcast %cst_56 : f32 to vector<32x128xf32>
    %252 = arith.select %249, %250, %251 : vector<32x128xi1>, vector<32x128xf32>
    %253 = arith.addf %246, %252 : vector<32x128xf32>
    %254 = vector.extract_strided_slice %112 {offsets = [20, 0], sizes = [1, 128], strides = [1, 1]} : vector<32x128xf32> to vector<1x128xf32>
    %255 = vector.broadcast %254 : vector<1x128xf32> to vector<32x128xf32>
    %256 = arith.cmpf ogt, %255, %112 : vector<32x128xf32>
    %cst_57 = arith.constant 1.000000e+00 : f32
    %cst_58 = arith.constant 0.000000e+00 : f32
    %257 = vector.broadcast %cst_57 : f32 to vector<32x128xf32>
    %258 = vector.broadcast %cst_58 : f32 to vector<32x128xf32>
    %259 = arith.select %256, %257, %258 : vector<32x128xi1>, vector<32x128xf32>
    %260 = arith.addf %253, %259 : vector<32x128xf32>
    %261 = vector.extract_strided_slice %112 {offsets = [21, 0], sizes = [1, 128], strides = [1, 1]} : vector<32x128xf32> to vector<1x128xf32>
    %262 = vector.broadcast %261 : vector<1x128xf32> to vector<32x128xf32>
    %263 = arith.cmpf ogt, %262, %112 : vector<32x128xf32>
    %cst_59 = arith.constant 1.000000e+00 : f32
    %cst_60 = arith.constant 0.000000e+00 : f32
    %264 = vector.broadcast %cst_59 : f32 to vector<32x128xf32>
    %265 = vector.broadcast %cst_60 : f32 to vector<32x128xf32>
    %266 = arith.select %263, %264, %265 : vector<32x128xi1>, vector<32x128xf32>
    %267 = arith.addf %260, %266 : vector<32x128xf32>
    %268 = vector.extract_strided_slice %112 {offsets = [22, 0], sizes = [1, 128], strides = [1, 1]} : vector<32x128xf32> to vector<1x128xf32>
    %269 = vector.broadcast %268 : vector<1x128xf32> to vector<32x128xf32>
    %270 = arith.cmpf ogt, %269, %112 : vector<32x128xf32>
    %cst_61 = arith.constant 1.000000e+00 : f32
    %cst_62 = arith.constant 0.000000e+00 : f32
    %271 = vector.broadcast %cst_61 : f32 to vector<32x128xf32>
    %272 = vector.broadcast %cst_62 : f32 to vector<32x128xf32>
    %273 = arith.select %270, %271, %272 : vector<32x128xi1>, vector<32x128xf32>
    %274 = arith.addf %267, %273 : vector<32x128xf32>
    %275 = vector.extract_strided_slice %112 {offsets = [23, 0], sizes = [1, 128], strides = [1, 1]} : vector<32x128xf32> to vector<1x128xf32>
    %276 = vector.broadcast %275 : vector<1x128xf32> to vector<32x128xf32>
    %277 = arith.cmpf ogt, %276, %112 : vector<32x128xf32>
    %cst_63 = arith.constant 1.000000e+00 : f32
    %cst_64 = arith.constant 0.000000e+00 : f32
    %278 = vector.broadcast %cst_63 : f32 to vector<32x128xf32>
    %279 = vector.broadcast %cst_64 : f32 to vector<32x128xf32>
    %280 = arith.select %277, %278, %279 : vector<32x128xi1>, vector<32x128xf32>
    %281 = arith.addf %274, %280 : vector<32x128xf32>
    %282 = vector.extract_strided_slice %112 {offsets = [24, 0], sizes = [1, 128], strides = [1, 1]} : vector<32x128xf32> to vector<1x128xf32>
    %283 = vector.broadcast %282 : vector<1x128xf32> to vector<32x128xf32>
    %284 = arith.cmpf ogt, %283, %112 : vector<32x128xf32>
    %cst_65 = arith.constant 1.000000e+00 : f32
    %cst_66 = arith.constant 0.000000e+00 : f32
    %285 = vector.broadcast %cst_65 : f32 to vector<32x128xf32>
    %286 = vector.broadcast %cst_66 : f32 to vector<32x128xf32>
    %287 = arith.select %284, %285, %286 : vector<32x128xi1>, vector<32x128xf32>
    %288 = arith.addf %281, %287 : vector<32x128xf32>
    %289 = vector.extract_strided_slice %112 {offsets = [25, 0], sizes = [1, 128], strides = [1, 1]} : vector<32x128xf32> to vector<1x128xf32>
    %290 = vector.broadcast %289 : vector<1x128xf32> to vector<32x128xf32>
    %291 = arith.cmpf ogt, %290, %112 : vector<32x128xf32>
    %cst_67 = arith.constant 1.000000e+00 : f32
    %cst_68 = arith.constant 0.000000e+00 : f32
    %292 = vector.broadcast %cst_67 : f32 to vector<32x128xf32>
    %293 = vector.broadcast %cst_68 : f32 to vector<32x128xf32>
    %294 = arith.select %291, %292, %293 : vector<32x128xi1>, vector<32x128xf32>
    %295 = arith.addf %288, %294 : vector<32x128xf32>
    %296 = vector.extract_strided_slice %112 {offsets = [26, 0], sizes = [1, 128], strides = [1, 1]} : vector<32x128xf32> to vector<1x128xf32>
    %297 = vector.broadcast %296 : vector<1x128xf32> to vector<32x128xf32>
    %298 = arith.cmpf ogt, %297, %112 : vector<32x128xf32>
    %cst_69 = arith.constant 1.000000e+00 : f32
    %cst_70 = arith.constant 0.000000e+00 : f32
    %299 = vector.broadcast %cst_69 : f32 to vector<32x128xf32>
    %300 = vector.broadcast %cst_70 : f32 to vector<32x128xf32>
    %301 = arith.select %298, %299, %300 : vector<32x128xi1>, vector<32x128xf32>
    %302 = arith.addf %295, %301 : vector<32x128xf32>
    %303 = vector.extract_strided_slice %112 {offsets = [27, 0], sizes = [1, 128], strides = [1, 1]} : vector<32x128xf32> to vector<1x128xf32>
    %304 = vector.broadcast %303 : vector<1x128xf32> to vector<32x128xf32>
    %305 = arith.cmpf ogt, %304, %112 : vector<32x128xf32>
    %cst_71 = arith.constant 1.000000e+00 : f32
    %cst_72 = arith.constant 0.000000e+00 : f32
    %306 = vector.broadcast %cst_71 : f32 to vector<32x128xf32>
    %307 = vector.broadcast %cst_72 : f32 to vector<32x128xf32>
    %308 = arith.select %305, %306, %307 : vector<32x128xi1>, vector<32x128xf32>
    %309 = arith.addf %302, %308 : vector<32x128xf32>
    %310 = vector.extract_strided_slice %112 {offsets = [28, 0], sizes = [1, 128], strides = [1, 1]} : vector<32x128xf32> to vector<1x128xf32>
    %311 = vector.broadcast %310 : vector<1x128xf32> to vector<32x128xf32>
    %312 = arith.cmpf ogt, %311, %112 : vector<32x128xf32>
    %cst_73 = arith.constant 1.000000e+00 : f32
    %cst_74 = arith.constant 0.000000e+00 : f32
    %313 = vector.broadcast %cst_73 : f32 to vector<32x128xf32>
    %314 = vector.broadcast %cst_74 : f32 to vector<32x128xf32>
    %315 = arith.select %312, %313, %314 : vector<32x128xi1>, vector<32x128xf32>
    %316 = arith.addf %309, %315 : vector<32x128xf32>
    %317 = vector.extract_strided_slice %112 {offsets = [29, 0], sizes = [1, 128], strides = [1, 1]} : vector<32x128xf32> to vector<1x128xf32>
    %318 = vector.broadcast %317 : vector<1x128xf32> to vector<32x128xf32>
    %319 = arith.cmpf ogt, %318, %112 : vector<32x128xf32>
    %cst_75 = arith.constant 1.000000e+00 : f32
    %cst_76 = arith.constant 0.000000e+00 : f32
    %320 = vector.broadcast %cst_75 : f32 to vector<32x128xf32>
    %321 = vector.broadcast %cst_76 : f32 to vector<32x128xf32>
    %322 = arith.select %319, %320, %321 : vector<32x128xi1>, vector<32x128xf32>
    %323 = arith.addf %316, %322 : vector<32x128xf32>
    %324 = vector.extract_strided_slice %112 {offsets = [30, 0], sizes = [1, 128], strides = [1, 1]} : vector<32x128xf32> to vector<1x128xf32>
    %325 = vector.broadcast %324 : vector<1x128xf32> to vector<32x128xf32>
    %326 = arith.cmpf ogt, %325, %112 : vector<32x128xf32>
    %cst_77 = arith.constant 1.000000e+00 : f32
    %cst_78 = arith.constant 0.000000e+00 : f32
    %327 = vector.broadcast %cst_77 : f32 to vector<32x128xf32>
    %328 = vector.broadcast %cst_78 : f32 to vector<32x128xf32>
    %329 = arith.select %326, %327, %328 : vector<32x128xi1>, vector<32x128xf32>
    %330 = arith.addf %323, %329 : vector<32x128xf32>
    %331 = vector.extract_strided_slice %112 {offsets = [31, 0], sizes = [1, 128], strides = [1, 1]} : vector<32x128xf32> to vector<1x128xf32>
    %332 = vector.broadcast %331 : vector<1x128xf32> to vector<32x128xf32>
    %333 = arith.cmpf ogt, %332, %112 : vector<32x128xf32>
    %cst_79 = arith.constant 1.000000e+00 : f32
    %cst_80 = arith.constant 0.000000e+00 : f32
    %334 = vector.broadcast %cst_79 : f32 to vector<32x128xf32>
    %335 = vector.broadcast %cst_80 : f32 to vector<32x128xf32>
    %336 = arith.select %333, %334, %335 : vector<32x128xi1>, vector<32x128xf32>
    %337 = arith.addf %330, %336 : vector<32x128xf32>
    %cst_81 = arith.constant 1.900000e+01 : f32
    %338 = vector.broadcast %cst_81 : f32 to vector<32x128xf32>
    %339 = arith.cmpf olt, %337, %338 : vector<32x128xf32>
    %cst_82 = arith.constant 0.000000e+00 : f32
    %340 = vector.broadcast %cst_82 : f32 to vector<32x128xf32>
    %341 = arith.select %339, %112, %340 : vector<32x128xi1>, vector<32x128xf32>
    %cst_83 = arith.constant dense<0.000000e+00> : vector<8x128xf32>
    %342 = tpu.matmul %3, %341, %cst_83 {dimension_numbers = #tpu.dot_dimension_numbers<[1], [0], [0], [1], [0, 0, 1, 1], [], []>} : vector<8x32xf32>, vector<32x128xf32>, vector<8x128xf32> -> vector<8x128xf32>
    %343 = arith.addf %342, %9 : vector<8x128xf32>
    %c0_84 = arith.constant 0 : index
    %c0_85 = arith.constant 0 : index
    %c0_86 = arith.constant 0 : index
    %344 = vector.load %arg11[%c0_84, %c0_85, %c0_86] : memref<3x8x128xf32, #tpu.memory_space<vmem>>, vector<1x8x128xf32>
    %345 = vector.shape_cast %344 : vector<1x8x128xf32> to vector<8x128xf32>
    %346 = vector.shape_cast %343 : vector<8x128xf32> to vector<1x8x128xf32>
    tpu.vector_store %arg11[%c0_84, %c0_85, %c0_86], %346 {strides = array<i32>} : memref<3x8x128xf32, #tpu.memory_space<vmem>>, vector<1x8x128xf32>,
    %347 = vector.extract_strided_slice %1 {offsets = [0, 0, 0], sizes = [1, 8, 128], strides = [1, 1, 1]} : vector<8x8x128xf32> to vector<1x8x128xf32>
    %348 = vector.shape_cast %347 : vector<1x8x128xf32> to vector<8x128xf32>
    %349 = vector.extract_strided_slice %343 {offsets = [0, 0], sizes = [1, 128], strides = [1, 1]} : vector<8x128xf32> to vector<1x128xf32>
    %350 = vector.broadcast %349 : vector<1x128xf32> to vector<8x128xf32>
    %351 = arith.mulf %348, %350 : vector<8x128xf32>
    %352 = vector.extract_strided_slice %1 {offsets = [1, 0, 0], sizes = [1, 8, 128], strides = [1, 1, 1]} : vector<8x8x128xf32> to vector<1x8x128xf32>
    %353 = vector.shape_cast %352 : vector<1x8x128xf32> to vector<8x128xf32>
    %354 = vector.extract_strided_slice %343 {offsets = [1, 0], sizes = [1, 128], strides = [1, 1]} : vector<8x128xf32> to vector<1x128xf32>
    %355 = vector.broadcast %354 : vector<1x128xf32> to vector<8x128xf32>
    %356 = arith.mulf %353, %355 : vector<8x128xf32>
    %357 = arith.addf %351, %356 : vector<8x128xf32>
    %358 = vector.extract_strided_slice %1 {offsets = [2, 0, 0], sizes = [1, 8, 128], strides = [1, 1, 1]} : vector<8x8x128xf32> to vector<1x8x128xf32>
    %359 = vector.shape_cast %358 : vector<1x8x128xf32> to vector<8x128xf32>
    %360 = vector.extract_strided_slice %343 {offsets = [2, 0], sizes = [1, 128], strides = [1, 1]} : vector<8x128xf32> to vector<1x128xf32>
    %361 = vector.broadcast %360 : vector<1x128xf32> to vector<8x128xf32>
    %362 = arith.mulf %359, %361 : vector<8x128xf32>
    %363 = arith.addf %357, %362 : vector<8x128xf32>
    %364 = vector.extract_strided_slice %1 {offsets = [3, 0, 0], sizes = [1, 8, 128], strides = [1, 1, 1]} : vector<8x8x128xf32> to vector<1x8x128xf32>
    %365 = vector.shape_cast %364 : vector<1x8x128xf32> to vector<8x128xf32>
    %366 = vector.extract_strided_slice %343 {offsets = [3, 0], sizes = [1, 128], strides = [1, 1]} : vector<8x128xf32> to vector<1x128xf32>
    %367 = vector.broadcast %366 : vector<1x128xf32> to vector<8x128xf32>
    %368 = arith.mulf %365, %367 : vector<8x128xf32>
    %369 = arith.addf %363, %368 : vector<8x128xf32>
    %370 = vector.extract_strided_slice %1 {offsets = [4, 0, 0], sizes = [1, 8, 128], strides = [1, 1, 1]} : vector<8x8x128xf32> to vector<1x8x128xf32>
    %371 = vector.shape_cast %370 : vector<1x8x128xf32> to vector<8x128xf32>
    %372 = vector.extract_strided_slice %343 {offsets = [4, 0], sizes = [1, 128], strides = [1, 1]} : vector<8x128xf32> to vector<1x128xf32>
    %373 = vector.broadcast %372 : vector<1x128xf32> to vector<8x128xf32>
    %374 = arith.mulf %371, %373 : vector<8x128xf32>
    %375 = arith.addf %369, %374 : vector<8x128xf32>
    %376 = vector.extract_strided_slice %1 {offsets = [5, 0, 0], sizes = [1, 8, 128], strides = [1, 1, 1]} : vector<8x8x128xf32> to vector<1x8x128xf32>
    %377 = vector.shape_cast %376 : vector<1x8x128xf32> to vector<8x128xf32>
    %378 = vector.extract_strided_slice %343 {offsets = [5, 0], sizes = [1, 128], strides = [1, 1]} : vector<8x128xf32> to vector<1x128xf32>
    %379 = vector.broadcast %378 : vector<1x128xf32> to vector<8x128xf32>
    %380 = arith.mulf %377, %379 : vector<8x128xf32>
    %381 = arith.addf %375, %380 : vector<8x128xf32>
    %382 = vector.extract_strided_slice %1 {offsets = [6, 0, 0], sizes = [1, 8, 128], strides = [1, 1, 1]} : vector<8x8x128xf32> to vector<1x8x128xf32>
    %383 = vector.shape_cast %382 : vector<1x8x128xf32> to vector<8x128xf32>
    %384 = vector.extract_strided_slice %343 {offsets = [6, 0], sizes = [1, 128], strides = [1, 1]} : vector<8x128xf32> to vector<1x128xf32>
    %385 = vector.broadcast %384 : vector<1x128xf32> to vector<8x128xf32>
    %386 = arith.mulf %383, %385 : vector<8x128xf32>
    %387 = arith.addf %381, %386 : vector<8x128xf32>
    %388 = vector.extract_strided_slice %1 {offsets = [7, 0, 0], sizes = [1, 8, 128], strides = [1, 1, 1]} : vector<8x8x128xf32> to vector<1x8x128xf32>
    %389 = vector.shape_cast %388 : vector<1x8x128xf32> to vector<8x128xf32>
    %390 = vector.extract_strided_slice %343 {offsets = [7, 0], sizes = [1, 128], strides = [1, 1]} : vector<8x128xf32> to vector<1x128xf32>
    %391 = vector.broadcast %390 : vector<1x128xf32> to vector<8x128xf32>
    %392 = arith.mulf %389, %391 : vector<8x128xf32>
    %393 = arith.addf %387, %392 : vector<8x128xf32>
    %394 = arith.addf %343, %0 : vector<8x128xf32>
    %395 = arith.subf %394, %393 : vector<8x128xf32>
    %396 = vector.extract_strided_slice %1 {offsets = [0, 0, 0], sizes = [1, 8, 128], strides = [1, 1, 1]} : vector<8x8x128xf32> to vector<1x8x128xf32>
    %397 = vector.shape_cast %396 : vector<1x8x128xf32> to vector<8x128xf32>
    %398 = vector.extract_strided_slice %395 {offsets = [0, 0], sizes = [1, 128], strides = [1, 1]} : vector<8x128xf32> to vector<1x128xf32>
    %399 = vector.broadcast %398 : vector<1x128xf32> to vector<8x128xf32>
    %400 = arith.mulf %397, %399 : vector<8x128xf32>
    %401 = vector.extract_strided_slice %1 {offsets = [1, 0, 0], sizes = [1, 8, 128], strides = [1, 1, 1]} : vector<8x8x128xf32> to vector<1x8x128xf32>
    %402 = vector.shape_cast %401 : vector<1x8x128xf32> to vector<8x128xf32>
    %403 = vector.extract_strided_slice %395 {offsets = [1, 0], sizes = [1, 128], strides = [1, 1]} : vector<8x128xf32> to vector<1x128xf32>
    %404 = vector.broadcast %403 : vector<1x128xf32> to vector<8x128xf32>
    %405 = arith.mulf %402, %404 : vector<8x128xf32>
    %406 = arith.addf %400, %405 : vector<8x128xf32>
    %407 = vector.extract_strided_slice %1 {offsets = [2, 0, 0], sizes = [1, 8, 128], strides = [1, 1, 1]} : vector<8x8x128xf32> to vector<1x8x128xf32>
    %408 = vector.shape_cast %407 : vector<1x8x128xf32> to vector<8x128xf32>
    %409 = vector.extract_strided_slice %395 {offsets = [2, 0], sizes = [1, 128], strides = [1, 1]} : vector<8x128xf32> to vector<1x128xf32>
    %410 = vector.broadcast %409 : vector<1x128xf32> to vector<8x128xf32>
    %411 = arith.mulf %408, %410 : vector<8x128xf32>
    %412 = arith.addf %406, %411 : vector<8x128xf32>
    %413 = vector.extract_strided_slice %1 {offsets = [3, 0, 0], sizes = [1, 8, 128], strides = [1, 1, 1]} : vector<8x8x128xf32> to vector<1x8x128xf32>
    %414 = vector.shape_cast %413 : vector<1x8x128xf32> to vector<8x128xf32>
    %415 = vector.extract_strided_slice %395 {offsets = [3, 0], sizes = [1, 128], strides = [1, 1]} : vector<8x128xf32> to vector<1x128xf32>
    %416 = vector.broadcast %415 : vector<1x128xf32> to vector<8x128xf32>
    %417 = arith.mulf %414, %416 : vector<8x128xf32>
    %418 = arith.addf %412, %417 : vector<8x128xf32>
    %419 = vector.extract_strided_slice %1 {offsets = [4, 0, 0], sizes = [1, 8, 128], strides = [1, 1, 1]} : vector<8x8x128xf32> to vector<1x8x128xf32>
    %420 = vector.shape_cast %419 : vector<1x8x128xf32> to vector<8x128xf32>
    %421 = vector.extract_strided_slice %395 {offsets = [4, 0], sizes = [1, 128], strides = [1, 1]} : vector<8x128xf32> to vector<1x128xf32>
    %422 = vector.broadcast %421 : vector<1x128xf32> to vector<8x128xf32>
    %423 = arith.mulf %420, %422 : vector<8x128xf32>
    %424 = arith.addf %418, %423 : vector<8x128xf32>
    %425 = vector.extract_strided_slice %1 {offsets = [5, 0, 0], sizes = [1, 8, 128], strides = [1, 1, 1]} : vector<8x8x128xf32> to vector<1x8x128xf32>
    %426 = vector.shape_cast %425 : vector<1x8x128xf32> to vector<8x128xf32>
    %427 = vector.extract_strided_slice %395 {offsets = [5, 0], sizes = [1, 128], strides = [1, 1]} : vector<8x128xf32> to vector<1x128xf32>
    %428 = vector.broadcast %427 : vector<1x128xf32> to vector<8x128xf32>
    %429 = arith.mulf %426, %428 : vector<8x128xf32>
    %430 = arith.addf %424, %429 : vector<8x128xf32>
    %431 = vector.extract_strided_slice %1 {offsets = [6, 0, 0], sizes = [1, 8, 128], strides = [1, 1, 1]} : vector<8x8x128xf32> to vector<1x8x128xf32>
    %432 = vector.shape_cast %431 : vector<1x8x128xf32> to vector<8x128xf32>
    %433 = vector.extract_strided_slice %395 {offsets = [6, 0], sizes = [1, 128], strides = [1, 1]} : vector<8x128xf32> to vector<1x128xf32>
    %434 = vector.broadcast %433 : vector<1x128xf32> to vector<8x128xf32>
    %435 = arith.mulf %432, %434 : vector<8x128xf32>
    %436 = arith.addf %430, %435 : vector<8x128xf32>
    %437 = vector.extract_strided_slice %1 {offsets = [7, 0, 0], sizes = [1, 8, 128], strides = [1, 1, 1]} : vector<8x8x128xf32> to vector<1x8x128xf32>
    %438 = vector.shape_cast %437 : vector<1x8x128xf32> to vector<8x128xf32>
    %439 = vector.extract_strided_slice %395 {offsets = [7, 0], sizes = [1, 128], strides = [1, 1]} : vector<8x128xf32> to vector<1x128xf32>
    %440 = vector.broadcast %439 : vector<1x128xf32> to vector<8x128xf32>
    %441 = arith.mulf %438, %440 : vector<8x128xf32>
    %442 = arith.addf %436, %441 : vector<8x128xf32>
    %443 = arith.addf %395, %0 : vector<8x128xf32>
    %444 = arith.subf %443, %442 : vector<8x128xf32>
    %445 = tpu.concatenate %444, %341 in 0 : vector<8x128xf32>, vector<32x128xf32> -> vector<40x128xf32>
    %cst_87 = arith.constant dense<0.000000e+00> : vector<32x128xf32>
    %446 = tpu.matmul %2, %445, %cst_87 {dimension_numbers = #tpu.dot_dimension_numbers<[1], [0], [0], [1], [0, 0, 1, 1], [], []>} : vector<32x40xf32>, vector<40x128xf32>, vector<32x128xf32> -> vector<32x128xf32>
    %447 = arith.addf %446, %6 : vector<32x128xf32>
    %cst_88 = arith.constant 0.000000e+00 : f32
    %448 = vector.broadcast %cst_88 : f32 to vector<32x128xf32>
    %449 = vector.extract_strided_slice %447 {offsets = [0, 0], sizes = [1, 128], strides = [1, 1]} : vector<32x128xf32> to vector<1x128xf32>
    %450 = vector.broadcast %449 : vector<1x128xf32> to vector<32x128xf32>
    %451 = arith.cmpf ogt, %450, %447 : vector<32x128xf32>
    %cst_89 = arith.constant 1.000000e+00 : f32
    %cst_90 = arith.constant 0.000000e+00 : f32
    %452 = vector.broadcast %cst_89 : f32 to vector<32x128xf32>
    %453 = vector.broadcast %cst_90 : f32 to vector<32x128xf32>
    %454 = arith.select %451, %452, %453 : vector<32x128xi1>, vector<32x128xf32>
    %455 = arith.addf %448, %454 : vector<32x128xf32>
    %456 = vector.extract_strided_slice %447 {offsets = [1, 0], sizes = [1, 128], strides = [1, 1]} : vector<32x128xf32> to vector<1x128xf32>
    %457 = vector.broadcast %456 : vector<1x128xf32> to vector<32x128xf32>
    %458 = arith.cmpf ogt, %457, %447 : vector<32x128xf32>
    %cst_91 = arith.constant 1.000000e+00 : f32
    %cst_92 = arith.constant 0.000000e+00 : f32
    %459 = vector.broadcast %cst_91 : f32 to vector<32x128xf32>
    %460 = vector.broadcast %cst_92 : f32 to vector<32x128xf32>
    %461 = arith.select %458, %459, %460 : vector<32x128xi1>, vector<32x128xf32>
    %462 = arith.addf %455, %461 : vector<32x128xf32>
    %463 = vector.extract_strided_slice %447 {offsets = [2, 0], sizes = [1, 128], strides = [1, 1]} : vector<32x128xf32> to vector<1x128xf32>
    %464 = vector.broadcast %463 : vector<1x128xf32> to vector<32x128xf32>
    %465 = arith.cmpf ogt, %464, %447 : vector<32x128xf32>
    %cst_93 = arith.constant 1.000000e+00 : f32
    %cst_94 = arith.constant 0.000000e+00 : f32
    %466 = vector.broadcast %cst_93 : f32 to vector<32x128xf32>
    %467 = vector.broadcast %cst_94 : f32 to vector<32x128xf32>
    %468 = arith.select %465, %466, %467 : vector<32x128xi1>, vector<32x128xf32>
    %469 = arith.addf %462, %468 : vector<32x128xf32>
    %470 = vector.extract_strided_slice %447 {offsets = [3, 0], sizes = [1, 128], strides = [1, 1]} : vector<32x128xf32> to vector<1x128xf32>
    %471 = vector.broadcast %470 : vector<1x128xf32> to vector<32x128xf32>
    %472 = arith.cmpf ogt, %471, %447 : vector<32x128xf32>
    %cst_95 = arith.constant 1.000000e+00 : f32
    %cst_96 = arith.constant 0.000000e+00 : f32
    %473 = vector.broadcast %cst_95 : f32 to vector<32x128xf32>
    %474 = vector.broadcast %cst_96 : f32 to vector<32x128xf32>
    %475 = arith.select %472, %473, %474 : vector<32x128xi1>, vector<32x128xf32>
    %476 = arith.addf %469, %475 : vector<32x128xf32>
    %477 = vector.extract_strided_slice %447 {offsets = [4, 0], sizes = [1, 128], strides = [1, 1]} : vector<32x128xf32> to vector<1x128xf32>
    %478 = vector.broadcast %477 : vector<1x128xf32> to vector<32x128xf32>
    %479 = arith.cmpf ogt, %478, %447 : vector<32x128xf32>
    %cst_97 = arith.constant 1.000000e+00 : f32
    %cst_98 = arith.constant 0.000000e+00 : f32
    %480 = vector.broadcast %cst_97 : f32 to vector<32x128xf32>
    %481 = vector.broadcast %cst_98 : f32 to vector<32x128xf32>
    %482 = arith.select %479, %480, %481 : vector<32x128xi1>, vector<32x128xf32>
    %483 = arith.addf %476, %482 : vector<32x128xf32>
    %484 = vector.extract_strided_slice %447 {offsets = [5, 0], sizes = [1, 128], strides = [1, 1]} : vector<32x128xf32> to vector<1x128xf32>
    %485 = vector.broadcast %484 : vector<1x128xf32> to vector<32x128xf32>
    %486 = arith.cmpf ogt, %485, %447 : vector<32x128xf32>
    %cst_99 = arith.constant 1.000000e+00 : f32
    %cst_100 = arith.constant 0.000000e+00 : f32
    %487 = vector.broadcast %cst_99 : f32 to vector<32x128xf32>
    %488 = vector.broadcast %cst_100 : f32 to vector<32x128xf32>
    %489 = arith.select %486, %487, %488 : vector<32x128xi1>, vector<32x128xf32>
    %490 = arith.addf %483, %489 : vector<32x128xf32>
    %491 = vector.extract_strided_slice %447 {offsets = [6, 0], sizes = [1, 128], strides = [1, 1]} : vector<32x128xf32> to vector<1x128xf32>
    %492 = vector.broadcast %491 : vector<1x128xf32> to vector<32x128xf32>
    %493 = arith.cmpf ogt, %492, %447 : vector<32x128xf32>
    %cst_101 = arith.constant 1.000000e+00 : f32
    %cst_102 = arith.constant 0.000000e+00 : f32
    %494 = vector.broadcast %cst_101 : f32 to vector<32x128xf32>
    %495 = vector.broadcast %cst_102 : f32 to vector<32x128xf32>
    %496 = arith.select %493, %494, %495 : vector<32x128xi1>, vector<32x128xf32>
    %497 = arith.addf %490, %496 : vector<32x128xf32>
    %498 = vector.extract_strided_slice %447 {offsets = [7, 0], sizes = [1, 128], strides = [1, 1]} : vector<32x128xf32> to vector<1x128xf32>
    %499 = vector.broadcast %498 : vector<1x128xf32> to vector<32x128xf32>
    %500 = arith.cmpf ogt, %499, %447 : vector<32x128xf32>
    %cst_103 = arith.constant 1.000000e+00 : f32
    %cst_104 = arith.constant 0.000000e+00 : f32
    %501 = vector.broadcast %cst_103 : f32 to vector<32x128xf32>
    %502 = vector.broadcast %cst_104 : f32 to vector<32x128xf32>
    %503 = arith.select %500, %501, %502 : vector<32x128xi1>, vector<32x128xf32>
    %504 = arith.addf %497, %503 : vector<32x128xf32>
    %505 = vector.extract_strided_slice %447 {offsets = [8, 0], sizes = [1, 128], strides = [1, 1]} : vector<32x128xf32> to vector<1x128xf32>
    %506 = vector.broadcast %505 : vector<1x128xf32> to vector<32x128xf32>
    %507 = arith.cmpf ogt, %506, %447 : vector<32x128xf32>
    %cst_105 = arith.constant 1.000000e+00 : f32
    %cst_106 = arith.constant 0.000000e+00 : f32
    %508 = vector.broadcast %cst_105 : f32 to vector<32x128xf32>
    %509 = vector.broadcast %cst_106 : f32 to vector<32x128xf32>
    %510 = arith.select %507, %508, %509 : vector<32x128xi1>, vector<32x128xf32>
    %511 = arith.addf %504, %510 : vector<32x128xf32>
    %512 = vector.extract_strided_slice %447 {offsets = [9, 0], sizes = [1, 128], strides = [1, 1]} : vector<32x128xf32> to vector<1x128xf32>
    %513 = vector.broadcast %512 : vector<1x128xf32> to vector<32x128xf32>
    %514 = arith.cmpf ogt, %513, %447 : vector<32x128xf32>
    %cst_107 = arith.constant 1.000000e+00 : f32
    %cst_108 = arith.constant 0.000000e+00 : f32
    %515 = vector.broadcast %cst_107 : f32 to vector<32x128xf32>
    %516 = vector.broadcast %cst_108 : f32 to vector<32x128xf32>
    %517 = arith.select %514, %515, %516 : vector<32x128xi1>, vector<32x128xf32>
    %518 = arith.addf %511, %517 : vector<32x128xf32>
    %519 = vector.extract_strided_slice %447 {offsets = [10, 0], sizes = [1, 128], strides = [1, 1]} : vector<32x128xf32> to vector<1x128xf32>
    %520 = vector.broadcast %519 : vector<1x128xf32> to vector<32x128xf32>
    %521 = arith.cmpf ogt, %520, %447 : vector<32x128xf32>
    %cst_109 = arith.constant 1.000000e+00 : f32
    %cst_110 = arith.constant 0.000000e+00 : f32
    %522 = vector.broadcast %cst_109 : f32 to vector<32x128xf32>
    %523 = vector.broadcast %cst_110 : f32 to vector<32x128xf32>
    %524 = arith.select %521, %522, %523 : vector<32x128xi1>, vector<32x128xf32>
    %525 = arith.addf %518, %524 : vector<32x128xf32>
    %526 = vector.extract_strided_slice %447 {offsets = [11, 0], sizes = [1, 128], strides = [1, 1]} : vector<32x128xf32> to vector<1x128xf32>
    %527 = vector.broadcast %526 : vector<1x128xf32> to vector<32x128xf32>
    %528 = arith.cmpf ogt, %527, %447 : vector<32x128xf32>
    %cst_111 = arith.constant 1.000000e+00 : f32
    %cst_112 = arith.constant 0.000000e+00 : f32
    %529 = vector.broadcast %cst_111 : f32 to vector<32x128xf32>
    %530 = vector.broadcast %cst_112 : f32 to vector<32x128xf32>
    %531 = arith.select %528, %529, %530 : vector<32x128xi1>, vector<32x128xf32>
    %532 = arith.addf %525, %531 : vector<32x128xf32>
    %533 = vector.extract_strided_slice %447 {offsets = [12, 0], sizes = [1, 128], strides = [1, 1]} : vector<32x128xf32> to vector<1x128xf32>
    %534 = vector.broadcast %533 : vector<1x128xf32> to vector<32x128xf32>
    %535 = arith.cmpf ogt, %534, %447 : vector<32x128xf32>
    %cst_113 = arith.constant 1.000000e+00 : f32
    %cst_114 = arith.constant 0.000000e+00 : f32
    %536 = vector.broadcast %cst_113 : f32 to vector<32x128xf32>
    %537 = vector.broadcast %cst_114 : f32 to vector<32x128xf32>
    %538 = arith.select %535, %536, %537 : vector<32x128xi1>, vector<32x128xf32>
    %539 = arith.addf %532, %538 : vector<32x128xf32>
    %540 = vector.extract_strided_slice %447 {offsets = [13, 0], sizes = [1, 128], strides = [1, 1]} : vector<32x128xf32> to vector<1x128xf32>
    %541 = vector.broadcast %540 : vector<1x128xf32> to vector<32x128xf32>
    %542 = arith.cmpf ogt, %541, %447 : vector<32x128xf32>
    %cst_115 = arith.constant 1.000000e+00 : f32
    %cst_116 = arith.constant 0.000000e+00 : f32
    %543 = vector.broadcast %cst_115 : f32 to vector<32x128xf32>
    %544 = vector.broadcast %cst_116 : f32 to vector<32x128xf32>
    %545 = arith.select %542, %543, %544 : vector<32x128xi1>, vector<32x128xf32>
    %546 = arith.addf %539, %545 : vector<32x128xf32>
    %547 = vector.extract_strided_slice %447 {offsets = [14, 0], sizes = [1, 128], strides = [1, 1]} : vector<32x128xf32> to vector<1x128xf32>
    %548 = vector.broadcast %547 : vector<1x128xf32> to vector<32x128xf32>
    %549 = arith.cmpf ogt, %548, %447 : vector<32x128xf32>
    %cst_117 = arith.constant 1.000000e+00 : f32
    %cst_118 = arith.constant 0.000000e+00 : f32
    %550 = vector.broadcast %cst_117 : f32 to vector<32x128xf32>
    %551 = vector.broadcast %cst_118 : f32 to vector<32x128xf32>
    %552 = arith.select %549, %550, %551 : vector<32x128xi1>, vector<32x128xf32>
    %553 = arith.addf %546, %552 : vector<32x128xf32>
    %554 = vector.extract_strided_slice %447 {offsets = [15, 0], sizes = [1, 128], strides = [1, 1]} : vector<32x128xf32> to vector<1x128xf32>
    %555 = vector.broadcast %554 : vector<1x128xf32> to vector<32x128xf32>
    %556 = arith.cmpf ogt, %555, %447 : vector<32x128xf32>
    %cst_119 = arith.constant 1.000000e+00 : f32
    %cst_120 = arith.constant 0.000000e+00 : f32
    %557 = vector.broadcast %cst_119 : f32 to vector<32x128xf32>
    %558 = vector.broadcast %cst_120 : f32 to vector<32x128xf32>
    %559 = arith.select %556, %557, %558 : vector<32x128xi1>, vector<32x128xf32>
    %560 = arith.addf %553, %559 : vector<32x128xf32>
    %561 = vector.extract_strided_slice %447 {offsets = [16, 0], sizes = [1, 128], strides = [1, 1]} : vector<32x128xf32> to vector<1x128xf32>
    %562 = vector.broadcast %561 : vector<1x128xf32> to vector<32x128xf32>
    %563 = arith.cmpf ogt, %562, %447 : vector<32x128xf32>
    %cst_121 = arith.constant 1.000000e+00 : f32
    %cst_122 = arith.constant 0.000000e+00 : f32
    %564 = vector.broadcast %cst_121 : f32 to vector<32x128xf32>
    %565 = vector.broadcast %cst_122 : f32 to vector<32x128xf32>
    %566 = arith.select %563, %564, %565 : vector<32x128xi1>, vector<32x128xf32>
    %567 = arith.addf %560, %566 : vector<32x128xf32>
    %568 = vector.extract_strided_slice %447 {offsets = [17, 0], sizes = [1, 128], strides = [1, 1]} : vector<32x128xf32> to vector<1x128xf32>
    %569 = vector.broadcast %568 : vector<1x128xf32> to vector<32x128xf32>
    %570 = arith.cmpf ogt, %569, %447 : vector<32x128xf32>
    %cst_123 = arith.constant 1.000000e+00 : f32
    %cst_124 = arith.constant 0.000000e+00 : f32
    %571 = vector.broadcast %cst_123 : f32 to vector<32x128xf32>
    %572 = vector.broadcast %cst_124 : f32 to vector<32x128xf32>
    %573 = arith.select %570, %571, %572 : vector<32x128xi1>, vector<32x128xf32>
    %574 = arith.addf %567, %573 : vector<32x128xf32>
    %575 = vector.extract_strided_slice %447 {offsets = [18, 0], sizes = [1, 128], strides = [1, 1]} : vector<32x128xf32> to vector<1x128xf32>
    %576 = vector.broadcast %575 : vector<1x128xf32> to vector<32x128xf32>
    %577 = arith.cmpf ogt, %576, %447 : vector<32x128xf32>
    %cst_125 = arith.constant 1.000000e+00 : f32
    %cst_126 = arith.constant 0.000000e+00 : f32
    %578 = vector.broadcast %cst_125 : f32 to vector<32x128xf32>
    %579 = vector.broadcast %cst_126 : f32 to vector<32x128xf32>
    %580 = arith.select %577, %578, %579 : vector<32x128xi1>, vector<32x128xf32>
    %581 = arith.addf %574, %580 : vector<32x128xf32>
    %582 = vector.extract_strided_slice %447 {offsets = [19, 0], sizes = [1, 128], strides = [1, 1]} : vector<32x128xf32> to vector<1x128xf32>
    %583 = vector.broadcast %582 : vector<1x128xf32> to vector<32x128xf32>
    %584 = arith.cmpf ogt, %583, %447 : vector<32x128xf32>
    %cst_127 = arith.constant 1.000000e+00 : f32
    %cst_128 = arith.constant 0.000000e+00 : f32
    %585 = vector.broadcast %cst_127 : f32 to vector<32x128xf32>
    %586 = vector.broadcast %cst_128 : f32 to vector<32x128xf32>
    %587 = arith.select %584, %585, %586 : vector<32x128xi1>, vector<32x128xf32>
    %588 = arith.addf %581, %587 : vector<32x128xf32>
    %589 = vector.extract_strided_slice %447 {offsets = [20, 0], sizes = [1, 128], strides = [1, 1]} : vector<32x128xf32> to vector<1x128xf32>
    %590 = vector.broadcast %589 : vector<1x128xf32> to vector<32x128xf32>
    %591 = arith.cmpf ogt, %590, %447 : vector<32x128xf32>
    %cst_129 = arith.constant 1.000000e+00 : f32
    %cst_130 = arith.constant 0.000000e+00 : f32
    %592 = vector.broadcast %cst_129 : f32 to vector<32x128xf32>
    %593 = vector.broadcast %cst_130 : f32 to vector<32x128xf32>
    %594 = arith.select %591, %592, %593 : vector<32x128xi1>, vector<32x128xf32>
    %595 = arith.addf %588, %594 : vector<32x128xf32>
    %596 = vector.extract_strided_slice %447 {offsets = [21, 0], sizes = [1, 128], strides = [1, 1]} : vector<32x128xf32> to vector<1x128xf32>
    %597 = vector.broadcast %596 : vector<1x128xf32> to vector<32x128xf32>
    %598 = arith.cmpf ogt, %597, %447 : vector<32x128xf32>
    %cst_131 = arith.constant 1.000000e+00 : f32
    %cst_132 = arith.constant 0.000000e+00 : f32
    %599 = vector.broadcast %cst_131 : f32 to vector<32x128xf32>
    %600 = vector.broadcast %cst_132 : f32 to vector<32x128xf32>
    %601 = arith.select %598, %599, %600 : vector<32x128xi1>, vector<32x128xf32>
    %602 = arith.addf %595, %601 : vector<32x128xf32>
    %603 = vector.extract_strided_slice %447 {offsets = [22, 0], sizes = [1, 128], strides = [1, 1]} : vector<32x128xf32> to vector<1x128xf32>
    %604 = vector.broadcast %603 : vector<1x128xf32> to vector<32x128xf32>
    %605 = arith.cmpf ogt, %604, %447 : vector<32x128xf32>
    %cst_133 = arith.constant 1.000000e+00 : f32
    %cst_134 = arith.constant 0.000000e+00 : f32
    %606 = vector.broadcast %cst_133 : f32 to vector<32x128xf32>
    %607 = vector.broadcast %cst_134 : f32 to vector<32x128xf32>
    %608 = arith.select %605, %606, %607 : vector<32x128xi1>, vector<32x128xf32>
    %609 = arith.addf %602, %608 : vector<32x128xf32>
    %610 = vector.extract_strided_slice %447 {offsets = [23, 0], sizes = [1, 128], strides = [1, 1]} : vector<32x128xf32> to vector<1x128xf32>
    %611 = vector.broadcast %610 : vector<1x128xf32> to vector<32x128xf32>
    %612 = arith.cmpf ogt, %611, %447 : vector<32x128xf32>
    %cst_135 = arith.constant 1.000000e+00 : f32
    %cst_136 = arith.constant 0.000000e+00 : f32
    %613 = vector.broadcast %cst_135 : f32 to vector<32x128xf32>
    %614 = vector.broadcast %cst_136 : f32 to vector<32x128xf32>
    %615 = arith.select %612, %613, %614 : vector<32x128xi1>, vector<32x128xf32>
    %616 = arith.addf %609, %615 : vector<32x128xf32>
    %617 = vector.extract_strided_slice %447 {offsets = [24, 0], sizes = [1, 128], strides = [1, 1]} : vector<32x128xf32> to vector<1x128xf32>
    %618 = vector.broadcast %617 : vector<1x128xf32> to vector<32x128xf32>
    %619 = arith.cmpf ogt, %618, %447 : vector<32x128xf32>
    %cst_137 = arith.constant 1.000000e+00 : f32
    %cst_138 = arith.constant 0.000000e+00 : f32
    %620 = vector.broadcast %cst_137 : f32 to vector<32x128xf32>
    %621 = vector.broadcast %cst_138 : f32 to vector<32x128xf32>
    %622 = arith.select %619, %620, %621 : vector<32x128xi1>, vector<32x128xf32>
    %623 = arith.addf %616, %622 : vector<32x128xf32>
    %624 = vector.extract_strided_slice %447 {offsets = [25, 0], sizes = [1, 128], strides = [1, 1]} : vector<32x128xf32> to vector<1x128xf32>
    %625 = vector.broadcast %624 : vector<1x128xf32> to vector<32x128xf32>
    %626 = arith.cmpf ogt, %625, %447 : vector<32x128xf32>
    %cst_139 = arith.constant 1.000000e+00 : f32
    %cst_140 = arith.constant 0.000000e+00 : f32
    %627 = vector.broadcast %cst_139 : f32 to vector<32x128xf32>
    %628 = vector.broadcast %cst_140 : f32 to vector<32x128xf32>
    %629 = arith.select %626, %627, %628 : vector<32x128xi1>, vector<32x128xf32>
    %630 = arith.addf %623, %629 : vector<32x128xf32>
    %631 = vector.extract_strided_slice %447 {offsets = [26, 0], sizes = [1, 128], strides = [1, 1]} : vector<32x128xf32> to vector<1x128xf32>
    %632 = vector.broadcast %631 : vector<1x128xf32> to vector<32x128xf32>
    %633 = arith.cmpf ogt, %632, %447 : vector<32x128xf32>
    %cst_141 = arith.constant 1.000000e+00 : f32
    %cst_142 = arith.constant 0.000000e+00 : f32
    %634 = vector.broadcast %cst_141 : f32 to vector<32x128xf32>
    %635 = vector.broadcast %cst_142 : f32 to vector<32x128xf32>
    %636 = arith.select %633, %634, %635 : vector<32x128xi1>, vector<32x128xf32>
    %637 = arith.addf %630, %636 : vector<32x128xf32>
    %638 = vector.extract_strided_slice %447 {offsets = [27, 0], sizes = [1, 128], strides = [1, 1]} : vector<32x128xf32> to vector<1x128xf32>
    %639 = vector.broadcast %638 : vector<1x128xf32> to vector<32x128xf32>
    %640 = arith.cmpf ogt, %639, %447 : vector<32x128xf32>
    %cst_143 = arith.constant 1.000000e+00 : f32
    %cst_144 = arith.constant 0.000000e+00 : f32
    %641 = vector.broadcast %cst_143 : f32 to vector<32x128xf32>
    %642 = vector.broadcast %cst_144 : f32 to vector<32x128xf32>
    %643 = arith.select %640, %641, %642 : vector<32x128xi1>, vector<32x128xf32>
    %644 = arith.addf %637, %643 : vector<32x128xf32>
    %645 = vector.extract_strided_slice %447 {offsets = [28, 0], sizes = [1, 128], strides = [1, 1]} : vector<32x128xf32> to vector<1x128xf32>
    %646 = vector.broadcast %645 : vector<1x128xf32> to vector<32x128xf32>
    %647 = arith.cmpf ogt, %646, %447 : vector<32x128xf32>
    %cst_145 = arith.constant 1.000000e+00 : f32
    %cst_146 = arith.constant 0.000000e+00 : f32
    %648 = vector.broadcast %cst_145 : f32 to vector<32x128xf32>
    %649 = vector.broadcast %cst_146 : f32 to vector<32x128xf32>
    %650 = arith.select %647, %648, %649 : vector<32x128xi1>, vector<32x128xf32>
    %651 = arith.addf %644, %650 : vector<32x128xf32>
    %652 = vector.extract_strided_slice %447 {offsets = [29, 0], sizes = [1, 128], strides = [1, 1]} : vector<32x128xf32> to vector<1x128xf32>
    %653 = vector.broadcast %652 : vector<1x128xf32> to vector<32x128xf32>
    %654 = arith.cmpf ogt, %653, %447 : vector<32x128xf32>
    %cst_147 = arith.constant 1.000000e+00 : f32
    %cst_148 = arith.constant 0.000000e+00 : f32
    %655 = vector.broadcast %cst_147 : f32 to vector<32x128xf32>
    %656 = vector.broadcast %cst_148 : f32 to vector<32x128xf32>
    %657 = arith.select %654, %655, %656 : vector<32x128xi1>, vector<32x128xf32>
    %658 = arith.addf %651, %657 : vector<32x128xf32>
    %659 = vector.extract_strided_slice %447 {offsets = [30, 0], sizes = [1, 128], strides = [1, 1]} : vector<32x128xf32> to vector<1x128xf32>
    %660 = vector.broadcast %659 : vector<1x128xf32> to vector<32x128xf32>
    %661 = arith.cmpf ogt, %660, %447 : vector<32x128xf32>
    %cst_149 = arith.constant 1.000000e+00 : f32
    %cst_150 = arith.constant 0.000000e+00 : f32
    %662 = vector.broadcast %cst_149 : f32 to vector<32x128xf32>
    %663 = vector.broadcast %cst_150 : f32 to vector<32x128xf32>
    %664 = arith.select %661, %662, %663 : vector<32x128xi1>, vector<32x128xf32>
    %665 = arith.addf %658, %664 : vector<32x128xf32>
    %666 = vector.extract_strided_slice %447 {offsets = [31, 0], sizes = [1, 128], strides = [1, 1]} : vector<32x128xf32> to vector<1x128xf32>
    %667 = vector.broadcast %666 : vector<1x128xf32> to vector<32x128xf32>
    %668 = arith.cmpf ogt, %667, %447 : vector<32x128xf32>
    %cst_151 = arith.constant 1.000000e+00 : f32
    %cst_152 = arith.constant 0.000000e+00 : f32
    %669 = vector.broadcast %cst_151 : f32 to vector<32x128xf32>
    %670 = vector.broadcast %cst_152 : f32 to vector<32x128xf32>
    %671 = arith.select %668, %669, %670 : vector<32x128xi1>, vector<32x128xf32>
    %672 = arith.addf %665, %671 : vector<32x128xf32>
    %cst_153 = arith.constant 1.900000e+01 : f32
    %673 = vector.broadcast %cst_153 : f32 to vector<32x128xf32>
    %674 = arith.cmpf olt, %672, %673 : vector<32x128xf32>
    %cst_154 = arith.constant 0.000000e+00 : f32
    %675 = vector.broadcast %cst_154 : f32 to vector<32x128xf32>
    %676 = arith.select %674, %447, %675 : vector<32x128xi1>, vector<32x128xf32>
    %cst_155 = arith.constant dense<0.000000e+00> : vector<8x128xf32>
    %677 = tpu.matmul %3, %676, %cst_155 {dimension_numbers = #tpu.dot_dimension_numbers<[1], [0], [0], [1], [0, 0, 1, 1], [], []>} : vector<8x32xf32>, vector<32x128xf32>, vector<8x128xf32> -> vector<8x128xf32>
    %678 = arith.addf %677, %9 : vector<8x128xf32>
    %c1 = arith.constant 1 : index
    %c0_156 = arith.constant 0 : index
    %c0_157 = arith.constant 0 : index
    %679 = vector.load %arg11[%c1, %c0_156, %c0_157] : memref<3x8x128xf32, #tpu.memory_space<vmem>>, vector<1x8x128xf32>
    %680 = vector.shape_cast %679 : vector<1x8x128xf32> to vector<8x128xf32>
    %681 = vector.shape_cast %678 : vector<8x128xf32> to vector<1x8x128xf32>
    tpu.vector_store %arg11[%c1, %c0_156, %c0_157], %681 {strides = array<i32>} : memref<3x8x128xf32, #tpu.memory_space<vmem>>, vector<1x8x128xf32>,
    %682 = vector.extract_strided_slice %1 {offsets = [0, 0, 0], sizes = [1, 8, 128], strides = [1, 1, 1]} : vector<8x8x128xf32> to vector<1x8x128xf32>
    %683 = vector.shape_cast %682 : vector<1x8x128xf32> to vector<8x128xf32>
    %684 = vector.extract_strided_slice %678 {offsets = [0, 0], sizes = [1, 128], strides = [1, 1]} : vector<8x128xf32> to vector<1x128xf32>
    %685 = vector.broadcast %684 : vector<1x128xf32> to vector<8x128xf32>
    %686 = arith.mulf %683, %685 : vector<8x128xf32>
    %687 = vector.extract_strided_slice %1 {offsets = [1, 0, 0], sizes = [1, 8, 128], strides = [1, 1, 1]} : vector<8x8x128xf32> to vector<1x8x128xf32>
    %688 = vector.shape_cast %687 : vector<1x8x128xf32> to vector<8x128xf32>
    %689 = vector.extract_strided_slice %678 {offsets = [1, 0], sizes = [1, 128], strides = [1, 1]} : vector<8x128xf32> to vector<1x128xf32>
    %690 = vector.broadcast %689 : vector<1x128xf32> to vector<8x128xf32>
    %691 = arith.mulf %688, %690 : vector<8x128xf32>
    %692 = arith.addf %686, %691 : vector<8x128xf32>
    %693 = vector.extract_strided_slice %1 {offsets = [2, 0, 0], sizes = [1, 8, 128], strides = [1, 1, 1]} : vector<8x8x128xf32> to vector<1x8x128xf32>
    %694 = vector.shape_cast %693 : vector<1x8x128xf32> to vector<8x128xf32>
    %695 = vector.extract_strided_slice %678 {offsets = [2, 0], sizes = [1, 128], strides = [1, 1]} : vector<8x128xf32> to vector<1x128xf32>
    %696 = vector.broadcast %695 : vector<1x128xf32> to vector<8x128xf32>
    %697 = arith.mulf %694, %696 : vector<8x128xf32>
    %698 = arith.addf %692, %697 : vector<8x128xf32>
    %699 = vector.extract_strided_slice %1 {offsets = [3, 0, 0], sizes = [1, 8, 128], strides = [1, 1, 1]} : vector<8x8x128xf32> to vector<1x8x128xf32>
    %700 = vector.shape_cast %699 : vector<1x8x128xf32> to vector<8x128xf32>
    %701 = vector.extract_strided_slice %678 {offsets = [3, 0], sizes = [1, 128], strides = [1, 1]} : vector<8x128xf32> to vector<1x128xf32>
    %702 = vector.broadcast %701 : vector<1x128xf32> to vector<8x128xf32>
    %703 = arith.mulf %700, %702 : vector<8x128xf32>
    %704 = arith.addf %698, %703 : vector<8x128xf32>
    %705 = vector.extract_strided_slice %1 {offsets = [4, 0, 0], sizes = [1, 8, 128], strides = [1, 1, 1]} : vector<8x8x128xf32> to vector<1x8x128xf32>
    %706 = vector.shape_cast %705 : vector<1x8x128xf32> to vector<8x128xf32>
    %707 = vector.extract_strided_slice %678 {offsets = [4, 0], sizes = [1, 128], strides = [1, 1]} : vector<8x128xf32> to vector<1x128xf32>
    %708 = vector.broadcast %707 : vector<1x128xf32> to vector<8x128xf32>
    %709 = arith.mulf %706, %708 : vector<8x128xf32>
    %710 = arith.addf %704, %709 : vector<8x128xf32>
    %711 = vector.extract_strided_slice %1 {offsets = [5, 0, 0], sizes = [1, 8, 128], strides = [1, 1, 1]} : vector<8x8x128xf32> to vector<1x8x128xf32>
    %712 = vector.shape_cast %711 : vector<1x8x128xf32> to vector<8x128xf32>
    %713 = vector.extract_strided_slice %678 {offsets = [5, 0], sizes = [1, 128], strides = [1, 1]} : vector<8x128xf32> to vector<1x128xf32>
    %714 = vector.broadcast %713 : vector<1x128xf32> to vector<8x128xf32>
    %715 = arith.mulf %712, %714 : vector<8x128xf32>
    %716 = arith.addf %710, %715 : vector<8x128xf32>
    %717 = vector.extract_strided_slice %1 {offsets = [6, 0, 0], sizes = [1, 8, 128], strides = [1, 1, 1]} : vector<8x8x128xf32> to vector<1x8x128xf32>
    %718 = vector.shape_cast %717 : vector<1x8x128xf32> to vector<8x128xf32>
    %719 = vector.extract_strided_slice %678 {offsets = [6, 0], sizes = [1, 128], strides = [1, 1]} : vector<8x128xf32> to vector<1x128xf32>
    %720 = vector.broadcast %719 : vector<1x128xf32> to vector<8x128xf32>
    %721 = arith.mulf %718, %720 : vector<8x128xf32>
    %722 = arith.addf %716, %721 : vector<8x128xf32>
    %723 = vector.extract_strided_slice %1 {offsets = [7, 0, 0], sizes = [1, 8, 128], strides = [1, 1, 1]} : vector<8x8x128xf32> to vector<1x8x128xf32>
    %724 = vector.shape_cast %723 : vector<1x8x128xf32> to vector<8x128xf32>
    %725 = vector.extract_strided_slice %678 {offsets = [7, 0], sizes = [1, 128], strides = [1, 1]} : vector<8x128xf32> to vector<1x128xf32>
    %726 = vector.broadcast %725 : vector<1x128xf32> to vector<8x128xf32>
    %727 = arith.mulf %724, %726 : vector<8x128xf32>
    %728 = arith.addf %722, %727 : vector<8x128xf32>
    %729 = arith.addf %678, %0 : vector<8x128xf32>
    %730 = arith.subf %729, %728 : vector<8x128xf32>
    %731 = vector.extract_strided_slice %1 {offsets = [0, 0, 0], sizes = [1, 8, 128], strides = [1, 1, 1]} : vector<8x8x128xf32> to vector<1x8x128xf32>
    %732 = vector.shape_cast %731 : vector<1x8x128xf32> to vector<8x128xf32>
    %733 = vector.extract_strided_slice %730 {offsets = [0, 0], sizes = [1, 128], strides = [1, 1]} : vector<8x128xf32> to vector<1x128xf32>
    %734 = vector.broadcast %733 : vector<1x128xf32> to vector<8x128xf32>
    %735 = arith.mulf %732, %734 : vector<8x128xf32>
    %736 = vector.extract_strided_slice %1 {offsets = [1, 0, 0], sizes = [1, 8, 128], strides = [1, 1, 1]} : vector<8x8x128xf32> to vector<1x8x128xf32>
    %737 = vector.shape_cast %736 : vector<1x8x128xf32> to vector<8x128xf32>
    %738 = vector.extract_strided_slice %730 {offsets = [1, 0], sizes = [1, 128], strides = [1, 1]} : vector<8x128xf32> to vector<1x128xf32>
    %739 = vector.broadcast %738 : vector<1x128xf32> to vector<8x128xf32>
    %740 = arith.mulf %737, %739 : vector<8x128xf32>
    %741 = arith.addf %735, %740 : vector<8x128xf32>
    %742 = vector.extract_strided_slice %1 {offsets = [2, 0, 0], sizes = [1, 8, 128], strides = [1, 1, 1]} : vector<8x8x128xf32> to vector<1x8x128xf32>
    %743 = vector.shape_cast %742 : vector<1x8x128xf32> to vector<8x128xf32>
    %744 = vector.extract_strided_slice %730 {offsets = [2, 0], sizes = [1, 128], strides = [1, 1]} : vector<8x128xf32> to vector<1x128xf32>
    %745 = vector.broadcast %744 : vector<1x128xf32> to vector<8x128xf32>
    %746 = arith.mulf %743, %745 : vector<8x128xf32>
    %747 = arith.addf %741, %746 : vector<8x128xf32>
    %748 = vector.extract_strided_slice %1 {offsets = [3, 0, 0], sizes = [1, 8, 128], strides = [1, 1, 1]} : vector<8x8x128xf32> to vector<1x8x128xf32>
    %749 = vector.shape_cast %748 : vector<1x8x128xf32> to vector<8x128xf32>
    %750 = vector.extract_strided_slice %730 {offsets = [3, 0], sizes = [1, 128], strides = [1, 1]} : vector<8x128xf32> to vector<1x128xf32>
    %751 = vector.broadcast %750 : vector<1x128xf32> to vector<8x128xf32>
    %752 = arith.mulf %749, %751 : vector<8x128xf32>
    %753 = arith.addf %747, %752 : vector<8x128xf32>
    %754 = vector.extract_strided_slice %1 {offsets = [4, 0, 0], sizes = [1, 8, 128], strides = [1, 1, 1]} : vector<8x8x128xf32> to vector<1x8x128xf32>
    %755 = vector.shape_cast %754 : vector<1x8x128xf32> to vector<8x128xf32>
    %756 = vector.extract_strided_slice %730 {offsets = [4, 0], sizes = [1, 128], strides = [1, 1]} : vector<8x128xf32> to vector<1x128xf32>
    %757 = vector.broadcast %756 : vector<1x128xf32> to vector<8x128xf32>
    %758 = arith.mulf %755, %757 : vector<8x128xf32>
    %759 = arith.addf %753, %758 : vector<8x128xf32>
    %760 = vector.extract_strided_slice %1 {offsets = [5, 0, 0], sizes = [1, 8, 128], strides = [1, 1, 1]} : vector<8x8x128xf32> to vector<1x8x128xf32>
    %761 = vector.shape_cast %760 : vector<1x8x128xf32> to vector<8x128xf32>
    %762 = vector.extract_strided_slice %730 {offsets = [5, 0], sizes = [1, 128], strides = [1, 1]} : vector<8x128xf32> to vector<1x128xf32>
    %763 = vector.broadcast %762 : vector<1x128xf32> to vector<8x128xf32>
    %764 = arith.mulf %761, %763 : vector<8x128xf32>
    %765 = arith.addf %759, %764 : vector<8x128xf32>
    %766 = vector.extract_strided_slice %1 {offsets = [6, 0, 0], sizes = [1, 8, 128], strides = [1, 1, 1]} : vector<8x8x128xf32> to vector<1x8x128xf32>
    %767 = vector.shape_cast %766 : vector<1x8x128xf32> to vector<8x128xf32>
    %768 = vector.extract_strided_slice %730 {offsets = [6, 0], sizes = [1, 128], strides = [1, 1]} : vector<8x128xf32> to vector<1x128xf32>
    %769 = vector.broadcast %768 : vector<1x128xf32> to vector<8x128xf32>
    %770 = arith.mulf %767, %769 : vector<8x128xf32>
    %771 = arith.addf %765, %770 : vector<8x128xf32>
    %772 = vector.extract_strided_slice %1 {offsets = [7, 0, 0], sizes = [1, 8, 128], strides = [1, 1, 1]} : vector<8x8x128xf32> to vector<1x8x128xf32>
    %773 = vector.shape_cast %772 : vector<1x8x128xf32> to vector<8x128xf32>
    %774 = vector.extract_strided_slice %730 {offsets = [7, 0], sizes = [1, 128], strides = [1, 1]} : vector<8x128xf32> to vector<1x128xf32>
    %775 = vector.broadcast %774 : vector<1x128xf32> to vector<8x128xf32>
    %776 = arith.mulf %773, %775 : vector<8x128xf32>
    %777 = arith.addf %771, %776 : vector<8x128xf32>
    %778 = arith.addf %730, %0 : vector<8x128xf32>
    %779 = arith.subf %778, %777 : vector<8x128xf32>
    %780 = tpu.concatenate %779, %676 in 0 : vector<8x128xf32>, vector<32x128xf32> -> vector<40x128xf32>
    %cst_158 = arith.constant dense<0.000000e+00> : vector<32x128xf32>
    %781 = tpu.matmul %2, %780, %cst_158 {dimension_numbers = #tpu.dot_dimension_numbers<[1], [0], [0], [1], [0, 0, 1, 1], [], []>} : vector<32x40xf32>, vector<40x128xf32>, vector<32x128xf32> -> vector<32x128xf32>
    %782 = arith.addf %781, %6 : vector<32x128xf32>
    %cst_159 = arith.constant 0.000000e+00 : f32
    %783 = vector.broadcast %cst_159 : f32 to vector<32x128xf32>
    %784 = vector.extract_strided_slice %782 {offsets = [0, 0], sizes = [1, 128], strides = [1, 1]} : vector<32x128xf32> to vector<1x128xf32>
    %785 = vector.broadcast %784 : vector<1x128xf32> to vector<32x128xf32>
    %786 = arith.cmpf ogt, %785, %782 : vector<32x128xf32>
    %cst_160 = arith.constant 1.000000e+00 : f32
    %cst_161 = arith.constant 0.000000e+00 : f32
    %787 = vector.broadcast %cst_160 : f32 to vector<32x128xf32>
    %788 = vector.broadcast %cst_161 : f32 to vector<32x128xf32>
    %789 = arith.select %786, %787, %788 : vector<32x128xi1>, vector<32x128xf32>
    %790 = arith.addf %783, %789 : vector<32x128xf32>
    %791 = vector.extract_strided_slice %782 {offsets = [1, 0], sizes = [1, 128], strides = [1, 1]} : vector<32x128xf32> to vector<1x128xf32>
    %792 = vector.broadcast %791 : vector<1x128xf32> to vector<32x128xf32>
    %793 = arith.cmpf ogt, %792, %782 : vector<32x128xf32>
    %cst_162 = arith.constant 1.000000e+00 : f32
    %cst_163 = arith.constant 0.000000e+00 : f32
    %794 = vector.broadcast %cst_162 : f32 to vector<32x128xf32>
    %795 = vector.broadcast %cst_163 : f32 to vector<32x128xf32>
    %796 = arith.select %793, %794, %795 : vector<32x128xi1>, vector<32x128xf32>
    %797 = arith.addf %790, %796 : vector<32x128xf32>
    %798 = vector.extract_strided_slice %782 {offsets = [2, 0], sizes = [1, 128], strides = [1, 1]} : vector<32x128xf32> to vector<1x128xf32>
    %799 = vector.broadcast %798 : vector<1x128xf32> to vector<32x128xf32>
    %800 = arith.cmpf ogt, %799, %782 : vector<32x128xf32>
    %cst_164 = arith.constant 1.000000e+00 : f32
    %cst_165 = arith.constant 0.000000e+00 : f32
    %801 = vector.broadcast %cst_164 : f32 to vector<32x128xf32>
    %802 = vector.broadcast %cst_165 : f32 to vector<32x128xf32>
    %803 = arith.select %800, %801, %802 : vector<32x128xi1>, vector<32x128xf32>
    %804 = arith.addf %797, %803 : vector<32x128xf32>
    %805 = vector.extract_strided_slice %782 {offsets = [3, 0], sizes = [1, 128], strides = [1, 1]} : vector<32x128xf32> to vector<1x128xf32>
    %806 = vector.broadcast %805 : vector<1x128xf32> to vector<32x128xf32>
    %807 = arith.cmpf ogt, %806, %782 : vector<32x128xf32>
    %cst_166 = arith.constant 1.000000e+00 : f32
    %cst_167 = arith.constant 0.000000e+00 : f32
    %808 = vector.broadcast %cst_166 : f32 to vector<32x128xf32>
    %809 = vector.broadcast %cst_167 : f32 to vector<32x128xf32>
    %810 = arith.select %807, %808, %809 : vector<32x128xi1>, vector<32x128xf32>
    %811 = arith.addf %804, %810 : vector<32x128xf32>
    %812 = vector.extract_strided_slice %782 {offsets = [4, 0], sizes = [1, 128], strides = [1, 1]} : vector<32x128xf32> to vector<1x128xf32>
    %813 = vector.broadcast %812 : vector<1x128xf32> to vector<32x128xf32>
    %814 = arith.cmpf ogt, %813, %782 : vector<32x128xf32>
    %cst_168 = arith.constant 1.000000e+00 : f32
    %cst_169 = arith.constant 0.000000e+00 : f32
    %815 = vector.broadcast %cst_168 : f32 to vector<32x128xf32>
    %816 = vector.broadcast %cst_169 : f32 to vector<32x128xf32>
    %817 = arith.select %814, %815, %816 : vector<32x128xi1>, vector<32x128xf32>
    %818 = arith.addf %811, %817 : vector<32x128xf32>
    %819 = vector.extract_strided_slice %782 {offsets = [5, 0], sizes = [1, 128], strides = [1, 1]} : vector<32x128xf32> to vector<1x128xf32>
    %820 = vector.broadcast %819 : vector<1x128xf32> to vector<32x128xf32>
    %821 = arith.cmpf ogt, %820, %782 : vector<32x128xf32>
    %cst_170 = arith.constant 1.000000e+00 : f32
    %cst_171 = arith.constant 0.000000e+00 : f32
    %822 = vector.broadcast %cst_170 : f32 to vector<32x128xf32>
    %823 = vector.broadcast %cst_171 : f32 to vector<32x128xf32>
    %824 = arith.select %821, %822, %823 : vector<32x128xi1>, vector<32x128xf32>
    %825 = arith.addf %818, %824 : vector<32x128xf32>
    %826 = vector.extract_strided_slice %782 {offsets = [6, 0], sizes = [1, 128], strides = [1, 1]} : vector<32x128xf32> to vector<1x128xf32>
    %827 = vector.broadcast %826 : vector<1x128xf32> to vector<32x128xf32>
    %828 = arith.cmpf ogt, %827, %782 : vector<32x128xf32>
    %cst_172 = arith.constant 1.000000e+00 : f32
    %cst_173 = arith.constant 0.000000e+00 : f32
    %829 = vector.broadcast %cst_172 : f32 to vector<32x128xf32>
    %830 = vector.broadcast %cst_173 : f32 to vector<32x128xf32>
    %831 = arith.select %828, %829, %830 : vector<32x128xi1>, vector<32x128xf32>
    %832 = arith.addf %825, %831 : vector<32x128xf32>
    %833 = vector.extract_strided_slice %782 {offsets = [7, 0], sizes = [1, 128], strides = [1, 1]} : vector<32x128xf32> to vector<1x128xf32>
    %834 = vector.broadcast %833 : vector<1x128xf32> to vector<32x128xf32>
    %835 = arith.cmpf ogt, %834, %782 : vector<32x128xf32>
    %cst_174 = arith.constant 1.000000e+00 : f32
    %cst_175 = arith.constant 0.000000e+00 : f32
    %836 = vector.broadcast %cst_174 : f32 to vector<32x128xf32>
    %837 = vector.broadcast %cst_175 : f32 to vector<32x128xf32>
    %838 = arith.select %835, %836, %837 : vector<32x128xi1>, vector<32x128xf32>
    %839 = arith.addf %832, %838 : vector<32x128xf32>
    %840 = vector.extract_strided_slice %782 {offsets = [8, 0], sizes = [1, 128], strides = [1, 1]} : vector<32x128xf32> to vector<1x128xf32>
    %841 = vector.broadcast %840 : vector<1x128xf32> to vector<32x128xf32>
    %842 = arith.cmpf ogt, %841, %782 : vector<32x128xf32>
    %cst_176 = arith.constant 1.000000e+00 : f32
    %cst_177 = arith.constant 0.000000e+00 : f32
    %843 = vector.broadcast %cst_176 : f32 to vector<32x128xf32>
    %844 = vector.broadcast %cst_177 : f32 to vector<32x128xf32>
    %845 = arith.select %842, %843, %844 : vector<32x128xi1>, vector<32x128xf32>
    %846 = arith.addf %839, %845 : vector<32x128xf32>
    %847 = vector.extract_strided_slice %782 {offsets = [9, 0], sizes = [1, 128], strides = [1, 1]} : vector<32x128xf32> to vector<1x128xf32>
    %848 = vector.broadcast %847 : vector<1x128xf32> to vector<32x128xf32>
    %849 = arith.cmpf ogt, %848, %782 : vector<32x128xf32>
    %cst_178 = arith.constant 1.000000e+00 : f32
    %cst_179 = arith.constant 0.000000e+00 : f32
    %850 = vector.broadcast %cst_178 : f32 to vector<32x128xf32>
    %851 = vector.broadcast %cst_179 : f32 to vector<32x128xf32>
    %852 = arith.select %849, %850, %851 : vector<32x128xi1>, vector<32x128xf32>
    %853 = arith.addf %846, %852 : vector<32x128xf32>
    %854 = vector.extract_strided_slice %782 {offsets = [10, 0], sizes = [1, 128], strides = [1, 1]} : vector<32x128xf32> to vector<1x128xf32>
    %855 = vector.broadcast %854 : vector<1x128xf32> to vector<32x128xf32>
    %856 = arith.cmpf ogt, %855, %782 : vector<32x128xf32>
    %cst_180 = arith.constant 1.000000e+00 : f32
    %cst_181 = arith.constant 0.000000e+00 : f32
    %857 = vector.broadcast %cst_180 : f32 to vector<32x128xf32>
    %858 = vector.broadcast %cst_181 : f32 to vector<32x128xf32>
    %859 = arith.select %856, %857, %858 : vector<32x128xi1>, vector<32x128xf32>
    %860 = arith.addf %853, %859 : vector<32x128xf32>
    %861 = vector.extract_strided_slice %782 {offsets = [11, 0], sizes = [1, 128], strides = [1, 1]} : vector<32x128xf32> to vector<1x128xf32>
    %862 = vector.broadcast %861 : vector<1x128xf32> to vector<32x128xf32>
    %863 = arith.cmpf ogt, %862, %782 : vector<32x128xf32>
    %cst_182 = arith.constant 1.000000e+00 : f32
    %cst_183 = arith.constant 0.000000e+00 : f32
    %864 = vector.broadcast %cst_182 : f32 to vector<32x128xf32>
    %865 = vector.broadcast %cst_183 : f32 to vector<32x128xf32>
    %866 = arith.select %863, %864, %865 : vector<32x128xi1>, vector<32x128xf32>
    %867 = arith.addf %860, %866 : vector<32x128xf32>
    %868 = vector.extract_strided_slice %782 {offsets = [12, 0], sizes = [1, 128], strides = [1, 1]} : vector<32x128xf32> to vector<1x128xf32>
    %869 = vector.broadcast %868 : vector<1x128xf32> to vector<32x128xf32>
    %870 = arith.cmpf ogt, %869, %782 : vector<32x128xf32>
    %cst_184 = arith.constant 1.000000e+00 : f32
    %cst_185 = arith.constant 0.000000e+00 : f32
    %871 = vector.broadcast %cst_184 : f32 to vector<32x128xf32>
    %872 = vector.broadcast %cst_185 : f32 to vector<32x128xf32>
    %873 = arith.select %870, %871, %872 : vector<32x128xi1>, vector<32x128xf32>
    %874 = arith.addf %867, %873 : vector<32x128xf32>
    %875 = vector.extract_strided_slice %782 {offsets = [13, 0], sizes = [1, 128], strides = [1, 1]} : vector<32x128xf32> to vector<1x128xf32>
    %876 = vector.broadcast %875 : vector<1x128xf32> to vector<32x128xf32>
    %877 = arith.cmpf ogt, %876, %782 : vector<32x128xf32>
    %cst_186 = arith.constant 1.000000e+00 : f32
    %cst_187 = arith.constant 0.000000e+00 : f32
    %878 = vector.broadcast %cst_186 : f32 to vector<32x128xf32>
    %879 = vector.broadcast %cst_187 : f32 to vector<32x128xf32>
    %880 = arith.select %877, %878, %879 : vector<32x128xi1>, vector<32x128xf32>
    %881 = arith.addf %874, %880 : vector<32x128xf32>
    %882 = vector.extract_strided_slice %782 {offsets = [14, 0], sizes = [1, 128], strides = [1, 1]} : vector<32x128xf32> to vector<1x128xf32>
    %883 = vector.broadcast %882 : vector<1x128xf32> to vector<32x128xf32>
    %884 = arith.cmpf ogt, %883, %782 : vector<32x128xf32>
    %cst_188 = arith.constant 1.000000e+00 : f32
    %cst_189 = arith.constant 0.000000e+00 : f32
    %885 = vector.broadcast %cst_188 : f32 to vector<32x128xf32>
    %886 = vector.broadcast %cst_189 : f32 to vector<32x128xf32>
    %887 = arith.select %884, %885, %886 : vector<32x128xi1>, vector<32x128xf32>
    %888 = arith.addf %881, %887 : vector<32x128xf32>
    %889 = vector.extract_strided_slice %782 {offsets = [15, 0], sizes = [1, 128], strides = [1, 1]} : vector<32x128xf32> to vector<1x128xf32>
    %890 = vector.broadcast %889 : vector<1x128xf32> to vector<32x128xf32>
    %891 = arith.cmpf ogt, %890, %782 : vector<32x128xf32>
    %cst_190 = arith.constant 1.000000e+00 : f32
    %cst_191 = arith.constant 0.000000e+00 : f32
    %892 = vector.broadcast %cst_190 : f32 to vector<32x128xf32>
    %893 = vector.broadcast %cst_191 : f32 to vector<32x128xf32>
    %894 = arith.select %891, %892, %893 : vector<32x128xi1>, vector<32x128xf32>
    %895 = arith.addf %888, %894 : vector<32x128xf32>
    %896 = vector.extract_strided_slice %782 {offsets = [16, 0], sizes = [1, 128], strides = [1, 1]} : vector<32x128xf32> to vector<1x128xf32>
    %897 = vector.broadcast %896 : vector<1x128xf32> to vector<32x128xf32>
    %898 = arith.cmpf ogt, %897, %782 : vector<32x128xf32>
    %cst_192 = arith.constant 1.000000e+00 : f32
    %cst_193 = arith.constant 0.000000e+00 : f32
    %899 = vector.broadcast %cst_192 : f32 to vector<32x128xf32>
    %900 = vector.broadcast %cst_193 : f32 to vector<32x128xf32>
    %901 = arith.select %898, %899, %900 : vector<32x128xi1>, vector<32x128xf32>
    %902 = arith.addf %895, %901 : vector<32x128xf32>
    %903 = vector.extract_strided_slice %782 {offsets = [17, 0], sizes = [1, 128], strides = [1, 1]} : vector<32x128xf32> to vector<1x128xf32>
    %904 = vector.broadcast %903 : vector<1x128xf32> to vector<32x128xf32>
    %905 = arith.cmpf ogt, %904, %782 : vector<32x128xf32>
    %cst_194 = arith.constant 1.000000e+00 : f32
    %cst_195 = arith.constant 0.000000e+00 : f32
    %906 = vector.broadcast %cst_194 : f32 to vector<32x128xf32>
    %907 = vector.broadcast %cst_195 : f32 to vector<32x128xf32>
    %908 = arith.select %905, %906, %907 : vector<32x128xi1>, vector<32x128xf32>
    %909 = arith.addf %902, %908 : vector<32x128xf32>
    %910 = vector.extract_strided_slice %782 {offsets = [18, 0], sizes = [1, 128], strides = [1, 1]} : vector<32x128xf32> to vector<1x128xf32>
    %911 = vector.broadcast %910 : vector<1x128xf32> to vector<32x128xf32>
    %912 = arith.cmpf ogt, %911, %782 : vector<32x128xf32>
    %cst_196 = arith.constant 1.000000e+00 : f32
    %cst_197 = arith.constant 0.000000e+00 : f32
    %913 = vector.broadcast %cst_196 : f32 to vector<32x128xf32>
    %914 = vector.broadcast %cst_197 : f32 to vector<32x128xf32>
    %915 = arith.select %912, %913, %914 : vector<32x128xi1>, vector<32x128xf32>
    %916 = arith.addf %909, %915 : vector<32x128xf32>
    %917 = vector.extract_strided_slice %782 {offsets = [19, 0], sizes = [1, 128], strides = [1, 1]} : vector<32x128xf32> to vector<1x128xf32>
    %918 = vector.broadcast %917 : vector<1x128xf32> to vector<32x128xf32>
    %919 = arith.cmpf ogt, %918, %782 : vector<32x128xf32>
    %cst_198 = arith.constant 1.000000e+00 : f32
    %cst_199 = arith.constant 0.000000e+00 : f32
    %920 = vector.broadcast %cst_198 : f32 to vector<32x128xf32>
    %921 = vector.broadcast %cst_199 : f32 to vector<32x128xf32>
    %922 = arith.select %919, %920, %921 : vector<32x128xi1>, vector<32x128xf32>
    %923 = arith.addf %916, %922 : vector<32x128xf32>
    %924 = vector.extract_strided_slice %782 {offsets = [20, 0], sizes = [1, 128], strides = [1, 1]} : vector<32x128xf32> to vector<1x128xf32>
    %925 = vector.broadcast %924 : vector<1x128xf32> to vector<32x128xf32>
    %926 = arith.cmpf ogt, %925, %782 : vector<32x128xf32>
    %cst_200 = arith.constant 1.000000e+00 : f32
    %cst_201 = arith.constant 0.000000e+00 : f32
    %927 = vector.broadcast %cst_200 : f32 to vector<32x128xf32>
    %928 = vector.broadcast %cst_201 : f32 to vector<32x128xf32>
    %929 = arith.select %926, %927, %928 : vector<32x128xi1>, vector<32x128xf32>
    %930 = arith.addf %923, %929 : vector<32x128xf32>
    %931 = vector.extract_strided_slice %782 {offsets = [21, 0], sizes = [1, 128], strides = [1, 1]} : vector<32x128xf32> to vector<1x128xf32>
    %932 = vector.broadcast %931 : vector<1x128xf32> to vector<32x128xf32>
    %933 = arith.cmpf ogt, %932, %782 : vector<32x128xf32>
    %cst_202 = arith.constant 1.000000e+00 : f32
    %cst_203 = arith.constant 0.000000e+00 : f32
    %934 = vector.broadcast %cst_202 : f32 to vector<32x128xf32>
    %935 = vector.broadcast %cst_203 : f32 to vector<32x128xf32>
    %936 = arith.select %933, %934, %935 : vector<32x128xi1>, vector<32x128xf32>
    %937 = arith.addf %930, %936 : vector<32x128xf32>
    %938 = vector.extract_strided_slice %782 {offsets = [22, 0], sizes = [1, 128], strides = [1, 1]} : vector<32x128xf32> to vector<1x128xf32>
    %939 = vector.broadcast %938 : vector<1x128xf32> to vector<32x128xf32>
    %940 = arith.cmpf ogt, %939, %782 : vector<32x128xf32>
    %cst_204 = arith.constant 1.000000e+00 : f32
    %cst_205 = arith.constant 0.000000e+00 : f32
    %941 = vector.broadcast %cst_204 : f32 to vector<32x128xf32>
    %942 = vector.broadcast %cst_205 : f32 to vector<32x128xf32>
    %943 = arith.select %940, %941, %942 : vector<32x128xi1>, vector<32x128xf32>
    %944 = arith.addf %937, %943 : vector<32x128xf32>
    %945 = vector.extract_strided_slice %782 {offsets = [23, 0], sizes = [1, 128], strides = [1, 1]} : vector<32x128xf32> to vector<1x128xf32>
    %946 = vector.broadcast %945 : vector<1x128xf32> to vector<32x128xf32>
    %947 = arith.cmpf ogt, %946, %782 : vector<32x128xf32>
    %cst_206 = arith.constant 1.000000e+00 : f32
    %cst_207 = arith.constant 0.000000e+00 : f32
    %948 = vector.broadcast %cst_206 : f32 to vector<32x128xf32>
    %949 = vector.broadcast %cst_207 : f32 to vector<32x128xf32>
    %950 = arith.select %947, %948, %949 : vector<32x128xi1>, vector<32x128xf32>
    %951 = arith.addf %944, %950 : vector<32x128xf32>
    %952 = vector.extract_strided_slice %782 {offsets = [24, 0], sizes = [1, 128], strides = [1, 1]} : vector<32x128xf32> to vector<1x128xf32>
    %953 = vector.broadcast %952 : vector<1x128xf32> to vector<32x128xf32>
    %954 = arith.cmpf ogt, %953, %782 : vector<32x128xf32>
    %cst_208 = arith.constant 1.000000e+00 : f32
    %cst_209 = arith.constant 0.000000e+00 : f32
    %955 = vector.broadcast %cst_208 : f32 to vector<32x128xf32>
    %956 = vector.broadcast %cst_209 : f32 to vector<32x128xf32>
    %957 = arith.select %954, %955, %956 : vector<32x128xi1>, vector<32x128xf32>
    %958 = arith.addf %951, %957 : vector<32x128xf32>
    %959 = vector.extract_strided_slice %782 {offsets = [25, 0], sizes = [1, 128], strides = [1, 1]} : vector<32x128xf32> to vector<1x128xf32>
    %960 = vector.broadcast %959 : vector<1x128xf32> to vector<32x128xf32>
    %961 = arith.cmpf ogt, %960, %782 : vector<32x128xf32>
    %cst_210 = arith.constant 1.000000e+00 : f32
    %cst_211 = arith.constant 0.000000e+00 : f32
    %962 = vector.broadcast %cst_210 : f32 to vector<32x128xf32>
    %963 = vector.broadcast %cst_211 : f32 to vector<32x128xf32>
    %964 = arith.select %961, %962, %963 : vector<32x128xi1>, vector<32x128xf32>
    %965 = arith.addf %958, %964 : vector<32x128xf32>
    %966 = vector.extract_strided_slice %782 {offsets = [26, 0], sizes = [1, 128], strides = [1, 1]} : vector<32x128xf32> to vector<1x128xf32>
    %967 = vector.broadcast %966 : vector<1x128xf32> to vector<32x128xf32>
    %968 = arith.cmpf ogt, %967, %782 : vector<32x128xf32>
    %cst_212 = arith.constant 1.000000e+00 : f32
    %cst_213 = arith.constant 0.000000e+00 : f32
    %969 = vector.broadcast %cst_212 : f32 to vector<32x128xf32>
    %970 = vector.broadcast %cst_213 : f32 to vector<32x128xf32>
    %971 = arith.select %968, %969, %970 : vector<32x128xi1>, vector<32x128xf32>
    %972 = arith.addf %965, %971 : vector<32x128xf32>
    %973 = vector.extract_strided_slice %782 {offsets = [27, 0], sizes = [1, 128], strides = [1, 1]} : vector<32x128xf32> to vector<1x128xf32>
    %974 = vector.broadcast %973 : vector<1x128xf32> to vector<32x128xf32>
    %975 = arith.cmpf ogt, %974, %782 : vector<32x128xf32>
    %cst_214 = arith.constant 1.000000e+00 : f32
    %cst_215 = arith.constant 0.000000e+00 : f32
    %976 = vector.broadcast %cst_214 : f32 to vector<32x128xf32>
    %977 = vector.broadcast %cst_215 : f32 to vector<32x128xf32>
    %978 = arith.select %975, %976, %977 : vector<32x128xi1>, vector<32x128xf32>
    %979 = arith.addf %972, %978 : vector<32x128xf32>
    %980 = vector.extract_strided_slice %782 {offsets = [28, 0], sizes = [1, 128], strides = [1, 1]} : vector<32x128xf32> to vector<1x128xf32>
    %981 = vector.broadcast %980 : vector<1x128xf32> to vector<32x128xf32>
    %982 = arith.cmpf ogt, %981, %782 : vector<32x128xf32>
    %cst_216 = arith.constant 1.000000e+00 : f32
    %cst_217 = arith.constant 0.000000e+00 : f32
    %983 = vector.broadcast %cst_216 : f32 to vector<32x128xf32>
    %984 = vector.broadcast %cst_217 : f32 to vector<32x128xf32>
    %985 = arith.select %982, %983, %984 : vector<32x128xi1>, vector<32x128xf32>
    %986 = arith.addf %979, %985 : vector<32x128xf32>
    %987 = vector.extract_strided_slice %782 {offsets = [29, 0], sizes = [1, 128], strides = [1, 1]} : vector<32x128xf32> to vector<1x128xf32>
    %988 = vector.broadcast %987 : vector<1x128xf32> to vector<32x128xf32>
    %989 = arith.cmpf ogt, %988, %782 : vector<32x128xf32>
    %cst_218 = arith.constant 1.000000e+00 : f32
    %cst_219 = arith.constant 0.000000e+00 : f32
    %990 = vector.broadcast %cst_218 : f32 to vector<32x128xf32>
    %991 = vector.broadcast %cst_219 : f32 to vector<32x128xf32>
    %992 = arith.select %989, %990, %991 : vector<32x128xi1>, vector<32x128xf32>
    %993 = arith.addf %986, %992 : vector<32x128xf32>
    %994 = vector.extract_strided_slice %782 {offsets = [30, 0], sizes = [1, 128], strides = [1, 1]} : vector<32x128xf32> to vector<1x128xf32>
    %995 = vector.broadcast %994 : vector<1x128xf32> to vector<32x128xf32>
    %996 = arith.cmpf ogt, %995, %782 : vector<32x128xf32>
    %cst_220 = arith.constant 1.000000e+00 : f32
    %cst_221 = arith.constant 0.000000e+00 : f32
    %997 = vector.broadcast %cst_220 : f32 to vector<32x128xf32>
    %998 = vector.broadcast %cst_221 : f32 to vector<32x128xf32>
    %999 = arith.select %996, %997, %998 : vector<32x128xi1>, vector<32x128xf32>
    %1000 = arith.addf %993, %999 : vector<32x128xf32>
    %1001 = vector.extract_strided_slice %782 {offsets = [31, 0], sizes = [1, 128], strides = [1, 1]} : vector<32x128xf32> to vector<1x128xf32>
    %1002 = vector.broadcast %1001 : vector<1x128xf32> to vector<32x128xf32>
    %1003 = arith.cmpf ogt, %1002, %782 : vector<32x128xf32>
    %cst_222 = arith.constant 1.000000e+00 : f32
    %cst_223 = arith.constant 0.000000e+00 : f32
    %1004 = vector.broadcast %cst_222 : f32 to vector<32x128xf32>
    %1005 = vector.broadcast %cst_223 : f32 to vector<32x128xf32>
    %1006 = arith.select %1003, %1004, %1005 : vector<32x128xi1>, vector<32x128xf32>
    %1007 = arith.addf %1000, %1006 : vector<32x128xf32>
    %cst_224 = arith.constant 1.900000e+01 : f32
    %1008 = vector.broadcast %cst_224 : f32 to vector<32x128xf32>
    %1009 = arith.cmpf olt, %1007, %1008 : vector<32x128xf32>
    %cst_225 = arith.constant 0.000000e+00 : f32
    %1010 = vector.broadcast %cst_225 : f32 to vector<32x128xf32>
    %1011 = arith.select %1009, %782, %1010 : vector<32x128xi1>, vector<32x128xf32>
    %cst_226 = arith.constant dense<0.000000e+00> : vector<8x128xf32>
    %1012 = tpu.matmul %3, %1011, %cst_226 {dimension_numbers = #tpu.dot_dimension_numbers<[1], [0], [0], [1], [0, 0, 1, 1], [], []>} : vector<8x32xf32>, vector<32x128xf32>, vector<8x128xf32> -> vector<8x128xf32>
    %1013 = arith.addf %1012, %9 : vector<8x128xf32>
    %c2 = arith.constant 2 : index
    %c0_227 = arith.constant 0 : index
    %c0_228 = arith.constant 0 : index
    %1014 = vector.load %arg11[%c2, %c0_227, %c0_228] : memref<3x8x128xf32, #tpu.memory_space<vmem>>, vector<1x8x128xf32>
    %1015 = vector.shape_cast %1014 : vector<1x8x128xf32> to vector<8x128xf32>
    %1016 = vector.shape_cast %1013 : vector<8x128xf32> to vector<1x8x128xf32>
    tpu.vector_store %arg11[%c2, %c0_227, %c0_228], %1016 {strides = array<i32>} : memref<3x8x128xf32, #tpu.memory_space<vmem>>, vector<1x8x128xf32>,
    %c0_229 = arith.constant 0 : index
    %c0_230 = arith.constant 0 : index
    %1017 = vector.load %arg9[%c0_229, %c0_230] : memref<8x128xf32, #tpu.memory_space<vmem>>, vector<8x128xf32>
    tpu.vector_store %arg9[%c0_229, %c0_230], %1013 {strides = array<i32>} : memref<8x128xf32, #tpu.memory_space<vmem>>, vector<8x128xf32>,
    %c0_231 = arith.constant 0 : index
    %c0_232 = arith.constant 0 : index
    %1018 = vector.load %arg10[%c0_231, %c0_232] : memref<32x128xf32, #tpu.memory_space<vmem>>, vector<32x128xf32>
    tpu.vector_store %arg10[%c0_231, %c0_232], %1011 {strides = array<i32>} : memref<32x128xf32, #tpu.memory_space<vmem>>, vector<32x128xf32>,
    return
  }
  func.func @transform_0(%arg0: i32) -> (i32, i32) {
    %c0_i32 = arith.constant 0 : i32
    %c0_i32_0 = arith.constant 0 : i32
    return %c0_i32, %arg0 : i32, i32
  }
  func.func @transform_1(%arg0: i32) -> (i32, i32, i32) {
    %c0_i32 = arith.constant 0 : i32
    %c0_i32_0 = arith.constant 0 : i32
    %c0_i32_1 = arith.constant 0 : i32
    return %c0_i32, %c0_i32_0, %arg0 : i32, i32, i32
  }
  func.func @transform_2(%arg0: i32) -> (i32, i32) {
    %c0_i32 = arith.constant 0 : i32
    %c0_i32_0 = arith.constant 0 : i32
    return %c0_i32, %arg0 : i32, i32
  }
  func.func @transform_3(%arg0: i32) -> (i32, i32) {
    %c0_i32 = arith.constant 0 : i32
    %c0_i32_0 = arith.constant 0 : i32
    return %c0_i32, %arg0 : i32, i32
  }
  func.func @transform_4(%arg0: i32) -> (i32, i32) {
    %c0_i32 = arith.constant 0 : i32
    %c0_i32_0 = arith.constant 0 : i32
    %c0_i32_1 = arith.constant 0 : i32
    return %c0_i32, %c0_i32_0 : i32, i32
  }
  func.func @transform_5(%arg0: i32) -> (i32, i32) {
    %c0_i32 = arith.constant 0 : i32
    %c0_i32_0 = arith.constant 0 : i32
    %c0_i32_1 = arith.constant 0 : i32
    return %c0_i32, %c0_i32_0 : i32, i32
  }
  func.func @transform_6(%arg0: i32) -> (i32, i32) {
    %c0_i32 = arith.constant 0 : i32
    %c0_i32_0 = arith.constant 0 : i32
    %c0_i32_1 = arith.constant 0 : i32
    return %c0_i32, %c0_i32_0 : i32, i32
  }
  func.func @transform_7(%arg0: i32) -> (i32, i32) {
    %c0_i32 = arith.constant 0 : i32
    %c0_i32_0 = arith.constant 0 : i32
    %c0_i32_1 = arith.constant 0 : i32
    return %c0_i32, %c0_i32_0 : i32, i32
  }
  func.func @transform_8(%arg0: i32) -> (i32, i32) {
    %c0_i32 = arith.constant 0 : i32
    %c0_i32_0 = arith.constant 0 : i32
    return %c0_i32, %arg0 : i32, i32
  }
  func.func @transform_9(%arg0: i32) -> (i32, i32) {
    %c0_i32 = arith.constant 0 : i32
    %c0_i32_0 = arith.constant 0 : i32
    return %c0_i32, %arg0 : i32, i32
  }
  func.func @transform_10(%arg0: i32) -> (i32, i32, i32) {
    %c0_i32 = arith.constant 0 : i32
    %c0_i32_0 = arith.constant 0 : i32
    %c0_i32_1 = arith.constant 0 : i32
    return %c0_i32, %c0_i32_0, %arg0 : i32, i32, i32
  }
}

</mosaic_0001>

<bundles_post_ra>
// kernel: tpu_custom_call.1
= control target key start
LH: loop header
LB: loop body
LE: loop exit
PB: predicated region body
PF: predicated region fallthrough
CT: control target
= control target key end

     0   :  { %s5053_s0 = inlined_call_operand.hbm [shape: f32[8,256], index: 0, kind: input, shape index: {}]   ;;  %s5054_s1 = inlined_call_operand.hbm [shape: f32[8,8,256], index: 1, kind: input, shape index: {}]   ;;  %s5055_s2 = inlined_call_operand.hbm [shape: f32[8,256], index: 2, kind: input, shape index: {}]   ;;  %s5056_s3 = inlined_call_operand.hbm [shape: f32[32,256], index: 3, kind: input, shape index: {}]   ;;  %s5057_s4 = inlined_call_operand.vmem [shape: f32[32,40], index: 4, kind: input, shape index: {}]   ;;  %s5058_s5 = inlined_call_operand.vmem [shape: f32[32,1], index: 5, kind: input, shape index: {}]   ;;  %s5059_s6 = inlined_call_operand.vmem [shape: f32[8,32], index: 6, kind: input, shape index: {}]   ;;  %s5060_s7 = inlined_call_operand.vmem [shape: f32[8,1], index: 7, kind: input, shape index: {}]   ;;  %s5061_s8 = inlined_call_operand.hbm [shape: f32[8,256], index: 8, kind: output, shape index: {0}]   ;;  %s5062_s9 = inlined_call_operand.hbm [shape: f32[32,256], index: 9, kind: output, shape index: {1}]   ;;  %s5063_s10 = inlined_call_operand.hbm [shape: f32[3,8,256], index: 10, kind: output, shape index: {2}]  }
   0x1   :  { %5100 = sst [smem:[#allocation42_spill]] %s5053_s0 }
   0x2   :  { %5101 = sst [smem:[#allocation43_spill]] %s5054_s1 }
   0x3   :  { %5102 = sst [smem:[#allocation44_spill]] %s5061_s8 }
   0x4   :  { %5103 = sst [smem:[#allocation45_spill]] %s5062_s9 }
   0x5   :  { %5104 = sst [smem:[#allocation46_spill]] %s5063_s10 }
   0x6   :  { %16 = vsyncpa [#allocation3], 0 }
   0x7   :  { %18 = vsyncpa [#allocation3 + $0x1], 0 }
   0x8   :  { %19 = vsyncpa [#allocation6], 0 }
   0x9   :  { %21 = vsyncpa [#allocation6 + $0x1], 0 }
   0xa   :  { %22 = vsyncpa [#allocation9], 0 }
   0xb   :  { %24 = vsyncpa [#allocation9 + $0x1], 0 }
   0xc   :  { %25 = vsyncpa [#allocation4], 0 }
   0xd   :  { %27 = vsyncpa [#allocation4 + $0x1], 0 }
   0xe   :  { %28 = vsyncpa [#allocation12], 0 }
   0xf   :  { %30 = vsyncpa [#allocation12 + $0x1], 0  ;;  %s2902_s13 = smov 0   ;;  %s2904_s14 = smov 0  }
  0x10   :  { %s2906_s15 = smov 0   ;;  %s2908_s16 = smov 0  }
  0x11 LB: > { %5105 = sst [smem:[#allocation19_spill]] %s2825_s13  ;;  %s2923_s17 = sadd.s32 4294967295, %s2837_s16   ;;  %s2837_s16 = sphi %s2908_s16, %s5166_s16   ;;  %s2833_s15 = sphi %s2906_s15, %s5168_s15   ;;  %s2829_s14 = sphi %s2904_s14, %s5170_s14   ;;  %s2825_s13 = sphi %s2902_s13, %s5169_s13  }
  0x12   : > { %5106 = sst [smem:[#allocation20_spill]] %s2833_s15  ;;  %s5064_s18 = sadd.s32 4294967294, %s2837_s16  }
  0x13   : > { %5107 = sst [smem:[#allocation21_spill]] %s2837_s16  ;;  %s2927_s19 = sadd.s32 1, %s2837_s16  }
  0x14   : > { %5108 = sst [smem:[#allocation22_spill]] %s2927_s19  ;;  %s43_s20 = sadd.s32 1, %s2833_s15 }
  0x15   : > { %s40_s21 = ssub.s32 %s2837_s16, %s2927_s19  ;;  %p50_p0 = scmp.ne.s32.totalorder %s2833_s15, %s2829_s14 }
  0x16   : > { %p41_p1 = scmp.eq.s32.totalorder %s40_s21, 0  ;;  %p51_p2 = scmp.eq.s32.totalorder %s2837_s16, 0 }
  0x17   : > { %p56_p3 = scmp.ne.s32.totalorder %s2829_s14, %s2825_s13  ;;  %p57_p4 = scmp.eq.s32.totalorder %s2923_s17, 0 }
  0x18   : > { %s2939_s22 = scalar_select %p41_p1, %s2833_s15, %s43_s20  }
  0x19   : > { %p52_p5 = por %p51_p2, %p50_p0  ;;  %p2941_p6 = por %p57_p4, %p56_p3 }
  0x1a   : > { %5109 = sst [smem:[#allocation23_spill]] %s2939_s22  ;;  %p242_p7 = scmp.eq.s32.totalorder %s2923_s17, 1 }
  0x1b   : > { %p248_p8 = scmp.eq.s32.totalorder %s5064_s18, 1  ;;  %p2417_p9 = scmp.ge.s32.totalorder %s2837_s16, 2 }
  0x1c   : > { %p2515_p10 = scmp.lt.s32.totalorder %s2837_s16, 2  ;;  %p2950_p11 = por %p242_p7, %p50_p0 }
  0x1d   : > { %p2954_p12 = por %p248_p8, %p56_p3  ;;  %s2959_s26 = sand.u32 1, %s2833_s15  }
  0x1e   : > { %s2962_s27 = sshll.u32 %s2837_s16, 3  ;;  %p2964_p13 = pnand %p2515_p10, %p52_p5 }
  0x1f   : > { %s5112_s25 = scalar_select %p2954_p12, 1, 0 }
  0x20   : > { %s351_s29 = sand.u32 1, %s2837_s16   ;;  %s2420_s30 = sshll.u32 %s2959_s26, 6 }
  0x21   : > { %5113 = sst [smem:[#allocation24_spill]] %s5112_s25  ;;  %s355_s21 = scalar_lea.vmem [#allocation5], %s2420_s30 }
  0x22   : > { %s5115_s1 = sld [smem:[#allocation43_spill]]  ;;  %s362_s18 = sshll.u32 %s355_s21, 4  ;;  %s363_s18 = int_to_ptr.vmem [resolvable:$true] %s362_s18 }
  0x23   : > { %s2974_s15 = scalar_lea.sflag [#allocation6], %s351_s29  ;;  %p2587_p1 = pneg %p2964_p13 }
  0x28   : > { %s359_s20 = scalar_lea.hbm %s5115_s1, %s2962_s27  ;;  %s2590_s30 = scalar_lea.hbm %s5115_s1, 128 }
  0x29   : > { %s360_s22 = sshll.u32 %s359_s20, 4  ;;  %s361_s22 = int_to_ptr.hbm [resolvable:$true] %s360_s22 }
  0x2a   : > { %s2583_s19 = sshra.s32 %s361_s22, 4  ;;  %s2584_s19 = int_to_ptr.hbm [resolvable:$true] %s2583_s19 }
  0x2b   : > { %s2585_s25 = scalar_lea.hbm %s2584_s19, 64  ;;  %p2591_p4 = scmp.lt.s32.totalorder %s2584_s19, %s5115_s1 }
  0x2c   : > { %p2586_p0 = scmp.ne.s32.totalorder %s2584_s19, %s2585_s25  ;;  %p2592_p5 = scmp.lt.s32.totalorder %s2590_s30, %s2585_s25 }
  0x2e   : > { %p2588_p2 = pnand %p2587_p1, %p2586_p0  ;;  %p2593_p7 = por %p2592_p5, %p2591_p4 }
  0x30   : > { %p2589_p3 = pneg %p2588_p2 }
  0x32   : > { %p2594_p8 = pnand %p2593_p7, %p2589_p3 }
  0x34   : > { %2597 = shalt.err (!%p2594_p8)
}
  0x35   : > { %s5073_s29 = smov 256   ;;  %s5074_s21 = smov 128  }
  0x36   : > { %s5075_s10 = smov 8   ;;  %p2426_p10 = scmp.ge.s32.totalorder %s2837_s16, 1 }
  0x37   : > { %2498 = dma.hbm_to_vmem [thread:$0]  (!%p2964_p13), %s361_s22, 1024, %s363_s18, %s2974_s15, %s5073_s29, %s5074_s21, %s5075_s10  }
  0x38   : > { %p410_p0 = scmp.lt.s32.totalorder %s2837_s16, 3  ;;  %s2418_s13 = sshll.u32 %s2959_s26, 3 }
  0x39   : > { %s5117_s0 = sld [smem:[#allocation42_spill]]  ;;  %s336_s12 = scalar_lea.vmem [#allocation2], %s2418_s13 }
  0x3a   : > { %p2996_p2 = pnand %p2426_p10, %p410_p0  ;;  %s344_s20 = sshll.u32 %s336_s12, 4  ;;  %s345_s20 = int_to_ptr.vmem [resolvable:$true] %s344_s20 }
  0x3b   : > { %s333_s8 = scalar_lea.sflag [#allocation3], %s2959_s26 }
  0x3f   : > { %s340_s30 = scalar_lea.hbm %s5117_s0, %s2962_s27  ;;  %s2620_s21 = scalar_lea.hbm %s5117_s0, 16 }
  0x40   : > { %s342_s1 = sshll.u32 %s340_s30, 4  ;;  %s343_s1 = int_to_ptr.hbm [resolvable:$true] %s342_s1 }
  0x41   : > { %s2613_s9 = sshra.s32 %s343_s1, 4  ;;  %s2614_s9 = int_to_ptr.hbm [resolvable:$true] %s2613_s9 }
  0x42   : > { %s2615_s18 = scalar_lea.hbm %s2614_s9, 8  ;;  %p2621_p7 = scmp.lt.s32.totalorder %s2614_s9, %s5117_s0 }
  0x43   : > { %p2616_p3 = scmp.ne.s32.totalorder %s2614_s9, %s2615_s18  ;;  %p2622_p8 = scmp.lt.s32.totalorder %s2620_s21, %s2615_s18 }
  0x45   : > { %p2618_p4 = pnand %p2616_p3, %p2587_p1  ;;  %p2623_p10 = por %p2622_p8, %p2621_p7 }
  0x47   : > { %p2619_p5 = pneg %p2618_p4 }
  0x49   : > { %p2624_p0 = pnand %p2623_p10, %p2619_p5 }
  0x4b   : > { %2627 = shalt.err (!%p2624_p0)
}
  0x4c   : > { %2495 = dma.hbm_to_vmem [thread:$0]  (!%p2964_p13), %s343_s1, 128, %s345_s20, %s333_s8  }
  0x4d   : > { %s380_s10 = scalar_lea.hbm %s5055_s2, %s2962_s27  ;;  %s376_s16 = scalar_lea.vmem [#allocation7], %s2418_s13 }
  0x4e   : > { %s384_s29 = sshll.u32 %s376_s16, 4  ;;  %s382_s22 = sshll.u32 %s380_s10, 4  ;;  %s385_s29 = int_to_ptr.vmem [resolvable:$true] %s384_s29  ;;  %s383_s22 = int_to_ptr.hbm [resolvable:$true] %s382_s22 }
  0x4f   : > { %s2643_s25 = sshra.s32 %s383_s22, 4  ;;  %s2650_s1 = scalar_lea.hbm %s5055_s2, 16  ;;  %s2644_s25 = int_to_ptr.hbm [resolvable:$true] %s2643_s25 }
  0x50   : > { %s2645_s9 = scalar_lea.hbm %s2644_s25, 8  ;;  %p2651_p7 = scmp.lt.s32.totalorder %s2644_s25, %s5055_s2 }
  0x51   : > { %p2646_p3 = scmp.ne.s32.totalorder %s2644_s25, %s2645_s9  ;;  %p2652_p8 = scmp.lt.s32.totalorder %s2650_s1, %s2645_s9 }
  0x53   : > { %p2648_p4 = pnand %p2646_p3, %p2587_p1  ;;  %p2653_p10 = por %p2652_p8, %p2651_p7 }
  0x55   : > { %p2649_p5 = pneg %p2648_p4 }
  0x57   : > { %p2654_p0 = pnand %p2653_p10, %p2649_p5 }
  0x59   : > { %2657 = shalt.err (!%p2654_p0)
}
  0x5a   : > { %2501 = dma.hbm_to_vmem [thread:$0]  (!%p2964_p13), %s383_s22, 128, %s385_s29, %s2974_s15  }
  0x5b   : > { %s2424_s10 = sshll.u32 %s2959_s26, 5  ;;  %s399_s11 = scalar_lea.hbm %s5056_s3, %s2962_s27 }
  0x5c   : > { %s400_s30 = sshll.u32 %s399_s11, 4  ;;  %s395_s12 = scalar_lea.vmem [#allocation8], %s2424_s10  ;;  %s401_s30 = int_to_ptr.hbm [resolvable:$true] %s400_s30 }
  0x5d   : > { %s402_s25 = sshll.u32 %s395_s12, 4  ;;  %s392_s9 = scalar_lea.sflag [#allocation9], %s2959_s26  ;;  %s403_s25 = int_to_ptr.vmem [resolvable:$true] %s402_s25 }
  0x5e   : > { %s2673_s21 = sshra.s32 %s401_s30, 4  ;;  %s2680_s22 = scalar_lea.hbm %s5056_s3, 64  ;;  %s2674_s21 = int_to_ptr.hbm [resolvable:$true] %s2673_s21 }
  0x5f   : > { %s2675_s18 = scalar_lea.hbm %s2674_s21, 32  ;;  %p2681_p7 = scmp.lt.s32.totalorder %s2674_s21, %s5056_s3 }
  0x60   : > { %p2676_p3 = scmp.ne.s32.totalorder %s2674_s21, %s2675_s18  ;;  %p2682_p8 = scmp.lt.s32.totalorder %s2680_s22, %s2675_s18 }
  0x62   : > { %p2678_p4 = pnand %p2676_p3, %p2587_p1  ;;  %p2683_p10 = por %p2682_p8, %p2681_p7 }
  0x64   : > { %p2679_p5 = pneg %p2678_p4 }
  0x66   : > { %p2684_p0 = pnand %p2683_p10, %p2679_p5 }
  0x68   : > { %2687 = shalt.err (!%p2684_p0)
}
  0x69   : > { %s5118_s26 = smov 8   ;;  %s5119_s8 = smov 128  }
  0x6a   : > { %s5120_s20 = smov 256   ;;  %414 = sbr.rel (%p2996_p2) target bundleno = 1498 (0x5da), region = 52 }
  0x6b   : > { %2504 = dma.hbm_to_vmem [thread:$0]  (!%p2964_p13), %s401_s30, 512, %s403_s25, %s392_s9, %s5120_s20, %s5119_s8, %s5118_s26  }
  0x6f   : > { %s3055_s10 = sand.u32 1, %s2829_s14  }
  0x70   : > { %s3058_s16 = sshll.u32 %s3055_s10, 3  ;;  %s417_s13 = scalar_lea.sflag [#allocation3], %s3055_s10 }
  0x71   : > { %s3062_s11 = scalar_lea.vmem [#allocation2], %s3058_s16 }
  0x72   : > { %2804 = dma.done.wait (%p2941_p6), %s417_s13, 128  }
  0x73   : > { %2806 = vsyncadd (%p2941_p6), %s417_s13, 4294967168  ;;  %s426_s28 = sand.u32 1, %s2923_s17   ;;  %s2428_s19 = sshll.u32 %s3055_s10, 6 }
  0x74   : > { %s427_s30 = scalar_lea.sflag [#allocation6], %s426_s28  ;;  %s3072_s12 = scalar_lea.vmem [#allocation5], %s2428_s19 }
  0x75   : > { %2808 = dma.done.wait (%p2941_p6), %s427_s30, 1152  }
  0x76   : > { %2810 = vsyncadd (%p2941_p6), %s427_s30, 4294966144  ;;  %s2430_s25 = sshll.u32 %s3055_s10, 5  ;;  %s440_s9 = scalar_lea.vmem [#allocation7], %s3058_s16 }
  0x77   : > { %s447_s21 = scalar_lea.sflag [#allocation9], %s3055_s10  ;;  %s450_s18 = scalar_lea.vmem [#allocation8], %s2430_s25 }
  0x78   : > { %2812 = dma.done.wait (%p2941_p6), %s447_s21, 512  }
  0x79   : > { %2814 = vsyncadd (%p2941_p6), %s447_s21, 4294966784  ;;  %v561_v0 = vld [vmem:[%s450_s18 + $0x18] sm:$0xff]  ;;  %v560_v1 = vld [vmem:[%s450_s18 + $0x10] sm:$0xff]  ;;  %v2842_v41 = vmov 0   ;;  %vm612_vm0 = vcmask 326656   ;;  %s2477_s27 = smul.u32 24, %s3055_s10 }
  0x7a   : > { %636 = vmatpush.msra.mxu0 %v561_v0  ;;  %v559_v2 = vld [vmem:[%s450_s18 + $0x8] sm:$0xff]  ;;  %v558_v3 = vld [vmem:[%s450_s18] sm:$0xff]  ;;  %v514_v4 = vld [vmem:[%s3072_s12] sm:$0xff]  ;;  %2558 = vset.pattern.permute.xlu1 %v2842_v41  ;;  %s4805_s21 = scalar_lea.vmem [#allocation11], %s2430_s25  ;;  %s2472_s15 = sshll.u32 %s2923_s17, 3 }
  0x7b   : > { %v515_v5 = vld [vmem:[%s3072_s12 + $0x8] sm:$0xff]  ;;  %v516_v6 = vld [vmem:[%s3072_s12 + $0x10] sm:$0xff]  ;;  %v517_v12 = vld [vmem:[%s3072_s12 + $0x18] sm:$0xff]  ;;  %2557 = vset.pattern.permute.xlu0 %v2842_v41  ;;  %2559 = vset.pattern.permute.xlu2 %v2842_v41  ;;  %s3762_s26 = scalar_lea.vmem [#allocation13], %s2477_s27  ;;  %s2194_s23 = sshll.u32 %s4805_s21, 4  ;;  %s2195_s23 = int_to_ptr.vmem [resolvable:$true] %s2194_s23 }
  0x7c   : > { %637 = vmatpush.msra.mxu0 %v560_v1  ;;  %v557_v7 = vld [vmem:[%s440_s9] sm:$0xff]  ;;  %v520_v25 = vld [vmem:[%s3072_s12 + $0x30] sm:$0xff]  ;;  %v521_v29 = vld [vmem:[%s3072_s12 + $0x38] sm:$0xff]  ;;  %s5158_s1 = sld [smem:[#allocation45_spill]]  ;;  %s4972_s20 = scalar_lea.sflag [#allocation12], %s426_s28 }
  0x7d   : > { %v562_v8 = vperm.slane %v557_v7, 0  ;;  %v564_v9 = vperm.slane %v557_v7, 1  ;;  %v567_v10 = vperm.slane %v557_v7, 2  ;;  %v570_v11 = vperm.slane %v557_v7, 3  ;;  %v518_v17 = vld [vmem:[%s3072_s12 + $0x20] sm:$0xff]  ;;  %v519_v21 = vld [vmem:[%s3072_s12 + $0x28] sm:$0xff] }
  0x7e   : > { %638 = vmatpush.msra.mxu0 %v559_v2  ;;  %v573_v16 = vperm.slane %v557_v7, 4  ;;  %v576_v20 = vperm.slane %v557_v7, 5  ;;  %v579_v24 = vperm.slane %v557_v7, 6  ;;  %v582_v28 = vperm.slane %v557_v7, 7  ;;  %v513_v32 = vld [vmem:[%s3062_s11] sm:$0xff]  ;;  %v529_v38 = vld [vmem:[%s5058_s5 + $0x10] sm:$0xff] }
  0x7f   : > { %v563_v13 = vmul.f32 %v562_v8, %v514_v4  ;;  %v565_v14 = vmul.f32 %v564_v9, %v515_v5  ;;  %v568_v15 = vmul.f32 %v567_v10, %v516_v6  ;;  %v571_v19 = vmul.f32 %v570_v11, %v517_v12  ;;  %v527_v39 = vld [vmem:[%s5058_s5] sm:$0xff]  ;;  %543 = vperm.xlu1 %2558, %v529_v38   ;;  %v528_v53 = vld [vmem:[%s5058_s5 + $0x8] sm:$0xff]  ;;  %v530_v0 = vld [vmem:[%s5058_s5 + $0x18] sm:$0xff] }
  0x80   : > { %639 = vmatpush.msra.mxu0 %v558_v3  ;;  %v574_v23 = vmul.f32 %v573_v16, %v518_v17  ;;  %v577_v27 = vmul.f32 %v576_v20, %v519_v21  ;;  %v580_v31 = vmul.f32 %v579_v24, %v520_v25  ;;  %v583_v34 = vmul.f32 %v582_v28, %v521_v29  ;;  %v3132_v8 = vld [vmem:[%s5057_s4 + $0x18] sm:$0xff] }
  0x81   : > { %v566_v18 = vadd.f32 %v565_v14, %v563_v13  ;;  %v585_v36 = vadd.f32 %v557_v7, %v513_v32  ;;  %533 = vperm.xlu0 %2557, %v527_v39   ;;  %v3125_v7 = vld [vmem:[%s5057_s4 + $0x10] sm:$0xff]  ;;  %5123 = vst [vmem:[#allocation27_spill] sm:$0xff] %v3132_v8  ;;  %v2843_v20 = vmov 0.0  }
  0x82   : > { %5122 = vst [vmem:[#allocation26_spill] sm:$0xff] %v3125_v7  ;;  %s2193_s27 = scalar_lea.hbm %s5158_s1, %s2472_s15 }
  0x83   : > { %v569_v22 = vadd.f32 %v568_v15, %v566_v18  ;;  %s2196_s8 = sshll.u32 %s2193_s27, 4  ;;  %s2197_s8 = int_to_ptr.hbm [resolvable:$true] %s2196_s8 }
  0x84   : > { %s2717_s13 = sshra.s32 %s2197_s8, 4  ;;  %s2718_s13 = int_to_ptr.hbm [resolvable:$true] %s2717_s13 }
  0x85   : > { %v572_v26 = vadd.f32 %v571_v19, %v569_v22  ;;  %s2719_s19 = scalar_lea.hbm %s2718_s13, 32  ;;  %p2724_p2 = scmp.lt.s32.totalorder %s2718_s13, %s5158_s1 }
  0x86   : > { %p2720_p6 = scmp.ne.s32.totalorder %s2718_s13, %s2719_s19 }
  0x87   : > { %v575_v30 = vadd.f32 %v574_v23, %v572_v26  ;;  %538 = vperm.xlu1 %2558, %v528_v53  }
  0x88   : > { %p2721_p13 = pnand %p2720_p6, %p2950_p11 }
  0x89   : > { %v578_v33 = vadd.f32 %v577_v27, %v575_v30  ;;  %548 = vperm.xlu0 %2557, %v530_v0  }
  0x8a   : > { %p2722_p1 = pneg %p2721_p13 }
  0x8b   : > { %v581_v35 = vadd.f32 %v580_v31, %v578_v33 }
  0x8d   : > { %v584_v37 = vadd.f32 %v583_v34, %v581_v35 }
  0x8f   : > { %v586_v40 = vsub.f32 %v585_v36, %v584_v37 }
  0x91   : > { %v587_v42 = vperm.slane %v586_v40, 0  ;;  %v589_v43 = vperm.slane %v586_v40, 1  ;;  %v592_v44 = vperm.slane %v586_v40, 2  ;;  %v595_v45 = vperm.slane %v586_v40, 3 }
  0x92   : > { %v598_v49 = vperm.slane %v586_v40, 4  ;;  %v601_v52 = vperm.slane %v586_v40, 5  ;;  %v604_v56 = vperm.slane %v586_v40, 6  ;;  %v607_v59 = vperm.slane %v586_v40, 7 }
  0x93   : > { %v588_v46 = vmul.f32 %v587_v42, %v514_v4  ;;  %v590_v47 = vmul.f32 %v589_v43, %v515_v5  ;;  %v593_v48 = vmul.f32 %v592_v44, %v516_v6  ;;  %v596_v51 = vmul.f32 %v595_v45, %v517_v12  ;;  %v3111_v5 = vld [vmem:[%s5057_s4] sm:$0xff]  ;;  %v3118_v6 = vld [vmem:[%s5057_s4 + $0x8] sm:$0xff] }
  0x94   : > { %v599_v55 = vmul.f32 %v598_v49, %v518_v17  ;;  %v602_v58 = vmul.f32 %v601_v52, %v519_v21  ;;  %v605_v61 = vmul.f32 %v604_v56, %v520_v25  ;;  %v608_v63 = vmul.f32 %v607_v59, %v521_v29  ;;  %5121 = vst [vmem:[#allocation25_spill] sm:$0xff] %v3118_v6 }
  0x95   : > { %v591_v50 = vadd.f32 %v590_v47, %v588_v46  ;;  %v610_v2 = vadd.f32 %v586_v40, %v513_v32 }
  0x97   : > { %v594_v54 = vadd.f32 %v593_v48, %v591_v50 }
  0x99   : > { %v597_v57 = vadd.f32 %v596_v51, %v594_v54 }
  0x9b   : > { %v600_v60 = vadd.f32 %v599_v55, %v597_v57 }
  0x9d   : > { %v603_v62 = vadd.f32 %v602_v58, %v600_v60 }
  0x9f   : > { %v606_v1 = vadd.f32 %v605_v61, %v603_v62 }
  0xa1   : > { %v609_v3 = vadd.f32 %v608_v63, %v606_v1 }
  0xa3   : > { %v611_v4 = vsub.f32 %v610_v2, %v609_v3 }
  0xa5   : > { %640 = vmatpush.msra.mxu0 %v611_v4 }
  0xa6   : > { %2433 = vmatmul.msk.f32.vlgmr.msra.gmra.mxu0 %vm612_vm0, %v3111_v5 }
  0xae   : > { %2434 = vmatmul.msk.f32.gmra.mxu0 %vm612_vm0, %v3118_v6 }
  0xb6   : > { %2435 = vmatmul.msk.f32.gmra.mxu0 %vm612_vm0, %v3125_v7 }
  0xbe   : > { %2436 = vmatmul.msk.f32.gmra.mxu0 %vm612_vm0, %v3132_v8 }
  0xf1   : > { %v3136_v10 = vpop.permute.xlu1 %543 }
  0xf2   : > { %5124 = vst [vmem:[#allocation28_spill] sm:$0xff] %v3136_v10 }
  0xf3   : > { %v3138_v12 = vpop.permute.xlu0 %533 }
  0xf4   : > { %5125 = vst [vmem:[#allocation29_spill] sm:$0xff] %v3138_v12 }
  0xf9   : > { %v3140_v13 = vpop.permute.xlu1 %538 }
  0xfa   : > { %5126 = vst [vmem:[#allocation30_spill] sm:$0xff] %v3140_v13 }
  0xfb   : > { %v3163_v23 = vpop.permute.xlu0 %548 }
  0xfc   : > { %5127 = vst [vmem:[#allocation31_spill] sm:$0xff] %v3163_v23 }
 0x123   : > { %v642_v9 = vpop.f32.mrf.mxu0 }
 0x124   : > { %v3143_v14 = vadd.f32 %v642_v9, %v3138_v12 }
 0x126   : > { %v3149_v17 = vperm.slane %v3143_v14, 0  ;;  %v3152_v18 = vperm.slane %v3143_v14, 1  ;;  %v3159_v19 = vperm.slane %v3143_v14, 2  ;;  %v3166_v25 = vperm.slane %v3143_v14, 3 }
 0x127   : > { %v3169_v26 = vperm.slane %v3143_v14, 4  ;;  %v3172_v27 = vperm.slane %v3143_v14, 5  ;;  %v3175_v28 = vperm.slane %v3143_v14, 6  ;;  %v3181_v30 = vperm.slane %v3143_v14, 7 }
 0x12b   : > { %v645_v11 = vpop.f32.mrf.mxu0 }
 0x12c   : > { %v3146_v15 = vadd.f32 %v645_v11, %v3140_v13 }
 0x12e   : > { %vm656_vm1 = vcmp.gt.f32.partialorder %v3149_v17, %v3146_v15  ;;  %vm669_vm2 = vcmp.gt.f32.partialorder %v3152_v18, %v3146_v15  ;;  %v3184_v31 = vperm.slane %v3146_v15, 0  ;;  %v3187_v32 = vperm.slane %v3146_v15, 1 }
 0x12f   : > { %v660_v21 = vsel %vm656_vm1, 1.0, %v2843_v20  ;;  %v673_v22 = vsel %vm669_vm2, 1.0, %v2843_v20  ;;  %v3190_v33 = vperm.slane %v3146_v15, 2  ;;  %vm682_vm3 = vcmp.gt.f32.partialorder %v3159_v19, %v3146_v15 }
 0x130   : > { %v677_v34 = vadd.f32 %v673_v22, %v660_v21  ;;  %vm695_vm4 = vcmp.gt.f32.partialorder %v3166_v25, %v3146_v15  ;;  %v3208_v38 = vperm.slane %v3146_v15, 3  ;;  %v3211_v39 = vperm.slane %v3146_v15, 4 }
 0x131   : > { %v3216_v41 = vperm.slane %v3146_v15, 5  ;;  %v3219_v42 = vperm.slane %v3146_v15, 6  ;;  %v3223_v44 = vperm.slane %v3146_v15, 7  ;;  %v686_v45 = vsel %vm682_vm3, 1.0, %v2843_v20 }
 0x132   : > { %v3233_v46 = vsel %vm695_vm4, 1.0, %v2843_v20  ;;  %v3240_v49 = vadd.f32 %v686_v45, %v677_v34 }
 0x133   : > { %v648_v16 = vpop.f32.mrf.mxu0 }
 0x134   : > { %v3197_v35 = vadd.f32 %v648_v16, %v3136_v10 }
 0x136   : > { %v3238_v48 = vperm.slane %v3197_v35, 0  ;;  %v3244_v51 = vperm.slane %v3197_v35, 1  ;;  %vm657_vm10 = vcmp.gt.f32.partialorder %v3149_v17, %v3197_v35  ;;  %vm670_vm11 = vcmp.gt.f32.partialorder %v3152_v18, %v3197_v35 }
 0x137   : > { %v3253_v53 = vperm.slane %v3197_v35, 2  ;;  %v3256_v54 = vperm.slane %v3197_v35, 3  ;;  %v3260_v56 = vperm.slane %v3197_v35, 4  ;;  %v3263_v57 = vperm.slane %v3197_v35, 5 }
 0x138   : > { %vm683_vm13 = vcmp.gt.f32.partialorder %v3159_v19, %v3197_v35  ;;  %v661_v59 = vsel %vm657_vm10, 1.0, %v2843_v20  ;;  %v674_v60 = vsel %vm670_vm11, 1.0, %v2843_v20  ;;  %v3273_v62 = vperm.slane %v3197_v35, 6 }
 0x139   : > { %v3276_v63 = vperm.slane %v3197_v35, 7  ;;  %vm696_vm15 = vcmp.gt.f32.partialorder %v3166_v25, %v3197_v35  ;;  %v687_v1 = vsel %vm683_vm13, 1.0, %v2843_v20  ;;  %vm709_vm2 = vcmp.gt.f32.partialorder %v3169_v26, %v3197_v35 }
 0x13a   : > { %v678_v3 = vadd.f32 %v674_v60, %v661_v59  ;;  %vm722_vm3 = vcmp.gt.f32.partialorder %v3172_v27, %v3197_v35  ;;  %vm735_vm4 = vcmp.gt.f32.partialorder %v3175_v28, %v3197_v35  ;;  %v700_v9 = vsel %vm696_vm15, 1.0, %v2843_v20 }
 0x13b   : > { %v651_v24 = vpop.f32.mrf.mxu0  ;;  %v713_v16 = vsel %vm709_vm2, 1.0, %v2843_v20  ;;  %v726_v22 = vsel %vm722_vm3, 1.0, %v2843_v20 }
 0x13c   : > { %v3178_v29 = vadd.f32 %v651_v24, %v3163_v23  ;;  %v739_v24 = vsel %vm735_vm4, 1.0, %v2843_v20  ;;  %vm774_vm4 = vcmp.gt.f32.partialorder %v3187_v32, %v3197_v35 }
 0x13e   : > { %vm658_vm5 = vcmp.gt.f32.partialorder %v3149_v17, %v3178_v29  ;;  %vm671_vm6 = vcmp.gt.f32.partialorder %v3152_v18, %v3178_v29  ;;  %vm684_vm7 = vcmp.gt.f32.partialorder %v3159_v19, %v3178_v29  ;;  %vm697_vm8 = vcmp.gt.f32.partialorder %v3166_v25, %v3178_v29 }
 0x13f   : > { %v662_v36 = vsel %vm658_vm5, 1.0, %v2843_v20  ;;  %v675_v37 = vsel %vm671_vm6, 1.0, %v2843_v20  ;;  %v688_v43 = vsel %vm684_vm7, 1.0, %v2843_v20  ;;  %vm710_vm9 = vcmp.gt.f32.partialorder %v3169_v26, %v3178_v29 }
 0x140   : > { %v679_v40 = vadd.f32 %v675_v37, %v662_v36  ;;  %v701_v50 = vsel %vm697_vm8, 1.0, %v2843_v20  ;;  %vm723_vm12 = vcmp.gt.f32.partialorder %v3172_v27, %v3178_v29  ;;  %v714_v55 = vsel %vm710_vm9, 1.0, %v2843_v20 }
 0x141   : > { %vm736_vm14 = vcmp.gt.f32.partialorder %v3175_v28, %v3178_v29  ;;  %v727_v61 = vsel %vm723_vm12, 1.0, %v2843_v20  ;;  %vm749_vm1 = vcmp.gt.f32.partialorder %v3181_v30, %v3178_v29  ;;  %vm762_vm5 = vcmp.gt.f32.partialorder %v3184_v31, %v3178_v29 }
 0x142   : > { %v692_v47 = vadd.f32 %v688_v43, %v679_v40  ;;  %v740_v2 = vsel %vm736_vm14, 1.0, %v2843_v20  ;;  %vm748_vm6 = vcmp.gt.f32.partialorder %v3181_v30, %v3197_v35  ;;  %v753_v11 = vsel %vm749_vm1, 1.0, %v2843_v20 }
 0x143   : > { %vm775_vm7 = vcmp.gt.f32.partialorder %v3187_v32, %v3178_v29  ;;  %vm761_vm8 = vcmp.gt.f32.partialorder %v3184_v31, %v3197_v35  ;;  %vm788_vm9 = vcmp.gt.f32.partialorder %v3190_v33, %v3178_v29  ;;  %v766_v34 = vsel %vm762_vm5, 1.0, %v2843_v20 }
 0x144   : > { %v705_v52 = vadd.f32 %v701_v50, %v692_v47  ;;  %vm801_vm10 = vcmp.gt.f32.partialorder %v3208_v38, %v3178_v29  ;;  %v691_v36 = vadd.f32 %v687_v1, %v678_v3  ;;  %v752_v37 = vsel %vm748_vm6, 1.0, %v2843_v20 }
 0x145   : > { %v779_v43 = vsel %vm775_vm7, 1.0, %v2843_v20  ;;  %vm814_vm11 = vcmp.gt.f32.partialorder %v3211_v39, %v3178_v29  ;;  %v765_v45 = vsel %vm761_vm8, 1.0, %v2843_v20  ;;  %v792_v47 = vsel %vm788_vm9, 1.0, %v2843_v20 }
 0x146   : > { %v718_v58 = vadd.f32 %v714_v55, %v705_v52  ;;  %vm827_vm12 = vcmp.gt.f32.partialorder %v3216_v41, %v3178_v29  ;;  %vm840_vm13 = vcmp.gt.f32.partialorder %v3219_v42, %v3178_v29  ;;  %vm853_vm14 = vcmp.gt.f32.partialorder %v3223_v44, %v3178_v29 }
 0x147   : > { %v805_v52 = vsel %vm801_vm10, 1.0, %v2843_v20  ;;  %vm866_vm15 = vcmp.gt.f32.partialorder %v3238_v48, %v3178_v29  ;;  %vm879_vm1 = vcmp.gt.f32.partialorder %v3244_v51, %v3178_v29  ;;  %v818_v55 = vsel %vm814_vm11, 1.0, %v2843_v20 }
 0x148   : > { %v731_v0 = vadd.f32 %v727_v61, %v718_v58  ;;  %vm892_vm2 = vcmp.gt.f32.partialorder %v3253_v53, %v3178_v29  ;;  %vm905_vm3 = vcmp.gt.f32.partialorder %v3256_v54, %v3178_v29  ;;  %v704_v58 = vadd.f32 %v700_v9, %v691_v36 }
 0x149   : > { %v831_v60 = vsel %vm827_vm12, 1.0, %v2843_v20  ;;  %v844_v61 = vsel %vm840_vm13, 1.0, %v2843_v20  ;;  %v870_v1 = vsel %vm866_vm15, 1.0, %v2843_v20  ;;  %vm918_vm5 = vcmp.gt.f32.partialorder %v3260_v56, %v3178_v29 }
 0x14a   : > { %v744_v4 = vadd.f32 %v740_v2, %v731_v0  ;;  %v857_v0 = vsel %vm853_vm14, 1.0, %v2843_v20  ;;  %v883_v2 = vsel %vm879_vm1, 1.0, %v2843_v20  ;;  %v717_v3 = vadd.f32 %v713_v16, %v704_v58 }
 0x14b   : > { %vm787_vm6 = vcmp.gt.f32.partialorder %v3190_v33, %v3197_v35  ;;  %v896_v9 = vsel %vm892_vm2, 1.0, %v2843_v20  ;;  %vm931_vm7 = vcmp.gt.f32.partialorder %v3263_v57, %v3178_v29  ;;  %vm944_vm8 = vcmp.gt.f32.partialorder %v3273_v62, %v3178_v29 }
 0x14c   : > { %v757_v21 = vadd.f32 %v753_v11, %v744_v4  ;;  %v3343_v11 = vsel %vm905_vm3, 1.0, %v2843_v20  ;;  %v3353_v16 = vperm.slane %v3178_v29, 1  ;;  %vm800_vm9 = vcmp.gt.f32.partialorder %v3208_v38, %v3197_v35 }
 0x14d   : > { %vm957_vm10 = vcmp.gt.f32.partialorder %v3276_v63, %v3178_v29  ;;  %v3375_v58 = vsel %vm931_vm7, 1.0, %v2843_v20  ;;  %v791_v13 = vsel %vm787_vm6, 1.0, %v2843_v20  ;;  %vm839_vm6 = vcmp.gt.f32.partialorder %v3219_v42, %v3197_v35 }
 0x14e   : > { %v770_v40 = vadd.f32 %v766_v34, %v757_v21  ;;  %v3346_v21 = vperm.slane %v3178_v29, 0  ;;  %v730_v34 = vadd.f32 %v726_v22, %v717_v3  ;;  %v3372_v22 = vperm.slane %v3178_v29, 5 }
 0x14f   : > { %v3386_v3 = vsel %vm944_vm8, 1.0, %v2843_v20  ;;  %vm983_vm12 = vcmp.gt.f32.partialorder %v3353_v16, %v3178_v29  ;;  %vm708_vm7 = vcmp.gt.f32.partialorder %v3169_v26, %v3146_v15  ;;  %vm721_vm8 = vcmp.gt.f32.partialorder %v3172_v27, %v3146_v15 }
 0x150   : > { %v783_v50 = vadd.f32 %v779_v43, %v770_v40  ;;  %v3358_v40 = vsel %vm918_vm5, 1.0, %v2843_v20  ;;  %v3361_v43 = vperm.slane %v3178_v29, 2  ;;  %vm970_vm11 = vcmp.gt.f32.partialorder %v3346_v21, %v3178_v29 }
 0x151   : > { %vm1035_vm1 = vcmp.gt.f32.partialorder %v3372_v22, %v3178_v29  ;;  %vm826_vm5 = vcmp.gt.f32.partialorder %v3216_v41, %v3197_v35  ;;  %v712_v7 = vsel %vm708_vm7, 1.0, %v2843_v20  ;;  %vm956_vm7 = vcmp.gt.f32.partialorder %v3276_v63, %v3197_v35 }
 0x152   : > { %v796_v59 = vadd.f32 %v792_v47, %v783_v50  ;;  %v3364_v47 = vperm.slane %v3178_v29, 3  ;;  %v3369_v50 = vperm.slane %v3178_v29, 4  ;;  %vm996_vm13 = vcmp.gt.f32.partialorder %v3361_v43, %v3178_v29 }
 0x153   : > { %v3417_v10 = vsel %vm996_vm13, 1.0, %v2843_v20  ;;  %vm747_vm13 = vcmp.gt.f32.partialorder %v3181_v30, %v3146_v15 }
 0x154   : > { %v809_v4 = vadd.f32 %v805_v52, %v796_v59  ;;  %v743_v52 = vadd.f32 %v739_v24, %v730_v34  ;;  %v3380_v59 = vperm.slane %v3178_v29, 6  ;;  %v3391_v24 = vperm.slane %v3178_v29, 7 }
 0x155   : > { %v3394_v34 = vsel %vm957_vm10, 1.0, %v2843_v20  ;;  %vm1009_vm14 = vcmp.gt.f32.partialorder %v3364_v47, %v3178_v29  ;;  %vm1022_vm15 = vcmp.gt.f32.partialorder %v3369_v50, %v3178_v29  ;;  %vm734_vm10 = vcmp.gt.f32.partialorder %v3175_v28, %v3146_v15 }
 0x156   : > { %v822_v36 = vadd.f32 %v818_v55, %v809_v4  ;;  %vm1048_vm2 = vcmp.gt.f32.partialorder %v3380_v59, %v3178_v29  ;;  %v3420_v23 = vsel %vm1009_vm14, 1.0, %v2843_v20  ;;  %vm1061_vm3 = vcmp.gt.f32.partialorder %v3391_v24, %v3178_v29 }
 0x157   : > { %v3435_v12 = vsel %vm1048_vm2, 1.0, %v2843_v20  ;;  %vm891_vm14 = vcmp.gt.f32.partialorder %v3253_v53, %v3197_v35  ;;  %vm917_vm2 = vcmp.gt.f32.partialorder %v3260_v56, %v3197_v35 }
 0x158   : > { %v835_v55 = vadd.f32 %v831_v60, %v822_v36  ;;  %v756_v60 = vadd.f32 %v752_v37, %v743_v52  ;;  %v3401_v36 = vsel %vm970_vm11, 1.0, %v2843_v20  ;;  %v3408_v52 = vsel %vm983_vm12, 1.0, %v2843_v20 }
 0x159   : > { %vm865_vm11 = vcmp.gt.f32.partialorder %v3238_v48, %v3197_v35  ;;  %vm878_vm12 = vcmp.gt.f32.partialorder %v3244_v51, %v3197_v35 }
 0x15a   : > { %v848_v4 = vadd.f32 %v844_v61, %v835_v55  ;;  %v769_v37 = vadd.f32 %v765_v45, %v756_v60  ;;  %v778_v55 = vsel %vm774_vm4, 1.0, %v2843_v20  ;;  %v3425_v60 = vsel %vm1022_vm15, 1.0, %v2843_v20 }
 0x15b   : > { %vm813_vm4 = vcmp.gt.f32.partialorder %v3211_v39, %v3197_v35  ;;  %vm904_vm15 = vcmp.gt.f32.partialorder %v3256_v54, %v3197_v35 }
 0x15c   : > { %v861_v61 = vadd.f32 %v857_v0, %v848_v4  ;;  %v782_v45 = vadd.f32 %v778_v55, %v769_v37  ;;  %v3428_v4 = vsel %vm1035_vm1, 1.0, %v2843_v20  ;;  %v3442_v37 = vsel %vm1061_vm3, 1.0, %v2843_v20 }
 0x15d   : > { %vm760_vm1 = vcmp.gt.f32.partialorder %v3184_v31, %v3146_v15  ;;  %vm773_vm3 = vcmp.gt.f32.partialorder %v3187_v32, %v3146_v15 }
 0x15e   : > { %v874_v0 = vadd.f32 %v870_v1, %v861_v61  ;;  %v795_v8 = vadd.f32 %v791_v13, %v782_v45  ;;  %v804_v61 = vsel %vm800_vm9, 1.0, %v2843_v20  ;;  %v703_v13 = vadd.f32 %v3233_v46, %v3240_v49 }
 0x15f   : > { %v817_v45 = vsel %vm813_vm4, 1.0, %v2843_v20  ;;  %vm852_vm9 = vcmp.gt.f32.partialorder %v3223_v44, %v3197_v35  ;;  %v843_v49 = vsel %vm839_vm6, 1.0, %v2843_v20  ;;  %vm930_vm4 = vcmp.gt.f32.partialorder %v3263_v57, %v3197_v35 }
 0x160   : > { %v887_v1 = vadd.f32 %v883_v2, %v874_v0  ;;  %v808_v55 = vadd.f32 %v804_v61, %v795_v8  ;;  %v830_v0 = vsel %vm826_vm5, 1.0, %v2843_v20  ;;  %v716_v8 = vadd.f32 %v712_v7, %v703_v13 }
 0x161   : > { %vm786_vm5 = vcmp.gt.f32.partialorder %v3190_v33, %v3146_v15  ;;  %vm943_vm6 = vcmp.gt.f32.partialorder %v3273_v62, %v3197_v35 }
 0x162   : > { %v900_v2 = vadd.f32 %v896_v9, %v887_v1  ;;  %v821_v6 = vadd.f32 %v817_v45, %v808_v55  ;;  %v725_v9 = vsel %vm721_vm8, 1.0, %v2843_v20  ;;  %v856_v55 = vsel %vm852_vm9, 1.0, %v2843_v20 }
 0x163   : > { %v729_v61 = vadd.f32 %v725_v9, %v716_v8  ;;  %v869_v45 = vsel %vm865_vm11, 1.0, %v2843_v20  ;;  %v895_v9 = vsel %vm891_vm14, 1.0, %v2843_v20  ;;  %vm799_vm8 = vcmp.gt.f32.partialorder %v3208_v38, %v3146_v15 }
 0x164   : > { %v913_v46 = vadd.f32 %v3343_v11, %v900_v2  ;;  %v834_v1 = vadd.f32 %v830_v0, %v821_v6  ;;  %v738_v11 = vsel %vm734_vm10, 1.0, %v2843_v20  ;;  %v751_v0 = vsel %vm747_vm13, 1.0, %v2843_v20 }
 0x165   : > { %v742_v6 = vadd.f32 %v738_v11, %v729_v61  ;;  %v921_v11 = vsel %vm917_vm2, 1.0, %v2843_v20  ;;  %vm969_vm9 = vcmp.gt.f32.partialorder %v3346_v21, %v3197_v35  ;;  %vm812_vm10 = vcmp.gt.f32.partialorder %v3211_v39, %v3146_v15 }
 0x166   : > { %v926_v7 = vadd.f32 %v3358_v40, %v913_v46  ;;  %v847_v13 = vadd.f32 %v843_v49, %v834_v1  ;;  %v882_v40 = vsel %vm878_vm12, 1.0, %v2843_v20  ;;  %v764_v1 = vsel %vm760_vm1, 1.0, %v2843_v20 }
 0x167   : > { %v755_v46 = vadd.f32 %v751_v0, %v742_v6  ;;  %vm982_vm11 = vcmp.gt.f32.partialorder %v3353_v16, %v3197_v35  ;;  %vm825_vm12 = vcmp.gt.f32.partialorder %v3216_v41, %v3146_v15  ;;  %vm995_vm13 = vcmp.gt.f32.partialorder %v3361_v43, %v3197_v35 }
 0x168   : > { %v939_v2 = vadd.f32 %v3375_v58, %v926_v7  ;;  %v860_v8 = vadd.f32 %v856_v55, %v847_v13  ;;  %v908_v58 = vsel %vm904_vm15, 1.0, %v2843_v20  ;;  %vm1008_vm14 = vcmp.gt.f32.partialorder %v3364_v47, %v3197_v35 }
 0x169   : > { %v768_v7 = vadd.f32 %v764_v1, %v755_v46  ;;  %vm1021_vm15 = vcmp.gt.f32.partialorder %v3369_v50, %v3197_v35  ;;  %vm838_vm1 = vcmp.gt.f32.partialorder %v3219_v42, %v3146_v15  ;;  %vm851_vm2 = vcmp.gt.f32.partialorder %v3223_v44, %v3146_v15 }
 0x16a   : > { %v952_v49 = vadd.f32 %v3386_v3, %v939_v2  ;;  %v873_v61 = vadd.f32 %v869_v45, %v860_v8  ;;  %v777_v3 = vsel %vm773_vm3, 1.0, %v2843_v20  ;;  %v934_v45 = vsel %vm930_vm4, 1.0, %v2843_v20 }
 0x16b   : > { %v781_v6 = vadd.f32 %v777_v3, %v768_v7  ;;  %v947_v8 = vsel %vm943_vm6, 1.0, %v2843_v20  ;;  %vm655_vm3 = vcmp.gt.f32.partialorder %v3149_v17, %v3143_v14  ;;  %vm864_vm4 = vcmp.gt.f32.partialorder %v3238_v48, %v3146_v15 }
 0x16c   : > { %v965_v55 = vadd.f32 %v3394_v34, %v952_v49  ;;  %v886_v13 = vadd.f32 %v882_v40, %v873_v61  ;;  %v790_v34 = vsel %vm786_vm5, 1.0, %v2843_v20  ;;  %v960_v49 = vsel %vm956_vm7, 1.0, %v2843_v20 }
 0x16d   : > { %v794_v40 = vadd.f32 %v790_v34, %v781_v6  ;;  %v973_v61 = vsel %vm969_vm9, 1.0, %v2843_v20  ;;  %vm668_vm5 = vcmp.gt.f32.partialorder %v3152_v18, %v3143_v14  ;;  %vm681_vm6 = vcmp.gt.f32.partialorder %v3159_v19, %v3143_v14 }
 0x16e   : > { %v978_v2 = vadd.f32 %v3401_v36, %v965_v55  ;;  %v899_v0 = vadd.f32 %v895_v9, %v886_v13  ;;  %v803_v36 = vsel %vm799_vm8, 1.0, %v2843_v20  ;;  %v829_v13 = vsel %vm825_vm12, 1.0, %v2843_v20 }
 0x16f   : > { %v807_v7 = vadd.f32 %v803_v36, %v794_v40  ;;  %v1025_v40 = vsel %vm1021_vm15, 1.0, %v2843_v20  ;;  %vm1034_vm7 = vcmp.gt.f32.partialorder %v3372_v22, %v3197_v35  ;;  %vm877_vm8 = vcmp.gt.f32.partialorder %v3244_v51, %v3146_v15 }
 0x170   : > { %v991_v46 = vadd.f32 %v3408_v52, %v978_v2  ;;  %v912_v1 = vadd.f32 %v908_v58, %v899_v0  ;;  %v816_v52 = vsel %vm812_vm10, 1.0, %v2843_v20  ;;  %v999_v2 = vsel %vm995_vm13, 1.0, %v2843_v20 }
 0x171   : > { %v820_v58 = vadd.f32 %v816_v52, %v807_v7  ;;  %v659_v7 = vsel %vm655_vm3, 1.0, %v2843_v20  ;;  %vm694_vm9 = vcmp.gt.f32.partialorder %v3166_v25, %v3143_v14  ;;  %vm890_vm10 = vcmp.gt.f32.partialorder %v3253_v53, %v3146_v15 }
 0x172   : > { %v1004_v9 = vadd.f32 %v3417_v10, %v991_v46  ;;  %v925_v55 = vadd.f32 %v921_v11, %v912_v1  ;;  %v986_v10 = vsel %vm982_vm11, 1.0, %v2843_v20  ;;  %v1012_v11 = vsel %vm1008_vm14, 1.0, %v2843_v20 }
 0x173   : > { %v833_v34 = vadd.f32 %v829_v13, %v820_v58  ;;  %v842_v46 = vsel %vm838_vm1, 1.0, %v2843_v20  ;;  %v855_v1 = vsel %vm851_vm2, 1.0, %v2843_v20  ;;  %v881_v58 = vsel %vm877_vm8, 1.0, %v2843_v20 }
 0x174   : > { %v1017_v3 = vadd.f32 %v3420_v23, %v1004_v9  ;;  %v938_v6 = vadd.f32 %v934_v45, %v925_v55  ;;  %v868_v9 = vsel %vm864_vm4, 1.0, %v2843_v20  ;;  %vm707_vm11 = vcmp.gt.f32.partialorder %v3169_v26, %v3143_v14 }
 0x175   : > { %v846_v36 = vadd.f32 %v842_v46, %v833_v34  ;;  %vm903_vm12 = vcmp.gt.f32.partialorder %v3256_v54, %v3146_v15  ;;  %v698_v25 = vsel %vm694_vm9, 1.0, %v2843_v20  ;;  %vm720_vm14 = vcmp.gt.f32.partialorder %v3172_v27, %v3143_v14 }
 0x176   : > { %v1030_v0 = vadd.f32 %v3425_v60, %v1017_v3  ;;  %v951_v23 = vadd.f32 %v947_v8, %v938_v6  ;;  %v672_v8 = vsel %vm668_vm5, 1.0, %v2843_v20  ;;  %vm916_vm15 = vcmp.gt.f32.partialorder %v3260_v56, %v3146_v15 }
 0x177   : > { %v859_v17 = vadd.f32 %v855_v1, %v846_v36  ;;  %v676_v52 = vadd.f32 %v672_v8, %v659_v7  ;;  %vm1047_vm1 = vcmp.gt.f32.partialorder %v3380_v59, %v3197_v35  ;;  %v907_v34 = vsel %vm903_vm12, 1.0, %v2843_v20 }
 0x178   : > { %v1043_v45 = vadd.f32 %v3428_v4, %v1030_v0  ;;  %v964_v60 = vadd.f32 %v960_v49, %v951_v23  ;;  %v685_v49 = vsel %vm681_vm6, 1.0, %v2843_v20  ;;  %vm733_vm2 = vcmp.gt.f32.partialorder %v3175_v28, %v3143_v14 }
 0x179   : > { %v872_v19 = vadd.f32 %v868_v9, %v859_v17  ;;  %v689_v3 = vadd.f32 %v685_v49, %v676_v52  ;;  %vm929_vm3 = vcmp.gt.f32.partialorder %v3263_v57, %v3146_v15  ;;  %vm1060_vm4 = vcmp.gt.f32.partialorder %v3391_v24, %v3197_v35 }
 0x17a   : > { %v1056_v4 = vadd.f32 %v3435_v12, %v1043_v45  ;;  %v977_v18 = vadd.f32 %v973_v61, %v964_v60  ;;  %v894_v61 = vsel %vm890_vm10, 1.0, %v2843_v20  ;;  %vm746_vm5 = vcmp.gt.f32.partialorder %v3181_v30, %v3143_v14 }
 0x17b   : > { %v885_v13 = vadd.f32 %v881_v58, %v872_v19  ;;  %v702_v6 = vadd.f32 %v698_v25, %v689_v3  ;;  %vm942_vm6 = vcmp.gt.f32.partialorder %v3273_v62, %v3146_v15  ;;  %v737_v28 = vsel %vm733_vm2, 1.0, %v2843_v20 }
 0x17c   : > { %v1069_v55 = vadd.f32 %v3442_v37, %v1056_v4  ;;  %v990_v12 = vadd.f32 %v986_v10, %v977_v18  ;;  %v711_v10 = vsel %vm707_vm11, 1.0, %v2843_v20  ;;  %v933_v45 = vsel %vm929_vm3, 1.0, %v2843_v20 }
 0x17d   : > { %v898_v26 = vadd.f32 %v894_v61, %v885_v13  ;;  %v715_v0 = vadd.f32 %v711_v10, %v702_v6  ;;  %vm759_vm8 = vcmp.gt.f32.partialorder %v3184_v31, %v3143_v14  ;;  %vm955_vm9 = vcmp.gt.f32.partialorder %v3276_v63, %v3146_v15 }
 0x17e   : > { %vm1073_vm13 = vcmp.lt.f32.partialorder %v1069_v55, 19.0  ;;  %v1003_v37 = vadd.f32 %v999_v2, %v990_v12  ;;  %v920_v2 = vsel %vm916_vm15, 1.0, %v2843_v20  ;;  %v1051_v17 = vsel %vm1047_vm1, 1.0, %v2843_v20 }
 0x17f   : > { %2437 = vmatpush.msk.msra.mxu3 %vm1073_vm13, %v3178_v29  ;;  %2442 = vmatpush.msk.msra.mxu2 %vm1073_vm13, %v3178_v29  ;;  %v911_v46 = vadd.f32 %v907_v34, %v898_v26  ;;  %v724_v29 = vsel %vm720_vm14, 1.0, %v2843_v20  ;;  %v946_v8 = vsel %vm942_vm6, 1.0, %v2843_v20  ;;  %vm968_vm10 = vcmp.gt.f32.partialorder %v3346_v21, %v3146_v15 }
 0x180   : > { %v1016_v27 = vadd.f32 %v1012_v11, %v1003_v37  ;;  %v728_v23 = vadd.f32 %v724_v29, %v715_v0  ;;  %v1038_v11 = vsel %vm1034_vm7, 1.0, %v2843_v20  ;;  %vm772_vm7 = vcmp.gt.f32.partialorder %v3187_v32, %v3143_v14 }
 0x181   : > { %v924_v1 = vadd.f32 %v920_v2, %v911_v46  ;;  %v763_v52 = vsel %vm759_vm8, 1.0, %v2843_v20  ;;  %v1064_v18 = vsel %vm1060_vm4, 1.0, %v2843_v20  ;;  %v959_v19 = vsel %vm955_vm9, 1.0, %v2843_v20 }
 0x182   : > { %v1029_v36 = vadd.f32 %v1025_v40, %v1016_v27  ;;  %v741_v7 = vadd.f32 %v737_v28, %v728_v23  ;;  %v750_v40 = vsel %vm746_vm5, 1.0, %v2843_v20  ;;  %vm785_vm11 = vcmp.gt.f32.partialorder %v3190_v33, %v3143_v14 }
 0x183   : > { %v937_v30 = vadd.f32 %v933_v45, %v924_v1  ;;  %vm981_vm12 = vcmp.gt.f32.partialorder %v3353_v16, %v3146_v15  ;;  %v776_v58 = vsel %vm772_vm7, 1.0, %v2843_v20  ;;  %v972_v3 = vsel %vm968_vm10, 1.0, %v2843_v20 }
 0x184   : > { %v1042_v60 = vadd.f32 %v1038_v11, %v1029_v36  ;;  %v754_v4 = vadd.f32 %v750_v40, %v741_v7  ;;  %vm798_vm13 = vcmp.gt.f32.partialorder %v3208_v38, %v3143_v14  ;;  %vm994_vm15 = vcmp.gt.f32.partialorder %v3361_v43, %v3146_v15 }
 0x185   : > { %v950_v31 = vadd.f32 %v946_v8, %v937_v30  ;;  %v789_v33 = vsel %vm785_vm11, 1.0, %v2843_v20  ;;  %v985_v25 = vsel %vm981_vm12, 1.0, %v2843_v20  ;;  %vm811_vm1 = vcmp.gt.f32.partialorder %v3211_v39, %v3143_v14 }
 0x186   : > { %v1055_v9 = vadd.f32 %v1051_v17, %v1042_v60  ;;  %v767_v49 = vadd.f32 %v763_v52, %v754_v4  ;;  %vm1007_vm2 = vcmp.gt.f32.partialorder %v3364_v47, %v3146_v15  ;;  %v802_v38 = vsel %vm798_vm13, 1.0, %v2843_v20 }
 0x187   : > { %v963_v32 = vadd.f32 %v959_v19, %v950_v31  ;;  %v998_v37 = vsel %vm994_vm15, 1.0, %v2843_v20  ;;  %vm824_vm3 = vcmp.gt.f32.partialorder %v3216_v41, %v3143_v14  ;;  %vm1020_vm4 = vcmp.gt.f32.partialorder %v3369_v50, %v3146_v15 }
 0x188   : > { %v1068_v55 = vadd.f32 %v1064_v18, %v1055_v9  ;;  %v780_v12 = vadd.f32 %v776_v58, %v767_v49  ;;  %v1011_v39 = vsel %vm1007_vm2, 1.0, %v2843_v20  ;;  %vm837_vm5 = vcmp.gt.f32.partialorder %v3219_v42, %v3143_v14 }
 0x189   : > { %v976_v13 = vadd.f32 %v972_v3, %v963_v32  ;;  %vm1033_vm6 = vcmp.gt.f32.partialorder %v3372_v22, %v3146_v15  ;;  %v828_v27 = vsel %vm824_vm3, 1.0, %v2843_v20  ;;  %v1024_v41 = vsel %vm1020_vm4, 1.0, %v2843_v20 }
 0x18a   : > { %vm1072_vm14 = vcmp.lt.f32.partialorder %v1068_v55, 19.0  ;;  %v793_v61 = vadd.f32 %v789_v33, %v780_v12  ;;  %vm850_vm8 = vcmp.gt.f32.partialorder %v3223_v44, %v3143_v14  ;;  %vm1046_vm9 = vcmp.gt.f32.partialorder %v3380_v59, %v3146_v15  ;;  %v3720_v33 = vld [vmem:[%s5059_s6] sm:$0xff] }
 0x18b   : > { %2438 = vmatpush.msk.msra.mxu3 %vm1072_vm14, %v3197_v35  ;;  %2443 = vmatpush.msk.msra.mxu2 %vm1072_vm14, %v3197_v35  ;;  %v989_v6 = vadd.f32 %v985_v25, %v976_v13  ;;  %v815_v35 = vsel %vm811_vm1, 1.0, %v2843_v20  ;;  %v841_v2 = vsel %vm837_vm5, 1.0, %v2843_v20  ;;  %v1037_v42 = vsel %vm1033_vm6, 1.0, %v2843_v20 }
 0x18c   : > { %v806_v26 = vadd.f32 %v802_v38, %v793_v61  ;;  %vm863_vm7 = vcmp.gt.f32.partialorder %v3238_v48, %v3143_v14  ;;  %vm1059_vm10 = vcmp.gt.f32.partialorder %v3391_v24, %v3146_v15  ;;  %v854_v1 = vsel %vm850_vm8, 1.0, %v2843_v20 }
 0x18d   : > { %v1002_v10 = vadd.f32 %v998_v37, %v989_v6  ;;  %v1050_v44 = vsel %vm1046_vm9, 1.0, %v2843_v20  ;;  %vm876_vm11 = vcmp.gt.f32.partialorder %v3244_v51, %v3143_v14  ;;  %v867_v45 = vsel %vm863_vm7, 1.0, %v2843_v20  ;;  %v551_v51 = vld [vmem:[%s5060_s7] sm:$0xff]  ;;  %v3730_v37 = vld [vmem:[%s3072_s12] sm:$0xff] }
 0x18e   : > { %v819_v34 = vadd.f32 %v815_v35, %v806_v26  ;;  %v1063_v7 = vsel %vm1059_vm10, 1.0, %v2843_v20  ;;  %vm889_vm12 = vcmp.gt.f32.partialorder %v3253_v53, %v3143_v14  ;;  %v880_v30 = vsel %vm876_vm11, 1.0, %v2843_v20  ;;  %554 = vperm.xlu2 %2559, %v551_v51   ;;  %5129 = vst [vmem:[#allocation33_spill] sm:$0xff] %v3730_v37 }
 0x18f   : > { %v1015_v0 = vadd.f32 %v1011_v39, %v1002_v10  ;;  %vm902_vm13 = vcmp.gt.f32.partialorder %v3256_v54, %v3143_v14  ;;  %v893_v17 = vsel %vm889_vm12, 1.0, %v2843_v20  ;;  %vm915_vm15 = vcmp.gt.f32.partialorder %v3260_v56, %v3143_v14  ;;  %v3734_v10 = vld [vmem:[%s3072_s12 + $0x8] sm:$0xff] }
 0x190   : > { %v832_v46 = vadd.f32 %v828_v27, %v819_v34  ;;  %v906_v8 = vsel %vm902_vm13, 1.0, %v2843_v20  ;;  %vm928_vm1 = vcmp.gt.f32.partialorder %v3263_v57, %v3143_v14  ;;  %v919_v54 = vsel %vm915_vm15, 1.0, %v2843_v20  ;;  %5130 = vst [vmem:[#allocation34_spill] sm:$0xff] %v3734_v10  ;;  %v3738_v34 = vld [vmem:[%s3072_s12 + $0x10] sm:$0xff] }
 0x191   : > { %v1028_v29 = vadd.f32 %v1024_v41, %v1015_v0  ;;  %vm941_vm2 = vcmp.gt.f32.partialorder %v3273_v62, %v3143_v14  ;;  %v932_v31 = vsel %vm928_vm1, 1.0, %v2843_v20  ;;  %vm954_vm3 = vcmp.gt.f32.partialorder %v3276_v63, %v3143_v14  ;;  %5131 = vst [vmem:[#allocation35_spill] sm:$0xff] %v3738_v34 }
 0x192   : > { %v845_v23 = vadd.f32 %v841_v2, %v832_v46  ;;  %vm967_vm4 = vcmp.gt.f32.partialorder %v3346_v21, %v3143_v14  ;;  %v958_v57 = vsel %vm954_vm3, 1.0, %v2843_v20  ;;  %vm980_vm5 = vcmp.gt.f32.partialorder %v3353_v16, %v3143_v14  ;;  %v3742_v46 = vld [vmem:[%s3072_s12 + $0x18] sm:$0xff] }
 0x193   : > { %v1041_v36 = vadd.f32 %v1037_v42, %v1028_v29  ;;  %v971_v62 = vsel %vm967_vm4, 1.0, %v2843_v20  ;;  %vm993_vm6 = vcmp.gt.f32.partialorder %v3361_v43, %v3143_v14  ;;  %v984_v63 = vsel %vm980_vm5, 1.0, %v2843_v20  ;;  %5132 = vst [vmem:[#allocation36_spill] sm:$0xff] %v3742_v46  ;;  %v3746_v42 = vld [vmem:[%s3072_s12 + $0x20] sm:$0xff] }
 0x194   : > { %v858_v28 = vadd.f32 %v854_v1, %v845_v23  ;;  %vm1006_vm8 = vcmp.gt.f32.partialorder %v3364_v47, %v3143_v14  ;;  %v997_v21 = vsel %vm993_vm6, 1.0, %v2843_v20  ;;  %vm1019_vm9 = vcmp.gt.f32.partialorder %v3369_v50, %v3143_v14  ;;  %5133 = vst [vmem:[#allocation37_spill] sm:$0xff] %v3746_v42 }
 0x195   : > { %v1054_v11 = vadd.f32 %v1050_v44, %v1041_v36  ;;  %v1010_v16 = vsel %vm1006_vm8, 1.0, %v2843_v20  ;;  %vm1032_vm7 = vcmp.gt.f32.partialorder %v3372_v22, %v3143_v14  ;;  %v1023_v43 = vsel %vm1019_vm9, 1.0, %v2843_v20 }
 0x196   : > { %v871_v60 = vadd.f32 %v867_v45, %v858_v28  ;;  %vm1045_vm10 = vcmp.gt.f32.partialorder %v3380_v59, %v3143_v14  ;;  %v1036_v47 = vsel %vm1032_vm7, 1.0, %v2843_v20  ;;  %vm1058_vm11 = vcmp.gt.f32.partialorder %v3391_v24, %v3143_v14  ;;  %v3750_v28 = vld [vmem:[%s3072_s12 + $0x28] sm:$0xff] }
 0x197   : > { %v1067_v48 = vadd.f32 %v1063_v7, %v1054_v11  ;;  %v1049_v50 = vsel %vm1045_vm10, 1.0, %v2843_v20  ;;  %v1062_v13 = vsel %vm1058_vm11, 1.0, %v2843_v20  ;;  %vm1078_vm12 = vcmask 261120   ;;  %5134 = vst [vmem:[#allocation38_spill] sm:$0xff] %v3750_v28 }
 0x198   : > { %v884_v40 = vadd.f32 %v880_v30, %v871_v60  ;;  %v3755_v60 = vld [vmem:[%s3072_s12 + $0x30] sm:$0xff] }
 0x199   : > { %vm1071_vm14 = vcmp.lt.f32.partialorder %v1067_v48, 19.0  ;;  %5135 = vst [vmem:[#allocation39_spill] sm:$0xff] %v3755_v60 }
 0x19a   : > { %2439 = vmatpush.msk.msra.mxu3 %vm1071_vm14, %v3146_v15  ;;  %2444 = vmatpush.msk.msra.mxu2 %vm1071_vm14, %v3146_v15  ;;  %v897_v53 = vadd.f32 %v893_v17, %v884_v40  ;;  %v945_v15 = vsel %vm941_vm2, 1.0, %v2843_v20  ;;  %v3759_v40 = vld [vmem:[%s3072_s12 + $0x38] sm:$0xff] }
 0x19b   : > { %5136 = vst [vmem:[#allocation40_spill] sm:$0xff] %v3759_v40 }
 0x19c   : > { %v910_v4 = vadd.f32 %v906_v8, %v897_v53  ;;  %v3766_v53 = vld [vmem:[%s3062_s11] sm:$0xff] }
 0x19d   : > { %5137 = vst [vmem:[#allocation41_spill] sm:$0xff] %v3766_v53 }
 0x19e   : > { %v923_v9 = vadd.f32 %v919_v54, %v910_v4 }
 0x1a0   : > { %v936_v52 = vadd.f32 %v932_v31, %v923_v9 }
 0x1a2   : > { %v949_v56 = vadd.f32 %v945_v15, %v936_v52 }
 0x1a4   : > { %v962_v18 = vadd.f32 %v958_v57, %v949_v56 }
 0x1a6   : > { %v975_v19 = vadd.f32 %v971_v62, %v962_v18 }
 0x1a8   : > { %v988_v49 = vadd.f32 %v984_v63, %v975_v19 }
 0x1aa   : > { %v1001_v55 = vadd.f32 %v997_v21, %v988_v49 }
 0x1ac   : > { %v1014_v32 = vadd.f32 %v1010_v16, %v1001_v55 }
 0x1ae   : > { %v1027_v58 = vadd.f32 %v1023_v43, %v1014_v32 }
 0x1b0   : > { %v1040_v3 = vadd.f32 %v1036_v47, %v1027_v58 }
 0x1b2   : > { %v1053_v12 = vadd.f32 %v1049_v50, %v1040_v3 }
 0x1b4   : > { %v1066_v22 = vadd.f32 %v1062_v13, %v1053_v12 }
 0x1b6   : > { %vm1070_vm13 = vcmp.lt.f32.partialorder %v1066_v22, 19.0 }
 0x1b7   : > { %2440 = vmatpush.msk.msra.mxu3 %vm1070_vm13, %v3143_v14  ;;  %2445 = vmatpush.msk.msra.mxu2 %vm1070_vm13, %v3143_v14 }
 0x1b8   : > { %2441 = vmatmul.msk.f32.vlgmr.msra.gmra.mxu3 %vm1078_vm12, %v3720_v33 }
 0x1e8   : > { %v3726_v59 = vpop.permute.xlu2 %554 }
 0x1e9   : > { %5128 = vst [vmem:[#allocation32_spill] sm:$0xff] %v3726_v59 }
 0x23b   : > { %v1099_v24 = vpop.f32.mrf.mxu3 }
 0x23c   : > { %v1100_v25 = vadd.f32 %v1099_v24, %v3726_v59 }
 0x23e   : > { %v1103_v61 = vperm.slane %v1100_v25, 0  ;;  %v1105_v6 = vperm.slane %v1100_v25, 1  ;;  %v1108_v38 = vperm.slane %v1100_v25, 2  ;;  %v1111_v35 = vperm.slane %v1100_v25, 3  ;;  %1102 = vst [vmem:[%s3762_s26] sm:$0xff] %v1100_v25 }
 0x23f   : > { %v1114_v27 = vperm.slane %v1100_v25, 4  ;;  %v1117_v2 = vperm.slane %v1100_v25, 5  ;;  %v1120_v36 = vperm.slane %v1100_v25, 6  ;;  %v1123_v45 = vperm.slane %v1100_v25, 7 }
 0x240   : > { %v1104_v26 = vmul.f32 %v3730_v37, %v1103_v61  ;;  %v1106_v14 = vmul.f32 %v3734_v10, %v1105_v6  ;;  %v1109_v0 = vmul.f32 %v3738_v34, %v1108_v38  ;;  %v1112_v29 = vmul.f32 %v3742_v46, %v1111_v35  ;;  %v5139_v61 = vld [vmem:[#allocation26_spill] sm:$0xff]  ;;  %v5140_v6 = vld [vmem:[#allocation27_spill] sm:$0xff] }
 0x241   : > { %v1115_v23 = vmul.f32 %v3746_v42, %v1114_v27  ;;  %v1118_v11 = vmul.f32 %v3750_v28, %v1117_v2  ;;  %v1121_v48 = vmul.f32 %v3755_v60, %v1120_v36  ;;  %v1124_v51 = vmul.f32 %v3759_v40, %v1123_v45 }
 0x242   : > { %v1107_v39 = vadd.f32 %v1106_v14, %v1104_v26  ;;  %v1126_v8 = vadd.f32 %v3766_v53, %v1100_v25  ;;  %v5138_v25 = vld [vmem:[#allocation25_spill] sm:$0xff] }
 0x243   : > { %v5141_v14 = vld [vmem:[#allocation29_spill] sm:$0xff] }
 0x244   : > { %v1110_v41 = vadd.f32 %v1109_v0, %v1107_v39  ;;  %v5142_v0 = vld [vmem:[#allocation30_spill] sm:$0xff] }
 0x246   : > { %v1113_v1 = vadd.f32 %v1112_v29, %v1110_v41 }
 0x248   : > { %v1116_v44 = vadd.f32 %v1115_v23, %v1113_v1  ;;  %v5143_v1 = vld [vmem:[#allocation31_spill] sm:$0xff] }
 0x24a   : > { %v1119_v7 = vadd.f32 %v1118_v11, %v1116_v44 }
 0x24c   : > { %v1122_v30 = vadd.f32 %v1121_v48, %v1119_v7 }
 0x24e   : > { %v1125_v17 = vadd.f32 %v1124_v51, %v1122_v30 }
 0x250   : > { %v1127_v4 = vsub.f32 %v1126_v8, %v1125_v17 }
 0x252   : > { %v1128_v54 = vperm.slane %v1127_v4, 0  ;;  %v1130_v9 = vperm.slane %v1127_v4, 1  ;;  %v1133_v31 = vperm.slane %v1127_v4, 2  ;;  %v1136_v56 = vperm.slane %v1127_v4, 3 }
 0x253   : > { %v1139_v62 = vperm.slane %v1127_v4, 4  ;;  %v1142_v49 = vperm.slane %v1127_v4, 5  ;;  %v1145_v16 = vperm.slane %v1127_v4, 6  ;;  %v1148_v58 = vperm.slane %v1127_v4, 7 }
 0x254   : > { %v1129_v52 = vmul.f32 %v3730_v37, %v1128_v54  ;;  %v1131_v15 = vmul.f32 %v3734_v10, %v1130_v9  ;;  %v1134_v18 = vmul.f32 %v3738_v34, %v1133_v31  ;;  %v1137_v63 = vmul.f32 %v3742_v46, %v1136_v56  ;;  %v5144_v31 = vld [vmem:[#allocation28_spill] sm:$0xff] }
 0x255   : > { %v1140_v55 = vmul.f32 %v3746_v42, %v1139_v62  ;;  %v1143_v43 = vmul.f32 %v3750_v28, %v1142_v49  ;;  %v1146_v3 = vmul.f32 %v3755_v60, %v1145_v16  ;;  %v1149_v12 = vmul.f32 %v3759_v40, %v1148_v58 }
 0x256   : > { %v1132_v57 = vadd.f32 %v1131_v15, %v1129_v52  ;;  %v1151_v22 = vadd.f32 %v3766_v53, %v1127_v4 }
 0x258   : > { %v1135_v19 = vadd.f32 %v1134_v18, %v1132_v57 }
 0x25a   : > { %v1138_v21 = vadd.f32 %v1137_v63, %v1135_v19 }
 0x25c   : > { %v1141_v32 = vadd.f32 %v1140_v55, %v1138_v21 }
 0x25e   : > { %v1144_v47 = vadd.f32 %v1143_v43, %v1141_v32 }
 0x260   : > { %v1147_v50 = vadd.f32 %v1146_v3, %v1144_v47 }
 0x262   : > { %v1150_v13 = vadd.f32 %v1149_v12, %v1147_v50 }
 0x264   : > { %v1152_v24 = vsub.f32 %v1151_v22, %v1150_v13 }
 0x266   : > { %1168 = vmatpush.msra.mxu2 %v1152_v24 }
 0x267   : > { %2446 = vmatmul.msk.f32.vlgmr.msra.gmra.mxu2 %vm612_vm0, %v3111_v5 }
 0x26f   : > { %2447 = vmatmul.msk.f32.gmra.mxu2 %vm612_vm0, %v5138_v25 }
 0x277   : > { %2448 = vmatmul.msk.f32.gmra.mxu2 %vm612_vm0, %v5139_v61 }
 0x27f   : > { %2449 = vmatmul.msk.f32.gmra.mxu2 %vm612_vm0, %v5140_v6 }
 0x2ea   : > { %v1170_v38 = vpop.f32.mrf.mxu2 }
 0x2eb   : > { %v3787_v35 = vadd.f32 %v1170_v38, %v5141_v14 }
 0x2ed   : > { %v3793_v5 = vperm.slane %v3787_v35, 0  ;;  %v3796_v41 = vperm.slane %v3787_v35, 1  ;;  %v3803_v2 = vperm.slane %v3787_v35, 2  ;;  %v3806_v23 = vperm.slane %v3787_v35, 3 }
 0x2ee   : > { %v3809_v36 = vperm.slane %v3787_v35, 4  ;;  %v3815_v11 = vperm.slane %v3787_v35, 5  ;;  %v3820_v48 = vperm.slane %v3787_v35, 6  ;;  %v3823_v30 = vperm.slane %v3787_v35, 7 }
 0x2f2   : > { %v1173_v26 = vpop.f32.mrf.mxu2 }
 0x2f3   : > { %v3790_v27 = vadd.f32 %v1173_v26, %v5142_v0 }
 0x2f5   : > { %vm1184_vm14 = vcmp.gt.f32.partialorder %v3793_v5, %v3790_v27  ;;  %vm1197_vm15 = vcmp.gt.f32.partialorder %v3796_v41, %v3790_v27  ;;  %v3826_v51 = vperm.slane %v3790_v27, 0  ;;  %v3829_v17 = vperm.slane %v3790_v27, 1 }
 0x2f6   : > { %v1188_v45 = vsel %vm1184_vm14, 1.0, %v2843_v20  ;;  %v1201_v7 = vsel %vm1197_vm15, 1.0, %v2843_v20  ;;  %v3838_v8 = vperm.slane %v3790_v27, 2  ;;  %vm1210_vm4 = vcmp.gt.f32.partialorder %v3803_v2, %v3790_v27 }
 0x2f7   : > { %v1205_v9 = vadd.f32 %v1201_v7, %v1188_v45  ;;  %vm1223_vm6 = vcmp.gt.f32.partialorder %v3806_v23, %v3790_v27  ;;  %v3853_v57 = vperm.slane %v3790_v27, 3  ;;  %v3856_v18 = vperm.slane %v3790_v27, 4 }
 0x2f8   : > { %v3859_v62 = vperm.slane %v3790_v27, 5  ;;  %v3864_v63 = vperm.slane %v3790_v27, 6  ;;  %v1214_v49 = vsel %vm1210_vm4, 1.0, %v2843_v20  ;;  %v3869_v55 = vperm.slane %v3790_v27, 7 }
 0x2f9   : > { %v3871_v16 = vadd.f32 %v1214_v49, %v1205_v9  ;;  %v3874_v32 = vsel %vm1223_vm6, 1.0, %v2843_v20 }
 0x2fa   : > { %v1176_v39 = vpop.f32.mrf.mxu2 }
 0x2fb   : > { %v3845_v52 = vadd.f32 %v1176_v39, %v5144_v31  ;;  %v1231_v37 = vadd.f32 %v3874_v32, %v3871_v16 }
 0x2fd   : > { %v3879_v58 = vperm.slane %v3845_v52, 0  ;;  %vm1185_vm7 = vcmp.gt.f32.partialorder %v3793_v5, %v3845_v52  ;;  %v3885_v3 = vperm.slane %v3845_v52, 1  ;;  %v3888_v50 = vperm.slane %v3845_v52, 2 }
 0x2fe   : > { %vm1198_vm10 = vcmp.gt.f32.partialorder %v3796_v41, %v3845_v52  ;;  %v3895_v13 = vperm.slane %v3845_v52, 3  ;;  %v3898_v22 = vperm.slane %v3845_v52, 4  ;;  %v1189_v25 = vsel %vm1185_vm7, 1.0, %v2843_v20 }
 0x2ff   : > { %vm1211_vm13 = vcmp.gt.f32.partialorder %v3803_v2, %v3845_v52  ;;  %vm1224_vm14 = vcmp.gt.f32.partialorder %v3806_v23, %v3845_v52  ;;  %v1202_v6 = vsel %vm1198_vm10, 1.0, %v2843_v20  ;;  %v3913_v26 = vperm.slane %v3845_v52, 5 }
 0x300   : > { %v3916_v39 = vperm.slane %v3845_v52, 6  ;;  %v3923_v45 = vperm.slane %v3845_v52, 7  ;;  %v1215_v7 = vsel %vm1211_vm13, 1.0, %v2843_v20  ;;  %v1228_v9 = vsel %vm1224_vm14, 1.0, %v2843_v20 }
 0x301   : > { %vm1276_vm14 = vcmp.gt.f32.partialorder %v3823_v30, %v3845_v52 }
 0x302   : > { %v1179_v29 = vpop.f32.mrf.mxu2 }
 0x303   : > { %v3812_v44 = vadd.f32 %v1179_v29, %v5143_v1 }
 0x305   : > { %vm1186_vm1 = vcmp.gt.f32.partialorder %v3793_v5, %v3812_v44  ;;  %vm1199_vm2 = vcmp.gt.f32.partialorder %v3796_v41, %v3812_v44  ;;  %vm1212_vm3 = vcmp.gt.f32.partialorder %v3803_v2, %v3812_v44  ;;  %vm1225_vm5 = vcmp.gt.f32.partialorder %v3806_v23, %v3812_v44 }
 0x306   : > { %v1190_v4 = vsel %vm1186_vm1, 1.0, %v2843_v20  ;;  %v1203_v54 = vsel %vm1199_vm2, 1.0, %v2843_v20  ;;  %v1216_v56 = vsel %vm1212_vm3, 1.0, %v2843_v20  ;;  %vm1238_vm8 = vcmp.gt.f32.partialorder %v3809_v36, %v3812_v44 }
 0x307   : > { %v1207_v15 = vadd.f32 %v1203_v54, %v1190_v4  ;;  %v1229_v21 = vsel %vm1225_vm5, 1.0, %v2843_v20  ;;  %vm1251_vm9 = vcmp.gt.f32.partialorder %v3815_v11, %v3812_v44  ;;  %v1242_v47 = vsel %vm1238_vm8, 1.0, %v2843_v20 }
 0x308   : > { %vm1264_vm11 = vcmp.gt.f32.partialorder %v3820_v48, %v3812_v44  ;;  %v1255_v24 = vsel %vm1251_vm9, 1.0, %v2843_v20  ;;  %vm1277_vm15 = vcmp.gt.f32.partialorder %v3823_v30, %v3812_v44  ;;  %vm1237_vm1 = vcmp.gt.f32.partialorder %v3809_v36, %v3845_v52 }
 0x309   : > { %v1220_v19 = vadd.f32 %v1216_v56, %v1207_v15  ;;  %v1268_v38 = vsel %vm1264_vm11, 1.0, %v2843_v20  ;;  %vm1250_vm2 = vcmp.gt.f32.partialorder %v3815_v11, %v3845_v52  ;;  %vm1290_vm3 = vcmp.gt.f32.partialorder %v3826_v51, %v3812_v44 }
 0x30a   : > { %v1281_v4 = vsel %vm1277_vm15, 1.0, %v2843_v20  ;;  %v1206_v54 = vadd.f32 %v1202_v6, %v1189_v25  ;;  %v1241_v15 = vsel %vm1237_vm1, 1.0, %v2843_v20  ;;  %vm1303_vm4 = vcmp.gt.f32.partialorder %v3829_v17, %v3812_v44 }
 0x30b   : > { %v1233_v43 = vadd.f32 %v1229_v21, %v1220_v19  ;;  %vm1316_vm5 = vcmp.gt.f32.partialorder %v3838_v8, %v3812_v44  ;;  %v1254_v19 = vsel %vm1250_vm2, 1.0, %v2843_v20  ;;  %v1294_v49 = vsel %vm1290_vm3, 1.0, %v2843_v20 }
 0x30c   : > { %vm1329_vm6 = vcmp.gt.f32.partialorder %v3853_v57, %v3812_v44  ;;  %vm1342_vm8 = vcmp.gt.f32.partialorder %v3856_v18, %v3812_v44  ;;  %vm1263_vm9 = vcmp.gt.f32.partialorder %v3820_v48, %v3845_v52  ;;  %vm1355_vm7 = vcmp.gt.f32.partialorder %v3859_v62, %v3812_v44 }
 0x30d   : > { %v1246_v12 = vadd.f32 %v1242_v47, %v1233_v43  ;;  %vm1368_vm10 = vcmp.gt.f32.partialorder %v3864_v63, %v3812_v44  ;;  %vm1381_vm11 = vcmp.gt.f32.partialorder %v3869_v55, %v3812_v44  ;;  %v1307_v43 = vsel %vm1303_vm4, 1.0, %v2843_v20 }
 0x30e   : > { %v1320_v47 = vsel %vm1316_vm5, 1.0, %v2843_v20  ;;  %vm1394_vm13 = vcmp.gt.f32.partialorder %v3879_v58, %v3812_v44  ;;  %v1346_v25 = vsel %vm1342_vm8, 1.0, %v2843_v20  ;;  %vm1407_vm15 = vcmp.gt.f32.partialorder %v3885_v3, %v3812_v44 }
 0x30f   : > { %v1259_v61 = vadd.f32 %v1255_v24, %v1246_v12  ;;  %v1333_v24 = vsel %vm1329_vm6, 1.0, %v2843_v20  ;;  %v1372_v6 = vsel %vm1368_vm10, 1.0, %v2843_v20  ;;  %vm1420_vm1 = vcmp.gt.f32.partialorder %v3888_v50, %v3812_v44 }
 0x310   : > { %vm1433_vm2 = vcmp.gt.f32.partialorder %v3895_v13, %v3812_v44  ;;  %vm1446_vm3 = vcmp.gt.f32.partialorder %v3898_v22, %v3812_v44  ;;  %vm1459_vm4 = vcmp.gt.f32.partialorder %v3913_v26, %v3812_v44  ;;  %vm1472_vm5 = vcmp.gt.f32.partialorder %v3916_v39, %v3812_v44 }
 0x311   : > { %v1272_v29 = vadd.f32 %v1268_v38, %v1259_v61  ;;  %v1359_v61 = vsel %vm1355_vm7, 1.0, %v2843_v20  ;;  %v1385_v38 = vsel %vm1381_vm11, 1.0, %v2843_v20  ;;  %vm1485_vm6 = vcmp.gt.f32.partialorder %v3923_v45, %v3812_v44 }
 0x312   : > { %v3990_v1 = vsel %vm1472_vm5, 1.0, %v2843_v20  ;;  %v3993_v0 = vsel %vm1485_vm6, 1.0, %v2843_v20  ;;  %v3996_v14 = vperm.slane %v3812_v44, 3  ;;  %vm1289_vm11 = vcmp.gt.f32.partialorder %v3826_v51, %v3845_v52 }
 0x313   : > { %v1285_v56 = vadd.f32 %v1281_v4, %v1272_v29  ;;  %v1219_v29 = vadd.f32 %v1215_v7, %v1206_v54  ;;  %v3975_v7 = vperm.slane %v3812_v44, 0  ;;  %v1424_v54 = vsel %vm1420_vm1, 1.0, %v2843_v20 }
 0x314   : > { %v1293_v28 = vsel %vm1289_vm11, 1.0, %v2843_v20  ;;  %vm1341_vm5 = vcmp.gt.f32.partialorder %v3856_v18, %v3845_v52  ;;  %vm1354_vm6 = vcmp.gt.f32.partialorder %v3859_v62, %v3845_v52  ;;  %vm1380_vm11 = vcmp.gt.f32.partialorder %v3869_v55, %v3845_v52 }
 0x315   : > { %v1298_v21 = vadd.f32 %v1294_v49, %v1285_v56  ;;  %v1398_v56 = vsel %vm1394_vm13, 1.0, %v2843_v20  ;;  %v1411_v49 = vsel %vm1407_vm15, 1.0, %v2843_v20  ;;  %vm1498_vm8 = vcmp.gt.f32.partialorder %v3975_v7, %v3812_v44 }
 0x316   : > { %vm1537_vm13 = vcmp.gt.f32.partialorder %v3996_v14, %v3812_v44  ;;  %vm1315_vm15 = vcmp.gt.f32.partialorder %v3838_v8, %v3845_v52  ;;  %v1345_v34 = vsel %vm1341_vm5, 1.0, %v2843_v20  ;;  %vm1445_vm5 = vcmp.gt.f32.partialorder %v3898_v22, %v3845_v52 }
 0x317   : > { %v1311_v12 = vadd.f32 %v1307_v43, %v1298_v21  ;;  %v1232_v21 = vadd.f32 %v1228_v9, %v1219_v29  ;;  %v1450_v29 = vsel %vm1446_vm3, 1.0, %v2843_v20 }
 0x319   : > { %v1324_v4 = vadd.f32 %v1320_v47, %v1311_v12  ;;  %v3979_v47 = vperm.slane %v3812_v44, 1  ;;  %v3982_v12 = vperm.slane %v3812_v44, 2  ;;  %v1245_v31 = vadd.f32 %v1241_v15, %v1232_v21 }
 0x31a   : > { %v4001_v15 = vperm.slane %v3812_v44, 4 }
 0x31b   : > { %v1337_v43 = vadd.f32 %v1333_v24, %v1324_v4  ;;  %v1437_v24 = vsel %vm1433_vm2, 1.0, %v2843_v20  ;;  %v3987_v4 = vsel %vm1459_vm4, 1.0, %v2843_v20  ;;  %v1258_v53 = vadd.f32 %v1254_v19, %v1245_v31 }
 0x31c   : > { %vm1511_vm7 = vcmp.gt.f32.partialorder %v3979_v47, %v3812_v44  ;;  %vm1524_vm10 = vcmp.gt.f32.partialorder %v3982_v12, %v3812_v44  ;;  %v4014_v19 = vperm.slane %v3812_v44, 5  ;;  %vm1328_vm4 = vcmp.gt.f32.partialorder %v3853_v57, %v3845_v52 }
 0x31d   : > { %v1350_v9 = vadd.f32 %v1346_v25, %v1337_v43  ;;  %v1267_v25 = vsel %vm1263_vm9, 1.0, %v2843_v20  ;;  %v1280_v43 = vsel %vm1276_vm14, 1.0, %v2843_v20  ;;  %vm1302_vm9 = vcmp.gt.f32.partialorder %v3829_v17, %v3845_v52 }
 0x31e   : > { %v1271_v21 = vadd.f32 %v1267_v25, %v1258_v53  ;;  %v4027_v53 = vperm.slane %v3812_v44, 7  ;;  %v4035_v60 = vsel %vm1524_vm10, 1.0, %v2843_v20  ;;  %vm1550_vm14 = vcmp.gt.f32.partialorder %v4001_v15, %v3812_v44 }
 0x31f   : > { %v1363_v40 = vadd.f32 %v1359_v61, %v1350_v9  ;;  %v4017_v61 = vperm.slane %v3812_v44, 6  ;;  %v4024_v9 = vsel %vm1498_vm8, 1.0, %v2843_v20  ;;  %vm1563_vm1 = vcmp.gt.f32.partialorder %v4014_v19, %v3812_v44 }
 0x320   : > { %v1284_v25 = vadd.f32 %v1280_v43, %v1271_v21  ;;  %vm1589_vm3 = vcmp.gt.f32.partialorder %v4027_v53, %v3812_v44  ;;  %v4059_v43 = vsel %vm1550_vm14, 1.0, %v2843_v20  ;;  %vm1367_vm8 = vcmp.gt.f32.partialorder %v3864_v63, %v3845_v52 }
 0x321   : > { %v1376_v31 = vadd.f32 %v1372_v6, %v1363_v40  ;;  %v4032_v6 = vsel %vm1511_vm7, 1.0, %v2843_v20  ;;  %vm1576_vm2 = vcmp.gt.f32.partialorder %v4017_v61, %v3812_v44  ;;  %vm1236_vm7 = vcmp.gt.f32.partialorder %v3809_v36, %v3790_v27 }
 0x322   : > { %v1297_v42 = vadd.f32 %v1293_v28, %v1284_v25  ;;  %v1319_v25 = vsel %vm1315_vm15, 1.0, %v2843_v20  ;;  %vm1249_vm10 = vcmp.gt.f32.partialorder %v3815_v11, %v3790_v27  ;;  %v1371_v32 = vsel %vm1367_vm8, 1.0, %v2843_v20 }
 0x323   : > { %v1389_v40 = vadd.f32 %v1385_v38, %v1376_v31  ;;  %v1306_v38 = vsel %vm1302_vm9, 1.0, %v2843_v20  ;;  %vm1262_vm9 = vcmp.gt.f32.partialorder %v3820_v48, %v3790_v27  ;;  %vm1406_vm14 = vcmp.gt.f32.partialorder %v3885_v3, %v3845_v52 }
 0x324   : > { %v1310_v31 = vadd.f32 %v1306_v38, %v1297_v42  ;;  %v4066_v42 = vsel %vm1576_vm2, 1.0, %v2843_v20  ;;  %vm1275_vm15 = vcmp.gt.f32.partialorder %v3823_v30, %v3790_v27  ;;  %vm1432_vm2 = vcmp.gt.f32.partialorder %v3895_v13, %v3845_v52 }
 0x325   : > { %v1402_v21 = vadd.f32 %v1398_v56, %v1389_v40  ;;  %v4056_v56 = vsel %vm1537_vm13, 1.0, %v2843_v20  ;;  %v4063_v40 = vsel %vm1563_vm1, 1.0, %v2843_v20  ;;  %vm1393_vm13 = vcmp.gt.f32.partialorder %v3879_v58, %v3845_v52 }
 0x326   : > { %v1323_v38 = vadd.f32 %v1319_v25, %v1310_v31  ;;  %vm1419_vm1 = vcmp.gt.f32.partialorder %v3888_v50, %v3845_v52  ;;  %vm1314_vm8 = vcmp.gt.f32.partialorder %v3838_v8, %v3790_v27 }
 0x327   : > { %v1415_v28 = vadd.f32 %v1411_v49, %v1402_v21  ;;  %v4071_v49 = vsel %vm1589_vm3, 1.0, %v2843_v20  ;;  %v1332_v21 = vsel %vm1328_vm4, 1.0, %v2843_v20  ;;  %vm1288_vm3 = vcmp.gt.f32.partialorder %v3826_v51, %v3790_v27 }
 0x328   : > { %v1336_v10 = vadd.f32 %v1332_v21, %v1323_v38  ;;  %vm1301_vm4 = vcmp.gt.f32.partialorder %v3829_v17, %v3790_v27 }
 0x329   : > { %v1428_v46 = vadd.f32 %v1424_v54, %v1415_v28  ;;  %v1358_v54 = vsel %vm1354_vm6, 1.0, %v2843_v20  ;;  %v1240_v28 = vsel %vm1236_vm7, 1.0, %v2843_v20  ;;  %vm1458_vm6 = vcmp.gt.f32.partialorder %v3913_v26, %v3845_v52 }
 0x32a   : > { %v1349_v25 = vadd.f32 %v1345_v34, %v1336_v10  ;;  %v1244_v38 = vadd.f32 %v1240_v28, %v1231_v37  ;;  %v1384_v34 = vsel %vm1380_vm11, 1.0, %v2843_v20  ;;  %v1397_v28 = vsel %vm1393_vm13, 1.0, %v2843_v20 }
 0x32b   : > { %v1441_v31 = vadd.f32 %v1437_v24, %v1428_v46  ;;  %v1253_v46 = vsel %vm1249_vm10, 1.0, %v2843_v20  ;;  %vm1471_vm7 = vcmp.gt.f32.partialorder %v3916_v39, %v3845_v52  ;;  %vm1484_vm10 = vcmp.gt.f32.partialorder %v3923_v45, %v3845_v52 }
 0x32c   : > { %v1362_v24 = vadd.f32 %v1358_v54, %v1349_v25  ;;  %v1257_v10 = vadd.f32 %v1253_v46, %v1244_v38  ;;  %v1279_v25 = vsel %vm1275_vm15, 1.0, %v2843_v20  ;;  %vm1497_vm11 = vcmp.gt.f32.partialorder %v3975_v7, %v3845_v52 }
 0x32d   : > { %v1454_v16 = vadd.f32 %v1450_v29, %v1441_v31  ;;  %v1266_v29 = vsel %vm1262_vm9, 1.0, %v2843_v20  ;;  %vm1327_vm9 = vcmp.gt.f32.partialorder %v3853_v57, %v3790_v27  ;;  %vm1340_vm13 = vcmp.gt.f32.partialorder %v3856_v18, %v3790_v27 }
 0x32e   : > { %v1375_v21 = vadd.f32 %v1371_v32, %v1362_v24  ;;  %v1270_v31 = vadd.f32 %v1266_v29, %v1257_v10  ;;  %v1436_v24 = vsel %vm1432_vm2, 1.0, %v2843_v20  ;;  %vm1353_vm15 = vcmp.gt.f32.partialorder %v3859_v62, %v3790_v27 }
 0x32f   : > { %v1467_v37 = vadd.f32 %v3987_v4, %v1454_v16  ;;  %v1410_v4 = vsel %vm1406_vm14, 1.0, %v2843_v20  ;;  %v1423_v16 = vsel %vm1419_vm1, 1.0, %v2843_v20  ;;  %vm1510_vm14 = vcmp.gt.f32.partialorder %v3979_v47, %v3845_v52 }
 0x330   : > { %v1388_v38 = vadd.f32 %v1384_v34, %v1375_v21  ;;  %v1283_v46 = vadd.f32 %v1279_v25, %v1270_v31  ;;  %vm1523_vm1 = vcmp.gt.f32.partialorder %v3982_v12, %v3845_v52  ;;  %vm1536_vm2 = vcmp.gt.f32.partialorder %v3996_v14, %v3845_v52 }
 0x331   : > { %v1480_v54 = vadd.f32 %v3990_v1, %v1467_v37  ;;  %v1292_v1 = vsel %vm1288_vm3, 1.0, %v2843_v20  ;;  %vm1549_vm3 = vcmp.gt.f32.partialorder %v4001_v15, %v3845_v52 }
 0x332   : > { %v1401_v10 = vadd.f32 %v1397_v28, %v1388_v38  ;;  %v1296_v37 = vadd.f32 %v1292_v1, %v1283_v46  ;;  %v1318_v28 = vsel %vm1314_vm8, 1.0, %v2843_v20  ;;  %v1475_v38 = vsel %vm1471_vm7, 1.0, %v2843_v20 }
 0x333   : > { %v1493_v32 = vadd.f32 %v3993_v0, %v1480_v54  ;;  %v1305_v0 = vsel %vm1301_vm4, 1.0, %v2843_v20  ;;  %v1462_v54 = vsel %vm1458_vm6, 1.0, %v2843_v20  ;;  %v1501_v1 = vsel %vm1497_vm11, 1.0, %v2843_v20 }
 0x334   : > { %v1414_v29 = vadd.f32 %v1410_v4, %v1401_v10  ;;  %v1309_v21 = vadd.f32 %v1305_v0, %v1296_v37  ;;  %vm1366_vm4 = vcmp.gt.f32.partialorder %v3864_v63, %v3790_v27  ;;  %vm1392_vm6 = vcmp.gt.f32.partialorder %v3879_v58, %v3790_v27 }
 0x335   : > { %v1506_v34 = vadd.f32 %v4024_v9, %v1493_v32  ;;  %v1449_v9 = vsel %vm1445_vm5, 1.0, %v2843_v20  ;;  %v1488_v32 = vsel %vm1484_vm10, 1.0, %v2843_v20  ;;  %vm1379_vm5 = vcmp.gt.f32.partialorder %v3869_v55, %v3790_v27 }
 0x336   : > { %v1427_v25 = vadd.f32 %v1423_v16, %v1414_v29  ;;  %v1322_v46 = vadd.f32 %v1318_v28, %v1309_v21  ;;  %v1357_v29 = vsel %vm1353_vm15, 1.0, %v2843_v20  ;;  %vm1405_vm8 = vcmp.gt.f32.partialorder %v3885_v3, %v3790_v27 }
 0x337   : > { %v1519_v31 = vadd.f32 %v4032_v6, %v1506_v34  ;;  %v1331_v6 = vsel %vm1327_vm9, 1.0, %v2843_v20  ;;  %vm1183_vm7 = vcmp.gt.f32.partialorder %v3793_v5, %v3787_v35  ;;  %vm1196_vm10 = vcmp.gt.f32.partialorder %v3796_v41, %v3787_v35 }
 0x338   : > { %v1440_v10 = vadd.f32 %v1436_v24, %v1427_v25  ;;  %v1335_v37 = vadd.f32 %v1331_v6, %v1322_v46  ;;  %v1553_v46 = vsel %vm1549_vm3, 1.0, %v2843_v20  ;;  %vm1209_vm11 = vcmp.gt.f32.partialorder %v3803_v2, %v3787_v35 }
 0x339   : > { %v1532_v4 = vadd.f32 %v4035_v60, %v1519_v31  ;;  %v1344_v60 = vsel %vm1340_vm13, 1.0, %v2843_v20  ;;  %v1527_v31 = vsel %vm1523_vm1, 1.0, %v2843_v20  ;;  %vm1222_vm9 = vcmp.gt.f32.partialorder %v3806_v23, %v3787_v35 }
 0x33a   : > { %v1453_v34 = vadd.f32 %v1449_v9, %v1440_v10  ;;  %v1348_v24 = vadd.f32 %v1344_v60, %v1335_v37  ;;  %v1540_v9 = vsel %vm1536_vm2, 1.0, %v2843_v20  ;;  %v1383_v10 = vsel %vm1379_vm5, 1.0, %v2843_v20 }
 0x33b   : > { %v1545_v16 = vadd.f32 %v4056_v56, %v1532_v4  ;;  %v1514_v56 = vsel %vm1510_vm14, 1.0, %v2843_v20  ;;  %v1370_v4 = vsel %vm1366_vm4, 1.0, %v2843_v20  ;;  %vm1418_vm13 = vcmp.gt.f32.partialorder %v3888_v50, %v3790_v27 }
 0x33c   : > { %v1466_v21 = vadd.f32 %v1462_v54, %v1453_v34  ;;  %v1361_v28 = vadd.f32 %v1357_v29, %v1348_v24  ;;  %v1396_v34 = vsel %vm1392_vm6, 1.0, %v2843_v20  ;;  %v1213_v41 = vsel %vm1209_vm11, 1.0, %v2843_v20 }
 0x33d   : > { %v1558_v0 = vadd.f32 %v4059_v43, %v1545_v16  ;;  %v1200_v16 = vsel %vm1196_vm10, 1.0, %v2843_v20  ;;  %v1409_v2 = vsel %vm1405_vm8, 1.0, %v2843_v20  ;;  %vm1235_vm15 = vcmp.gt.f32.partialorder %v3809_v36, %v3787_v35 }
 0x33e   : > { %v1479_v43 = vadd.f32 %v1475_v38, %v1466_v21  ;;  %v1374_v6 = vadd.f32 %v1370_v4, %v1361_v28  ;;  %v1187_v38 = vsel %vm1183_vm7, 1.0, %v2843_v20  ;;  %vm1431_vm1 = vcmp.gt.f32.partialorder %v3895_v13, %v3790_v27 }
 0x33f   : > { %v1571_v25 = vadd.f32 %v4063_v40, %v1558_v0  ;;  %vm1562_vm2 = vcmp.gt.f32.partialorder %v4014_v19, %v3845_v52  ;;  %v1422_v0 = vsel %vm1418_vm13, 1.0, %v2843_v20  ;;  %vm1248_vm3 = vcmp.gt.f32.partialorder %v3815_v11, %v3787_v35 }
 0x340   : > { %v1492_v40 = vadd.f32 %v1488_v32, %v1479_v43  ;;  %v1387_v37 = vadd.f32 %v1383_v10, %v1374_v6  ;;  %vm1444_vm4 = vcmp.gt.f32.partialorder %v3898_v22, %v3790_v27  ;;  %vm1575_vm5 = vcmp.gt.f32.partialorder %v4017_v61, %v3845_v52 }
 0x341   : > { %v1584_v54 = vadd.f32 %v4066_v42, %v1571_v25  ;;  %v1204_v42 = vadd.f32 %v1200_v16, %v1187_v38  ;;  %vm1261_vm6 = vcmp.gt.f32.partialorder %v3820_v48, %v3787_v35  ;;  %vm1457_vm8 = vcmp.gt.f32.partialorder %v3913_v26, %v3790_v27 }
 0x342   : > { %v1505_v5 = vadd.f32 %v1501_v1, %v1492_v40  ;;  %v1400_v24 = vadd.f32 %v1396_v34, %v1387_v37  ;;  %v1226_v1 = vsel %vm1222_vm9, 1.0, %v2843_v20  ;;  %v1252_v11 = vsel %vm1248_vm3, 1.0, %v2843_v20 }
 0x343   : > { %v1597_v60 = vadd.f32 %v4071_v49, %v1584_v54  ;;  %v1217_v49 = vadd.f32 %v1213_v41, %v1204_v42  ;;  %v1448_v43 = vsel %vm1444_vm4, 1.0, %v2843_v20  ;;  %vm1274_vm7 = vcmp.gt.f32.partialorder %v3823_v30, %v3787_v35 }
 0x344   : > { %v1518_v23 = vadd.f32 %v1514_v56, %v1505_v5  ;;  %v1413_v32 = vadd.f32 %v1409_v2, %v1400_v24  ;;  %v1435_v56 = vsel %vm1431_vm1, 1.0, %v2843_v20  ;;  %vm1470_vm10 = vcmp.gt.f32.partialorder %v3916_v39, %v3790_v27 }
 0x345   : > { %vm1601_vm14 = vcmp.lt.f32.partialorder %v1597_v60, 19.0  ;;  %v1230_v29 = vadd.f32 %v1226_v1, %v1217_v49  ;;  %vm1588_vm11 = vcmp.gt.f32.partialorder %v4027_v53, %v3845_v52  ;;  %v1461_v54 = vsel %vm1457_vm8, 1.0, %v2843_v20 }
 0x346   : > { %2450 = vmatpush.msk.msrb.mxu3 %vm1601_vm14, %v3812_v44  ;;  %2456 = vmatpush.msk.msra.mxu1 %vm1601_vm14, %v3812_v44  ;;  %v1531_v36 = vadd.f32 %v1527_v31, %v1518_v23  ;;  %v1426_v21 = vadd.f32 %v1422_v0, %v1413_v32  ;;  %v1239_v44 = vsel %vm1235_vm15, 1.0, %v2843_v20  ;;  %v1566_v31 = vsel %vm1562_vm2, 1.0, %v2843_v20 }
 0x347   : > { %v1243_v28 = vadd.f32 %v1239_v44, %v1230_v29  ;;  %vm1287_vm9 = vcmp.gt.f32.partialorder %v3826_v51, %v3787_v35  ;;  %vm1483_vm13 = vcmp.gt.f32.partialorder %v3923_v45, %v3790_v27  ;;  %v1278_v30 = vsel %vm1274_vm7, 1.0, %v2843_v20 }
 0x348   : > { %v1544_v25 = vadd.f32 %v1540_v9, %v1531_v36  ;;  %v1439_v4 = vadd.f32 %v1435_v56, %v1426_v21  ;;  %v1265_v9 = vsel %vm1261_vm6, 1.0, %v2843_v20  ;;  %v1474_v16 = vsel %vm1470_vm10, 1.0, %v2843_v20 }
 0x349   : > { %v1256_v6 = vadd.f32 %v1252_v11, %v1243_v28  ;;  %vm1300_vm14 = vcmp.gt.f32.partialorder %v3829_v17, %v3787_v35  ;;  %vm1496_vm15 = vcmp.gt.f32.partialorder %v3975_v7, %v3790_v27  ;;  %v1291_v42 = vsel %vm1287_vm9, 1.0, %v2843_v20 }
 0x34a   : > { %v1557_v10 = vadd.f32 %v1553_v46, %v1544_v25  ;;  %v1452_v48 = vadd.f32 %v1448_v43, %v1439_v4  ;;  %v1579_v46 = vsel %vm1575_vm5, 1.0, %v2843_v20  ;;  %v1592_v5 = vsel %vm1588_vm11, 1.0, %v2843_v20 }
 0x34b   : > { %v1269_v40 = vadd.f32 %v1265_v9, %v1256_v6  ;;  %v1487_v24 = vsel %vm1483_vm13, 1.0, %v2843_v20  ;;  %vm1313_vm1 = vcmp.gt.f32.partialorder %v3838_v8, %v3787_v35  ;;  %vm1509_vm2 = vcmp.gt.f32.partialorder %v3979_v47, %v3790_v27 }
 0x34c   : > { %v1570_v37 = vadd.f32 %v1566_v31, %v1557_v10  ;;  %v1465_v38 = vadd.f32 %v1461_v54, %v1452_v48  ;;  %v1304_v49 = vsel %vm1300_vm14, 1.0, %v2843_v20  ;;  %v1500_v23 = vsel %vm1496_vm15, 1.0, %v2843_v20 }
 0x34d   : > { %v1282_v60 = vadd.f32 %v1278_v30, %v1269_v40  ;;  %vm1326_vm3 = vcmp.gt.f32.partialorder %v3853_v57, %v3787_v35  ;;  %vm1522_vm5 = vcmp.gt.f32.partialorder %v3982_v12, %v3790_v27  ;;  %v1317_v8 = vsel %vm1313_vm1, 1.0, %v2843_v20 }
 0x34e   : > { %v1583_v34 = vadd.f32 %v1579_v46, %v1570_v37  ;;  %v1478_v51 = vadd.f32 %v1474_v16, %v1465_v38  ;;  %v1513_v0 = vsel %vm1509_vm2, 1.0, %v2843_v20  ;;  %vm1339_vm6 = vcmp.gt.f32.partialorder %v3856_v18, %v3787_v35 }
 0x34f   : > { %v1295_v41 = vadd.f32 %v1291_v42, %v1282_v60  ;;  %vm1535_vm8 = vcmp.gt.f32.partialorder %v3996_v14, %v3790_v27  ;;  %v1330_v57 = vsel %vm1326_vm3, 1.0, %v2843_v20  ;;  %v1526_v21 = vsel %vm1522_vm5, 1.0, %v2843_v20 }
 0x350   : > { %v1596_v2 = vadd.f32 %v1592_v5, %v1583_v34  ;;  %v1491_v17 = vadd.f32 %v1487_v24, %v1478_v51  ;;  %vm1352_vm7 = vcmp.gt.f32.partialorder %v3859_v62, %v3787_v35  ;;  %vm1548_vm10 = vcmp.gt.f32.partialorder %v4001_v15, %v3790_v27 }
 0x351   : > { %v1308_v32 = vadd.f32 %v1304_v49, %v1295_v41  ;;  %v1539_v18 = vsel %vm1535_vm8, 1.0, %v2843_v20  ;;  %vm1365_vm11 = vcmp.gt.f32.partialorder %v3864_v63, %v3787_v35  ;;  %vm1561_vm9 = vcmp.gt.f32.partialorder %v4014_v19, %v3790_v27 }
 0x352   : > { %vm1600_vm4 = vcmp.lt.f32.partialorder %v1596_v2, 19.0  ;;  %v1504_v1 = vadd.f32 %v1500_v23, %v1491_v17  ;;  %v1356_v4 = vsel %vm1352_vm7, 1.0, %v2843_v20  ;;  %v1552_v62 = vsel %vm1548_vm10, 1.0, %v2843_v20 }
 0x353   : > { %2451 = vmatpush.msk.msrb.mxu3 %vm1600_vm4, %v3845_v52  ;;  %2457 = vmatpush.msk.msra.mxu1 %vm1600_vm4, %v3845_v52  ;;  %v1321_v29 = vadd.f32 %v1317_v8, %v1308_v32  ;;  %v1343_v52 = vsel %vm1339_vm6, 1.0, %v2843_v20  ;;  %vm1378_vm13 = vcmp.gt.f32.partialorder %v3869_v55, %v3787_v35  ;;  %vm1574_vm14 = vcmp.gt.f32.partialorder %v4017_v61, %v3790_v27 }
 0x354   : > { %v1517_v36 = vadd.f32 %v1513_v0, %v1504_v1  ;;  %v1369_v43 = vsel %vm1365_vm11, 1.0, %v2843_v20  ;;  %v1565_v63 = vsel %vm1561_vm9, 1.0, %v2843_v20  ;;  %vm1391_vm15 = vcmp.gt.f32.partialorder %v3879_v58, %v3787_v35 }
 0x355   : > { %v1334_v44 = vadd.f32 %v1330_v57, %v1321_v29  ;;  %vm1587_vm1 = vcmp.gt.f32.partialorder %v4027_v53, %v3790_v27  ;;  %v1382_v48 = vsel %vm1378_vm13, 1.0, %v2843_v20  ;;  %v1578_v55 = vsel %vm1574_vm14, 1.0, %v2843_v20 }
 0x356   : > { %v1530_v56 = vadd.f32 %v1526_v21, %v1517_v36  ;;  %vm1404_vm2 = vcmp.gt.f32.partialorder %v3885_v3, %v3787_v35  ;;  %v1395_v40 = vsel %vm1391_vm15, 1.0, %v2843_v20  ;;  %v1591_v37 = vsel %vm1587_vm1, 1.0, %v2843_v20  ;;  %v5145_v36 = vld [vmem:[#allocation33_spill] sm:$0xff]  ;;  %v5146_v21 = vld [vmem:[#allocation34_spill] sm:$0xff] }
 0x357   : > { %v1347_v28 = vadd.f32 %v1343_v52, %v1334_v44  ;;  %vm1417_vm3 = vcmp.gt.f32.partialorder %v3888_v50, %v3787_v35  ;;  %v1408_v30 = vsel %vm1404_vm2, 1.0, %v2843_v20  ;;  %vm1430_vm4 = vcmp.gt.f32.partialorder %v3895_v13, %v3787_v35 }
 0x358   : > { %v1543_v25 = vadd.f32 %v1539_v18, %v1530_v56  ;;  %v1421_v16 = vsel %vm1417_vm3, 1.0, %v2843_v20  ;;  %vm1443_vm6 = vcmp.gt.f32.partialorder %v3898_v22, %v3787_v35  ;;  %v1434_v50 = vsel %vm1430_vm4, 1.0, %v2843_v20  ;;  %v5147_v18 = vld [vmem:[#allocation35_spill] sm:$0xff] }
 0x359   : > { %v1360_v11 = vadd.f32 %v1356_v4, %v1347_v28  ;;  %vm1456_vm8 = vcmp.gt.f32.partialorder %v3913_v26, %v3787_v35  ;;  %v1447_v34 = vsel %vm1443_vm6, 1.0, %v2843_v20  ;;  %vm1469_vm7 = vcmp.gt.f32.partialorder %v3916_v39, %v3787_v35  ;;  %v5148_v4 = vld [vmem:[#allocation36_spill] sm:$0xff] }
 0x35a   : > { %v1556_v31 = vadd.f32 %v1552_v62, %v1543_v25  ;;  %v1460_v51 = vsel %vm1456_vm8, 1.0, %v2843_v20  ;;  %vm1482_vm10 = vcmp.gt.f32.partialorder %v3923_v45, %v3787_v35  ;;  %vm1495_vm11 = vcmp.gt.f32.partialorder %v3975_v7, %v3787_v35 }
 0x35b   : > { %v1373_v6 = vadd.f32 %v1369_v43, %v1360_v11  ;;  %v1486_v26 = vsel %vm1482_vm10, 1.0, %v2843_v20  ;;  %vm1508_vm9 = vcmp.gt.f32.partialorder %v3979_v47, %v3787_v35  ;;  %v1499_v39 = vsel %vm1495_vm11, 1.0, %v2843_v20  ;;  %v5149_v11 = vld [vmem:[#allocation37_spill] sm:$0xff] }
 0x35c   : > { %v1569_v10 = vadd.f32 %v1565_v63, %v1556_v31  ;;  %vm1521_vm13 = vcmp.gt.f32.partialorder %v3982_v12, %v3787_v35  ;;  %v1512_v45 = vsel %vm1508_vm9, 1.0, %v2843_v20  ;;  %vm1534_vm14 = vcmp.gt.f32.partialorder %v3996_v14, %v3787_v35 }
 0x35d   : > { %v1386_v9 = vadd.f32 %v1382_v48, %v1373_v6  ;;  %v1525_v7 = vsel %vm1521_vm13, 1.0, %v2843_v20  ;;  %vm1547_vm15 = vcmp.gt.f32.partialorder %v4001_v15, %v3787_v35  ;;  %v1538_v47 = vsel %vm1534_vm14, 1.0, %v2843_v20 }
 0x35e   : > { %v1582_v54 = vadd.f32 %v1578_v55, %v1569_v10  ;;  %vm1560_vm1 = vcmp.gt.f32.partialorder %v4014_v19, %v3787_v35  ;;  %v1551_v12 = vsel %vm1547_vm15, 1.0, %v2843_v20  ;;  %vm1573_vm2 = vcmp.gt.f32.partialorder %v4017_v61, %v3787_v35  ;;  %v5150_v10 = vld [vmem:[#allocation38_spill] sm:$0xff] }
 0x35f   : > { %v1399_v38 = vadd.f32 %v1395_v40, %v1386_v9  ;;  %v1564_v14 = vsel %vm1560_vm1, 1.0, %v2843_v20  ;;  %vm1586_vm3 = vcmp.gt.f32.partialorder %v4027_v53, %v3787_v35  ;;  %v1577_v15 = vsel %vm1573_vm2, 1.0, %v2843_v20 }
 0x360   : > { %v1595_v58 = vadd.f32 %v1591_v37, %v1582_v54  ;;  %v1590_v1 = vsel %vm1586_vm3, 1.0, %v2843_v20  ;;  %v5151_v54 = vld [vmem:[#allocation39_spill] sm:$0xff] }
 0x361   : > { %v1412_v46 = vadd.f32 %v1408_v30, %v1399_v38  ;;  %v5152_v38 = vld [vmem:[#allocation40_spill] sm:$0xff] }
 0x362   : > { %vm1599_vm5 = vcmp.lt.f32.partialorder %v1595_v58, 19.0 }
 0x363   : > { %2452 = vmatpush.msk.msrb.mxu3 %vm1599_vm5, %v3790_v27  ;;  %2458 = vmatpush.msk.msra.mxu1 %vm1599_vm5, %v3790_v27  ;;  %v1425_v3 = vadd.f32 %v1421_v16, %v1412_v46  ;;  %v1473_v27 = vsel %vm1469_vm7, 1.0, %v2843_v20  ;;  %v5153_v46 = vld [vmem:[#allocation41_spill] sm:$0xff] }
 0x365   : > { %v1438_v60 = vadd.f32 %v1434_v50, %v1425_v3 }
 0x367   : > { %v1451_v13 = vadd.f32 %v1447_v34, %v1438_v60 }
 0x369   : > { %v1464_v42 = vadd.f32 %v1460_v51, %v1451_v13  ;;  %v2569_v13 = vld [vmem:[%s3072_s12] sm:$0xff] }
 0x36b   : > { %v1477_v22 = vadd.f32 %v1473_v27, %v1464_v42  ;;  %v2570_v42 = vld [vmem:[%s3072_s12 + $0x8] sm:$0xff] }
 0x36d   : > { %v1490_v5 = vadd.f32 %v1486_v26, %v1477_v22 }
 0x36f   : > { %v1503_v24 = vadd.f32 %v1499_v39, %v1490_v5  ;;  %v2571_v5 = vld [vmem:[%s3072_s12 + $0x10] sm:$0xff] }
 0x371   : > { %v1516_v41 = vadd.f32 %v1512_v45, %v1503_v24 }
 0x373   : > { %v1529_v2 = vadd.f32 %v1525_v7, %v1516_v41  ;;  %v2572_v41 = vld [vmem:[%s3072_s12 + $0x18] sm:$0xff] }
 0x375   : > { %v1542_v17 = vadd.f32 %v1538_v47, %v1529_v2 }
 0x377   : > { %v1555_v49 = vadd.f32 %v1551_v12, %v1542_v17  ;;  %v2573_v17 = vld [vmem:[%s3072_s12 + $0x20] sm:$0xff] }
 0x379   : > { %v1568_v23 = vadd.f32 %v1564_v14, %v1555_v49 }
 0x37b   : > { %v1581_v32 = vadd.f32 %v1577_v15, %v1568_v23  ;;  %v2574_v23 = vld [vmem:[%s3072_s12 + $0x28] sm:$0xff] }
 0x37d   : > { %v1594_v8 = vadd.f32 %v1590_v1, %v1581_v32 }
 0x37f   : > { %vm1598_vm4 = vcmp.lt.f32.partialorder %v1594_v8, 19.0  ;;  %v2575_v8 = vld [vmem:[%s3072_s12 + $0x30] sm:$0xff] }
 0x380   : > { %2453 = vmatpush.msk.msrb.mxu3 %vm1598_vm4, %v3787_v35  ;;  %2459 = vmatpush.msk.msra.mxu1 %vm1598_vm4, %v3787_v35 }
 0x381   : > { %2454 = vmatmul.msk.f32.vlgmr.msrb.gmra.mxu3 %vm1078_vm12, %v3720_v33 }
 0x404   : > { %v1623_v19 = vpop.f32.mrf.mxu3 }
 0x405   : > { %v1624_v61 = vadd.f32 %v1623_v19, %v3726_v59 }
 0x407   : > { %v1628_v0 = vperm.slane %v1624_v61, 0  ;;  %v1630_v29 = vperm.slane %v1624_v61, 1  ;;  %v1633_v53 = vperm.slane %v1624_v61, 2  ;;  %2455 = vst [vmem:[%s3762_s26 + $0x8] sm:$0xff] %v1624_v61  ;;  %v1636_v56 = vperm.slane %v1624_v61, 3 }
 0x408   : > { %v1639_v25 = vperm.slane %v1624_v61, 4  ;;  %v1642_v33 = vperm.slane %v1624_v61, 5  ;;  %v1645_v43 = vperm.slane %v1624_v61, 6  ;;  %v1648_v55 = vperm.slane %v1624_v61, 7 }
 0x409   : > { %v1629_v57 = vmul.f32 %v5145_v36, %v1628_v0  ;;  %v1631_v44 = vmul.f32 %v5146_v21, %v1630_v29  ;;  %v1634_v28 = vmul.f32 %v5147_v18, %v1633_v53  ;;  %v1637_v62 = vmul.f32 %v5148_v4, %v1636_v56  ;;  %v2576_v0 = vld [vmem:[%s3072_s12 + $0x38] sm:$0xff]  ;;  %v2581_v18 = vld [vmem:[%s5057_s4 + $0x18] sm:$0xff] }
 0x40a   : > { %v1640_v31 = vmul.f32 %v5149_v11, %v1639_v25  ;;  %v1643_v48 = vmul.f32 %v5150_v10, %v1642_v33  ;;  %v1646_v40 = vmul.f32 %v5151_v54, %v1645_v43  ;;  %v1649_v58 = vmul.f32 %v5152_v38, %v1648_v55  ;;  %v2577_v36 = vld [vmem:[%s3062_s11] sm:$0xff]  ;;  %v5156_v55 = vld [vmem:[#allocation31_spill] sm:$0xff]  ;;  %s2723_s11 = scalar_lea.hbm %s5158_s1, 64 }
 0x40b   : > { %v1632_v52 = vadd.f32 %v1631_v44, %v1629_v57  ;;  %v1651_v16 = vadd.f32 %v5153_v46, %v1624_v61  ;;  %v2578_v44 = vld [vmem:[%s5057_s4] sm:$0xff]  ;;  %v2579_v56 = vld [vmem:[%s5057_s4 + $0x8] sm:$0xff]  ;;  %p2725_p3 = scmp.lt.s32.totalorder %s2723_s11, %s2719_s19 }
 0x40c   : > { %v5155_v33 = vld [vmem:[#allocation30_spill] sm:$0xff] }
 0x40d   : > { %v1635_v35 = vadd.f32 %v1634_v28, %v1632_v52  ;;  %v2580_v52 = vld [vmem:[%s5057_s4 + $0x10] sm:$0xff]  ;;  %p2726_p4 = por %p2725_p3, %p2724_p2 }
 0x40f   : > { %v1638_v63 = vadd.f32 %v1637_v62, %v1635_v35  ;;  %v5154_v35 = vld [vmem:[#allocation29_spill] sm:$0xff]  ;;  %p2727_p5 = pnand %p2726_p4, %p2722_p1 }
 0x411   : > { %v1641_v6 = vadd.f32 %v1640_v31, %v1638_v63 }
 0x413   : > { %v1644_v9 = vadd.f32 %v1643_v48, %v1641_v6 }
 0x415   : > { %v1647_v37 = vadd.f32 %v1646_v40, %v1644_v9 }
 0x417   : > { %v1650_v30 = vadd.f32 %v1649_v58, %v1647_v37 }
 0x419   : > { %v1652_v3 = vsub.f32 %v1651_v16, %v1650_v30 }
 0x41b   : > { %v1653_v50 = vperm.slane %v1652_v3, 0  ;;  %v1655_v60 = vperm.slane %v1652_v3, 1  ;;  %v1658_v34 = vperm.slane %v1652_v3, 2  ;;  %v1661_v22 = vperm.slane %v1652_v3, 3 }
 0x41c   : > { %v1664_v24 = vperm.slane %v1652_v3, 4  ;;  %v1667_v2 = vperm.slane %v1652_v3, 5  ;;  %v1670_v49 = vperm.slane %v1652_v3, 6  ;;  %v1673_v32 = vperm.slane %v1652_v3, 7 }
 0x41d   : > { %v1654_v51 = vmul.f32 %v2569_v13, %v1653_v50  ;;  %v1656_v27 = vmul.f32 %v2570_v42, %v1655_v60  ;;  %v1659_v39 = vmul.f32 %v2571_v5, %v1658_v34  ;;  %v1662_v7 = vmul.f32 %v2572_v41, %v1661_v22  ;;  %v5157_v34 = vld [vmem:[#allocation28_spill] sm:$0xff] }
 0x41e   : > { %v1665_v12 = vmul.f32 %v2573_v17, %v1664_v24  ;;  %v1668_v15 = vmul.f32 %v2574_v23, %v1667_v2  ;;  %v1671_v19 = vmul.f32 %v2575_v8, %v1670_v49  ;;  %v1674_v29 = vmul.f32 %v2576_v0, %v1673_v32 }
 0x41f   : > { %v1657_v26 = vadd.f32 %v1656_v27, %v1654_v51  ;;  %v1676_v57 = vadd.f32 %v2577_v36, %v1652_v3 }
 0x421   : > { %v1660_v45 = vadd.f32 %v1659_v39, %v1657_v26 }
 0x423   : > { %v1663_v47 = vadd.f32 %v1662_v7, %v1660_v45 }
 0x425   : > { %v1666_v14 = vadd.f32 %v1665_v12, %v1663_v47 }
 0x427   : > { %v1669_v1 = vadd.f32 %v1668_v15, %v1666_v14 }
 0x429   : > { %v1672_v61 = vadd.f32 %v1671_v19, %v1669_v1 }
 0x42b   : > { %v1675_v53 = vadd.f32 %v1674_v29, %v1672_v61 }
 0x42d   : > { %v1677_v21 = vsub.f32 %v1676_v57, %v1675_v53 }
 0x42f   : > { %1693 = vmatpush.msra.mxu1 %v1677_v21 }
 0x430   : > { %2460 = vmatmul.msk.f32.vlgmr.msra.gmra.mxu1 %vm612_vm0, %v2578_v44 }
 0x438   : > { %2461 = vmatmul.msk.f32.gmra.mxu1 %vm612_vm0, %v2579_v56 }
 0x440   : > { %2462 = vmatmul.msk.f32.gmra.mxu1 %vm612_vm0, %v2580_v52 }
 0x448   : > { %2463 = vmatmul.msk.f32.gmra.mxu1 %vm612_vm0, %v2581_v18 }
 0x4ad   : > { %v1695_v28 = vpop.f32.mrf.mxu1 }
 0x4ae   : > { %v4382_v4 = vadd.f32 %v1695_v28, %v5154_v35 }
 0x4b0   : > { %v4388_v31 = vperm.slane %v4382_v4, 0  ;;  %v4391_v43 = vperm.slane %v4382_v4, 1  ;;  %v4398_v6 = vperm.slane %v4382_v4, 2  ;;  %v4401_v10 = vperm.slane %v4382_v4, 3 }
 0x4b1   : > { %v4404_v48 = vperm.slane %v4382_v4, 4  ;;  %v4410_v54 = vperm.slane %v4382_v4, 5  ;;  %v4415_v38 = vperm.slane %v4382_v4, 6  ;;  %v4418_v58 = vperm.slane %v4382_v4, 7 }
 0x4b5   : > { %v1698_v25 = vpop.f32.mrf.mxu1 }
 0x4b6   : > { %v4385_v11 = vadd.f32 %v1698_v25, %v5155_v33 }
 0x4b8   : > { %vm1709_vm5 = vcmp.gt.f32.partialorder %v4388_v31, %v4385_v11  ;;  %vm1722_vm0 = vcmp.gt.f32.partialorder %v4391_v43, %v4385_v11  ;;  %v4421_v30 = vperm.slane %v4385_v11, 0  ;;  %v4424_v46 = vperm.slane %v4385_v11, 1 }
 0x4b9   : > { %v1713_v40 = vsel %vm1709_vm5, 1.0, %v2843_v20  ;;  %v1726_v37 = vsel %vm1722_vm0, 1.0, %v2843_v20  ;;  %v4433_v16 = vperm.slane %v4385_v11, 2  ;;  %vm1735_vm10 = vcmp.gt.f32.partialorder %v4398_v6, %v4385_v11 }
 0x4ba   : > { %v1730_v60 = vadd.f32 %v1726_v37, %v1713_v40  ;;  %vm1748_vm9 = vcmp.gt.f32.partialorder %v4401_v10, %v4385_v11  ;;  %v4448_v27 = vperm.slane %v4385_v11, 3  ;;  %v4451_v22 = vperm.slane %v4385_v11, 4 }
 0x4bb   : > { %v4454_v26 = vperm.slane %v4385_v11, 5  ;;  %v4459_v39 = vperm.slane %v4385_v11, 6  ;;  %v1739_v24 = vsel %vm1735_vm10, 1.0, %v2843_v20  ;;  %v4464_v41 = vperm.slane %v4385_v11, 7 }
 0x4bc   : > { %v4466_v7 = vadd.f32 %v1739_v24, %v1730_v60  ;;  %v4469_v2 = vsel %vm1748_vm9, 1.0, %v2843_v20 }
 0x4bd   : > { %v1701_v62 = vpop.f32.mrf.mxu1 }
 0x4be   : > { %v4440_v13 = vadd.f32 %v1701_v62, %v5157_v34 }
 0x4c0   : > { %v4474_v17 = vperm.slane %v4440_v13, 0  ;;  %vm1710_vm15 = vcmp.gt.f32.partialorder %v4388_v31, %v4440_v13  ;;  %v4480_v49 = vperm.slane %v4440_v13, 1  ;;  %v4483_v14 = vperm.slane %v4440_v13, 2 }
 0x4c1   : > { %vm1723_vm1 = vcmp.gt.f32.partialorder %v4391_v43, %v4440_v13  ;;  %v4490_v15 = vperm.slane %v4440_v13, 3  ;;  %v4493_v32 = vperm.slane %v4440_v13, 4  ;;  %v1714_v8 = vsel %vm1710_vm15, 1.0, %v2843_v20 }
 0x4c2   : > { %vm1736_vm3 = vcmp.gt.f32.partialorder %v4398_v6, %v4440_v13  ;;  %vm1749_vm4 = vcmp.gt.f32.partialorder %v4401_v10, %v4440_v13  ;;  %v1727_v61 = vsel %vm1723_vm1, 1.0, %v2843_v20  ;;  %vm1762_vm0 = vcmp.gt.f32.partialorder %v4404_v48, %v4440_v13 }
 0x4c3   : > { %v4508_v29 = vperm.slane %v4440_v13, 5  ;;  %v4511_v53 = vperm.slane %v4440_v13, 6  ;;  %v4518_v57 = vperm.slane %v4440_v13, 7  ;;  %v1740_v21 = vsel %vm1736_vm3, 1.0, %v2843_v20 }
 0x4c4   : > { %v1731_v56 = vadd.f32 %v1727_v61, %v1714_v8  ;;  %v1753_v52 = vsel %vm1749_vm4, 1.0, %v2843_v20  ;;  %v1766_v18 = vsel %vm1762_vm0, 1.0, %v2843_v20  ;;  %vm1788_vm1 = vcmp.gt.f32.partialorder %v4415_v38, %v4440_v13 }
 0x4c5   : > { %v1704_v63 = vpop.f32.mrf.mxu1  ;;  %vm1801_vm4 = vcmp.gt.f32.partialorder %v4418_v58, %v4440_v13 }
 0x4c6   : > { %v4407_v9 = vadd.f32 %v1704_v63, %v5156_v55  ;;  %v1744_v34 = vadd.f32 %v1740_v21, %v1731_v56 }
 0x4c8   : > { %vm1711_vm6 = vcmp.gt.f32.partialorder %v4388_v31, %v4407_v9  ;;  %vm1724_vm8 = vcmp.gt.f32.partialorder %v4391_v43, %v4407_v9  ;;  %vm1737_vm7 = vcmp.gt.f32.partialorder %v4398_v6, %v4407_v9  ;;  %vm1750_vm11 = vcmp.gt.f32.partialorder %v4401_v10, %v4407_v9 }
 0x4c9   : > { %v1715_v3 = vsel %vm1711_vm6, 1.0, %v2843_v20  ;;  %v1728_v50 = vsel %vm1724_vm8, 1.0, %v2843_v20  ;;  %v1741_v42 = vsel %vm1737_vm7, 1.0, %v2843_v20  ;;  %vm1763_vm13 = vcmp.gt.f32.partialorder %v4404_v48, %v4407_v9 }
 0x4ca   : > { %v1732_v51 = vadd.f32 %v1728_v50, %v1715_v3  ;;  %v1754_v45 = vsel %vm1750_vm11, 1.0, %v2843_v20  ;;  %vm1776_vm14 = vcmp.gt.f32.partialorder %v4410_v54, %v4407_v9  ;;  %v1767_v12 = vsel %vm1763_vm13, 1.0, %v2843_v20 }
 0x4cb   : > { %vm1789_vm2 = vcmp.gt.f32.partialorder %v4415_v38, %v4407_v9  ;;  %v1780_v1 = vsel %vm1776_vm14, 1.0, %v2843_v20  ;;  %vm1802_vm5 = vcmp.gt.f32.partialorder %v4418_v58, %v4407_v9  ;;  %vm1775_vm6 = vcmp.gt.f32.partialorder %v4410_v54, %v4440_v13 }
 0x4cc   : > { %v1745_v5 = vadd.f32 %v1741_v42, %v1732_v51  ;;  %v1793_v0 = vsel %vm1789_vm2, 1.0, %v2843_v20  ;;  %vm1815_vm8 = vcmp.gt.f32.partialorder %v4421_v30, %v4407_v9  ;;  %v1806_v44 = vsel %vm1802_vm5, 1.0, %v2843_v20 }
 0x4cd   : > { %vm1828_vm7 = vcmp.gt.f32.partialorder %v4424_v46, %v4407_v9  ;;  %vm1841_vm10 = vcmp.gt.f32.partialorder %v4433_v16, %v4407_v9  ;;  %v1779_v25 = vsel %vm1775_vm6, 1.0, %v2843_v20  ;;  %v1819_v35 = vsel %vm1815_vm8, 1.0, %v2843_v20 }
 0x4ce   : > { %v1758_v47 = vadd.f32 %v1754_v45, %v1745_v5  ;;  %vm1854_vm11 = vcmp.gt.f32.partialorder %v4448_v27, %v4407_v9  ;;  %vm1867_vm9 = vcmp.gt.f32.partialorder %v4451_v22, %v4407_v9  ;;  %vm1880_vm13 = vcmp.gt.f32.partialorder %v4454_v26, %v4407_v9 }
 0x4cf   : > { %vm1893_vm14 = vcmp.gt.f32.partialorder %v4459_v39, %v4407_v9  ;;  %vm1906_vm15 = vcmp.gt.f32.partialorder %v4464_v41, %v4407_v9  ;;  %v1832_v33 = vsel %vm1828_vm7, 1.0, %v2843_v20  ;;  %v1845_v63 = vsel %vm1841_vm10, 1.0, %v2843_v20 }
 0x4d0   : > { %v1771_v23 = vadd.f32 %v1767_v12, %v1758_v47  ;;  %vm1919_vm2 = vcmp.gt.f32.partialorder %v4474_v17, %v4407_v9  ;;  %vm1932_vm3 = vcmp.gt.f32.partialorder %v4480_v49, %v4407_v9  ;;  %v1858_v40 = vsel %vm1854_vm11, 1.0, %v2843_v20 }
 0x4d1   : > { %v1871_v37 = vsel %vm1867_vm9, 1.0, %v2843_v20  ;;  %v1884_v3 = vsel %vm1880_vm13, 1.0, %v2843_v20  ;;  %v1897_v50 = vsel %vm1893_vm14, 1.0, %v2843_v20  ;;  %v1910_v60 = vsel %vm1906_vm15, 1.0, %v2843_v20 }
 0x4d2   : > { %v1784_v19 = vadd.f32 %v1780_v1, %v1771_v23  ;;  %vm1945_vm5 = vcmp.gt.f32.partialorder %v4483_v14, %v4407_v9  ;;  %v1923_v42 = vsel %vm1919_vm2, 1.0, %v2843_v20  ;;  %v1936_v5 = vsel %vm1932_vm3, 1.0, %v2843_v20 }
 0x4d3   : > { %vm1958_vm0 = vcmp.gt.f32.partialorder %v4490_v15, %v4407_v9  ;;  %vm1971_vm6 = vcmp.gt.f32.partialorder %v4493_v32, %v4407_v9  ;;  %vm1984_vm8 = vcmp.gt.f32.partialorder %v4508_v29, %v4407_v9  ;;  %vm1997_vm7 = vcmp.gt.f32.partialorder %v4511_v53, %v4407_v9 }
 0x4d4   : > { %v1797_v36 = vadd.f32 %v1793_v0, %v1784_v19  ;;  %v1757_v24 = vadd.f32 %v1753_v52, %v1744_v34  ;;  %vm2010_vm10 = vcmp.gt.f32.partialorder %v4518_v57, %v4407_v9  ;;  %v4570_v47 = vperm.slane %v4407_v9, 0 }
 0x4d5   : > { %v4573_v12 = vperm.slane %v4407_v9, 1  ;;  %v1949_v23 = vsel %vm1945_vm5, 1.0, %v2843_v20  ;;  %v1962_v1 = vsel %vm1958_vm0, 1.0, %v2843_v20  ;;  %v4578_v8 = vperm.slane %v4407_v9, 2 }
 0x4d6   : > { %v1810_v28 = vadd.f32 %v1806_v44, %v1797_v36  ;;  %v1770_v19 = vadd.f32 %v1766_v18, %v1757_v24  ;;  %v4581_v0 = vsel %vm1971_vm6, 1.0, %v2843_v20  ;;  %v4584_v36 = vsel %vm1984_vm8, 1.0, %v2843_v20 }
 0x4d7   : > { %v4587_v21 = vsel %vm1997_vm7, 1.0, %v2843_v20  ;;  %v4590_v44 = vsel %vm2010_vm10, 1.0, %v2843_v20  ;;  %v4593_v56 = vperm.slane %v4407_v9, 3  ;;  %v4596_v52 = vperm.slane %v4407_v9, 4 }
 0x4d8   : > { %v1823_v62 = vadd.f32 %v1819_v35, %v1810_v28  ;;  %v1783_v18 = vadd.f32 %v1779_v25, %v1770_v19  ;;  %vm2023_vm11 = vcmp.gt.f32.partialorder %v4570_v47, %v4407_v9  ;;  %vm2036_vm9 = vcmp.gt.f32.partialorder %v4573_v12, %v4407_v9 }
 0x4d9   : > { %v1792_v35 = vsel %vm1788_vm1, 1.0, %v2843_v20  ;;  %vm2049_vm13 = vcmp.gt.f32.partialorder %v4578_v8, %v4407_v9  ;;  %vm1814_vm14 = vcmp.gt.f32.partialorder %v4421_v30, %v4440_v13  ;;  %vm1827_vm15 = vcmp.gt.f32.partialorder %v4424_v46, %v4440_v13 }
 0x4da   : > { %v1836_v55 = vadd.f32 %v1832_v33, %v1823_v62  ;;  %v4609_v62 = vperm.slane %v4407_v9, 5  ;;  %v1796_v33 = vadd.f32 %v1792_v35, %v1783_v18  ;;  %vm2062_vm1 = vcmp.gt.f32.partialorder %v4593_v56, %v4407_v9 }
 0x4db   : > { %v1818_v24 = vsel %vm1814_vm14, 1.0, %v2843_v20  ;;  %vm2075_vm2 = vcmp.gt.f32.partialorder %v4596_v52, %v4407_v9  ;;  %vm1853_vm6 = vcmp.gt.f32.partialorder %v4448_v27, %v4440_v13  ;;  %vm1866_vm8 = vcmp.gt.f32.partialorder %v4451_v22, %v4440_v13 }
 0x4dc   : > { %v1849_v51 = vadd.f32 %v1845_v63, %v1836_v55  ;;  %v4614_v63 = vperm.slane %v4407_v9, 6  ;;  %v4617_v55 = vperm.slane %v4407_v9, 7  ;;  %vm2088_vm3 = vcmp.gt.f32.partialorder %v4609_v62, %v4407_v9 }
 0x4dd   : > { %vm1879_vm7 = vcmp.gt.f32.partialorder %v4454_v26, %v4440_v13  ;;  %vm1892_vm10 = vcmp.gt.f32.partialorder %v4459_v39, %v4440_v13  ;;  %vm1918_vm14 = vcmp.gt.f32.partialorder %v4474_v17, %v4440_v13 }
 0x4de   : > { %v1862_v45 = vadd.f32 %v1858_v40, %v1849_v51  ;;  %v1805_v40 = vsel %vm1801_vm4, 1.0, %v2843_v20  ;;  %v4632_v51 = vsel %vm2049_vm13, 1.0, %v2843_v20  ;;  %vm1840_vm4 = vcmp.gt.f32.partialorder %v4433_v16, %v4440_v13 }
 0x4df   : > { %v1809_v34 = vadd.f32 %v1805_v40, %v1796_v33  ;;  %vm2101_vm5 = vcmp.gt.f32.partialorder %v4614_v63, %v4407_v9  ;;  %vm2114_vm0 = vcmp.gt.f32.partialorder %v4617_v55, %v4407_v9  ;;  %v1844_v35 = vsel %vm1840_vm4, 1.0, %v2843_v20 }
 0x4e0   : > { %v1875_v61 = vadd.f32 %v1871_v37, %v1862_v45  ;;  %v4624_v37 = vsel %vm2023_vm11, 1.0, %v2843_v20  ;;  %v4662_v33 = vsel %vm2088_vm3, 1.0, %v2843_v20  ;;  %v4668_v40 = vsel %vm2114_vm0, 1.0, %v2843_v20 }
 0x4e1   : > { %v1822_v45 = vadd.f32 %v1818_v24, %v1809_v34  ;;  %v1870_v24 = vsel %vm1866_vm8, 1.0, %v2843_v20  ;;  %vm1761_vm11 = vcmp.gt.f32.partialorder %v4404_v48, %v4385_v11  ;;  %vm1774_vm13 = vcmp.gt.f32.partialorder %v4410_v54, %v4385_v11 }
 0x4e2   : > { %v1888_v28 = vadd.f32 %v1884_v3, %v1875_v61  ;;  %v4627_v3 = vsel %vm2036_vm9, 1.0, %v2843_v20  ;;  %vm1905_vm9 = vcmp.gt.f32.partialorder %v4464_v41, %v4440_v13  ;;  %vm1800_vm3 = vcmp.gt.f32.partialorder %v4418_v58, %v4385_v11 }
 0x4e3   : > { %vm1957_vm4 = vcmp.gt.f32.partialorder %v4490_v15, %v4440_v13  ;;  %vm1970_vm0 = vcmp.gt.f32.partialorder %v4493_v32, %v4440_v13  ;;  %vm1983_vm8 = vcmp.gt.f32.partialorder %v4508_v29, %v4440_v13 }
 0x4e4   : > { %v1901_v25 = vadd.f32 %v1897_v50, %v1888_v28  ;;  %v4658_v28 = vsel %vm2075_vm2, 1.0, %v2843_v20  ;;  %vm1944_vm2 = vcmp.gt.f32.partialorder %v4483_v14, %v4440_v13 }
 0x4e6   : > { %v1914_v50 = vadd.f32 %v1910_v60, %v1901_v25  ;;  %v1831_v60 = vsel %vm1827_vm15, 1.0, %v2843_v20  ;;  %v4665_v25 = vsel %vm2101_vm5, 1.0, %v2843_v20  ;;  %vm1787_vm15 = vcmp.gt.f32.partialorder %v4415_v38, %v4385_v11 }
 0x4e7   : > { %v1835_v61 = vadd.f32 %v1831_v60, %v1822_v45  ;;  %v1883_v45 = vsel %vm1879_vm7, 1.0, %v2843_v20  ;;  %v1756_v60 = vadd.f32 %v4469_v2, %v4466_v7  ;;  %v1896_v2 = vsel %vm1892_vm10, 1.0, %v2843_v20 }
 0x4e8   : > { %v1927_v19 = vadd.f32 %v1923_v42, %v1914_v50  ;;  %v4655_v42 = vsel %vm2062_vm1, 1.0, %v2843_v20  ;;  %vm1931_vm1 = vcmp.gt.f32.partialorder %v4480_v49, %v4440_v13  ;;  %vm1813_vm5 = vcmp.gt.f32.partialorder %v4421_v30, %v4385_v11 }
 0x4e9   : > { %v1848_v34 = vadd.f32 %v1844_v35, %v1835_v61  ;;  %vm1996_vm7 = vcmp.gt.f32.partialorder %v4511_v53, %v4440_v13  ;;  %vm1839_vm10 = vcmp.gt.f32.partialorder %v4433_v16, %v4385_v11 }
 0x4ea   : > { %v1940_v18 = vadd.f32 %v1936_v5, %v1927_v19  ;;  %v1857_v5 = vsel %vm1853_vm6, 1.0, %v2843_v20  ;;  %vm1826_vm6 = vcmp.gt.f32.partialorder %v4424_v46, %v4385_v11 }
 0x4eb   : > { %v1861_v19 = vadd.f32 %v1857_v5, %v1848_v34  ;;  %v1791_v5 = vsel %vm1787_vm15, 1.0, %v2843_v20  ;;  %vm2035_vm15 = vcmp.gt.f32.partialorder %v4573_v12, %v4440_v13 }
 0x4ec   : > { %v1953_v50 = vadd.f32 %v1949_v23, %v1940_v18  ;;  %v1765_v23 = vsel %vm1761_vm11, 1.0, %v2843_v20  ;;  %vm2009_vm11 = vcmp.gt.f32.partialorder %v4518_v57, %v4440_v13 }
 0x4ed   : > { %v1874_v61 = vadd.f32 %v1870_v24, %v1861_v19  ;;  %v1769_v18 = vadd.f32 %v1765_v23, %v1756_v60  ;;  %v1948_v60 = vsel %vm1944_vm2, 1.0, %v2843_v20  ;;  %v1804_v23 = vsel %vm1800_vm3, 1.0, %v2843_v20 }
 0x4ee   : > { %v1966_v59 = vadd.f32 %v1962_v1, %v1953_v50  ;;  %v1778_v1 = vsel %vm1774_vm13, 1.0, %v2843_v20  ;;  %vm1852_vm13 = vcmp.gt.f32.partialorder %v4448_v27, %v4385_v11  ;;  %vm1878_vm2 = vcmp.gt.f32.partialorder %v4454_v26, %v4385_v11 }
 0x4ef   : > { %v1887_v35 = vadd.f32 %v1883_v45, %v1874_v61  ;;  %v1782_v34 = vadd.f32 %v1778_v1, %v1769_v18  ;;  %vm2061_vm3 = vcmp.gt.f32.partialorder %v4593_v56, %v4440_v13 }
 0x4f0   : > { %v1979_v7 = vadd.f32 %v4581_v0, %v1966_v59  ;;  %v1909_v59 = vsel %vm1905_vm9, 1.0, %v2843_v20  ;;  %v1922_v0 = vsel %vm1918_vm14, 1.0, %v2843_v20  ;;  %vm2022_vm9 = vcmp.gt.f32.partialorder %v4570_v47, %v4440_v13 }
 0x4f1   : > { %v1900_v24 = vadd.f32 %v1896_v2, %v1887_v35  ;;  %v1795_v45 = vadd.f32 %v1791_v5, %v1782_v34  ;;  %v1961_v2 = vsel %vm1957_vm4, 1.0, %v2843_v20  ;;  %vm1865_vm14 = vcmp.gt.f32.partialorder %v4451_v22, %v4385_v11 }
 0x4f2   : > { %v1992_v50 = vadd.f32 %v4584_v36, %v1979_v7  ;;  %v1935_v36 = vsel %vm1931_vm1, 1.0, %v2843_v20  ;;  %vm2048_vm1 = vcmp.gt.f32.partialorder %v4578_v8, %v4440_v13  ;;  %vm2074_vm4 = vcmp.gt.f32.partialorder %v4596_v52, %v4440_v13 }
 0x4f3   : > { %v1913_v61 = vadd.f32 %v1909_v59, %v1900_v24  ;;  %v1808_v18 = vadd.f32 %v1804_v23, %v1795_v45  ;;  %v1987_v24 = vsel %vm1983_vm8, 1.0, %v2843_v20  ;;  %v1843_v45 = vsel %vm1839_vm10, 1.0, %v2843_v20 }
 0x4f4   : > { %v2005_v19 = vadd.f32 %v4587_v21, %v1992_v50  ;;  %v1817_v21 = vsel %vm1813_vm5, 1.0, %v2843_v20  ;;  %v1974_v50 = vsel %vm1970_vm0, 1.0, %v2843_v20  ;;  %v2013_v23 = vsel %vm2009_vm11, 1.0, %v2843_v20 }
 0x4f5   : > { %v1926_v1 = vadd.f32 %v1922_v0, %v1913_v61  ;;  %v1821_v35 = vadd.f32 %v1817_v21, %v1808_v18  ;;  %v2026_v18 = vsel %vm2022_vm9, 1.0, %v2843_v20  ;;  %vm1891_vm5 = vcmp.gt.f32.partialorder %v4459_v39, %v4385_v11 }
 0x4f6   : > { %v2018_v7 = vadd.f32 %v4590_v44, %v2005_v19  ;;  %v1830_v44 = vsel %vm1826_vm6, 1.0, %v2843_v20  ;;  %vm1904_vm0 = vcmp.gt.f32.partialorder %v4464_v41, %v4385_v11  ;;  %vm1917_vm6 = vcmp.gt.f32.partialorder %v4474_v17, %v4385_v11 }
 0x4f7   : > { %v1939_v59 = vadd.f32 %v1935_v36, %v1926_v1  ;;  %v1834_v0 = vadd.f32 %v1830_v44, %v1821_v35  ;;  %vm1930_vm8 = vcmp.gt.f32.partialorder %v4480_v49, %v4385_v11  ;;  %vm1721_vm10 = vcmp.gt.f32.partialorder %v4391_v43, %v4382_v4 }
 0x4f8   : > { %v2031_v34 = vadd.f32 %v4624_v37, %v2018_v7  ;;  %v2000_v37 = vsel %vm1996_vm7, 1.0, %v2843_v20  ;;  %vm1708_vm7 = vcmp.gt.f32.partialorder %v4388_v31, %v4382_v4  ;;  %vm1734_vm11 = vcmp.gt.f32.partialorder %v4398_v6, %v4382_v4 }
 0x4f9   : > { %v1952_v19 = vadd.f32 %v1948_v60, %v1939_v59  ;;  %v1847_v61 = vadd.f32 %v1843_v45, %v1834_v0  ;;  %v2065_v59 = vsel %vm2061_vm3, 1.0, %v2843_v20  ;;  %v1895_v45 = vsel %vm1891_vm5, 1.0, %v2843_v20 }
 0x4fa   : > { %v2044_v5 = vadd.f32 %v4627_v3, %v2031_v34  ;;  %v1856_v3 = vsel %vm1852_vm13, 1.0, %v2843_v20  ;;  %v1882_v34 = vsel %vm1878_vm2, 1.0, %v2843_v20  ;;  %vm1943_vm9 = vcmp.gt.f32.partialorder %v4483_v14, %v4385_v11 }
 0x4fb   : > { %v1965_v7 = vadd.f32 %v1961_v2, %v1952_v19  ;;  %v1860_v60 = vadd.f32 %v1856_v3, %v1847_v61  ;;  %v1908_v19 = vsel %vm1904_vm0, 1.0, %v2843_v20  ;;  %vm1747_vm13 = vcmp.gt.f32.partialorder %v4401_v10, %v4382_v4 }
 0x4fc   : > { %v2057_v36 = vadd.f32 %v4632_v51, %v2044_v5  ;;  %v1869_v51 = vsel %vm1865_vm14, 1.0, %v2843_v20  ;;  %vm1956_vm14 = vcmp.gt.f32.partialorder %v4490_v15, %v4385_v11  ;;  %v1738_v6 = vsel %vm1734_vm11, 1.0, %v2843_v20 }
 0x4fd   : > { %v1978_v1 = vadd.f32 %v1974_v50, %v1965_v7  ;;  %v1873_v35 = vadd.f32 %v1869_v51, %v1860_v60  ;;  %v2052_v50 = vsel %vm2048_vm1, 1.0, %v2843_v20  ;;  %v1725_v60 = vsel %vm1721_vm10, 1.0, %v2843_v20 }
 0x4fe   : > { %v2070_v21 = vadd.f32 %v4655_v42, %v2057_v36  ;;  %v2039_v42 = vsel %vm2035_vm15, 1.0, %v2843_v20  ;;  %vm1760_vm1 = vcmp.gt.f32.partialorder %v4404_v48, %v4382_v4  ;;  %vm2087_vm2 = vcmp.gt.f32.partialorder %v4609_v62, %v4440_v13 }
 0x4ff   : > { %v1991_v44 = vadd.f32 %v1987_v24, %v1978_v1  ;;  %v1886_v0 = vadd.f32 %v1882_v34, %v1873_v35  ;;  %v1921_v24 = vsel %vm1917_vm6, 1.0, %v2843_v20  ;;  %v1751_v1 = vsel %vm1747_vm13, 1.0, %v2843_v20 }
 0x500   : > { %v2083_v2 = vadd.f32 %v4658_v28, %v2070_v21  ;;  %v2078_v28 = vsel %vm2074_vm4, 1.0, %v2843_v20  ;;  %v1947_v48 = vsel %vm1943_vm9, 1.0, %v2843_v20  ;;  %vm1773_vm3 = vcmp.gt.f32.partialorder %v4410_v54, %v4382_v4 }
 0x501   : > { %v2004_v61 = vadd.f32 %v2000_v37, %v1991_v44  ;;  %v1899_v36 = vadd.f32 %v1895_v45, %v1886_v0  ;;  %v1712_v37 = vsel %vm1708_vm7, 1.0, %v2843_v20  ;;  %vm1969_vm4 = vcmp.gt.f32.partialorder %v4493_v32, %v4385_v11 }
 0x502   : > { %v2096_v5 = vadd.f32 %v4662_v33, %v2083_v2  ;;  %vm2100_vm5 = vcmp.gt.f32.partialorder %v4614_v63, %v4440_v13  ;;  %v1960_v34 = vsel %vm1956_vm14, 1.0, %v2843_v20  ;;  %vm1786_vm0 = vcmp.gt.f32.partialorder %v4415_v38, %v4382_v4 }
 0x503   : > { %v2017_v33 = vadd.f32 %v2013_v23, %v2004_v61  ;;  %v1912_v7 = vadd.f32 %v1908_v19, %v1899_v36  ;;  %vm1982_vm6 = vcmp.gt.f32.partialorder %v4508_v29, %v4385_v11  ;;  %v1777_v0 = vsel %vm1773_vm3, 1.0, %v2843_v20 }
 0x504   : > { %v2109_v3 = vadd.f32 %v4665_v25, %v2096_v5  ;;  %v1729_v25 = vadd.f32 %v1725_v60, %v1712_v37  ;;  %v2091_v5 = vsel %vm2087_vm2, 1.0, %v2843_v20  ;;  %v1973_v45 = vsel %vm1969_vm4, 1.0, %v2843_v20 }
 0x505   : > { %v2030_v31 = vadd.f32 %v2026_v18, %v2017_v33  ;;  %v1925_v43 = vadd.f32 %v1921_v24, %v1912_v7  ;;  %vm1995_vm7 = vcmp.gt.f32.partialorder %v4511_v53, %v4385_v11  ;;  %vm2113_vm10 = vcmp.gt.f32.partialorder %v4617_v55, %v4440_v13 }
 0x506   : > { %v2122_v21 = vadd.f32 %v4668_v40, %v2109_v3  ;;  %v1934_v40 = vsel %vm1930_vm8, 1.0, %v2843_v20  ;;  %v1742_v23 = vadd.f32 %v1738_v6, %v1729_v25  ;;  %vm1799_vm8 = vcmp.gt.f32.partialorder %v4418_v58, %v4382_v4 }
 0x507   : > { %v2043_v10 = vadd.f32 %v2039_v42, %v2030_v31  ;;  %v1938_v18 = vadd.f32 %v1934_v40, %v1925_v43  ;;  %v1764_v42 = vsel %vm1760_vm1, 1.0, %v2843_v20  ;;  %v1986_v36 = vsel %vm1982_vm6, 1.0, %v2843_v20 }
 0x508   : > { %vm2126_vm15 = vcmp.lt.f32.partialorder %v2122_v21, 19.0  ;;  %v1755_v35 = vadd.f32 %v1751_v1, %v1742_v23  ;;  %vm1812_vm11 = vcmp.gt.f32.partialorder %v4421_v30, %v4382_v4  ;;  %vm2008_vm9 = vcmp.gt.f32.partialorder %v4518_v57, %v4385_v11 }
 0x509   : > { %v2130_v51 = vsel %vm2126_vm15, %v4407_v9, 0.0  ;;  %2464 = vmatpush.msk.msra.mxu3 %vm2126_vm15, %v4407_v9  ;;  %v2056_v9 = vadd.f32 %v2052_v50, %v2043_v10  ;;  %v1951_v2 = vadd.f32 %v1947_v48, %v1938_v18  ;;  %v1803_v58 = vsel %vm1799_vm8, 1.0, %v2843_v20 }
 0x50a   : > { %2157 = vst [vmem:[%s4805_s21 + $0x18] sm:$0xff] %v2130_v51  ;;  %v1768_v44 = vadd.f32 %v1764_v42, %v1755_v35  ;;  %v1999_v7 = vsel %vm1995_vm7, 1.0, %v2843_v20  ;;  %vm1825_vm13 = vcmp.gt.f32.partialorder %v4424_v46, %v4382_v4  ;;  %vm2021_vm14 = vcmp.gt.f32.partialorder %v4570_v47, %v4385_v11 }
 0x50b   : > { %v2069_v54 = vadd.f32 %v2065_v59, %v2056_v9  ;;  %v1964_v50 = vadd.f32 %v1960_v34, %v1951_v2  ;;  %v1790_v59 = vsel %vm1786_vm0, 1.0, %v2843_v20  ;;  %v1816_v21 = vsel %vm1812_vm11, 1.0, %v2843_v20 }
 0x50c   : > { %v1781_v19 = vadd.f32 %v1777_v0, %v1768_v44  ;;  %v2117_v25 = vsel %vm2113_vm10, 1.0, %v2843_v20  ;;  %v2012_v31 = vsel %vm2008_vm9, 1.0, %v2843_v20  ;;  %vm1838_vm15 = vcmp.gt.f32.partialorder %v4433_v16, %v4382_v4 }
 0x50d   : > { %v2082_v61 = vadd.f32 %v2078_v28, %v2069_v54  ;;  %v1977_v38 = vadd.f32 %v1973_v45, %v1964_v50  ;;  %v2104_v28 = vsel %vm2100_vm5, 1.0, %v2843_v20  ;;  %vm2034_vm1 = vcmp.gt.f32.partialorder %v4573_v12, %v4385_v11 }
 0x50e   : > { %v1794_v24 = vadd.f32 %v1790_v59, %v1781_v19  ;;  %v1829_v40 = vsel %vm1825_vm13, 1.0, %v2843_v20  ;;  %v2025_v23 = vsel %vm2021_vm14, 1.0, %v2843_v20  ;;  %vm1851_vm2 = vcmp.gt.f32.partialorder %v4448_v27, %v4382_v4 }
 0x50f   : > { %v2095_v3 = vadd.f32 %v2091_v5, %v2082_v61  ;;  %v1990_v33 = vadd.f32 %v1986_v36, %v1977_v38  ;;  %vm2047_vm4 = vcmp.gt.f32.partialorder %v4578_v8, %v4385_v11  ;;  %v1842_v16 = vsel %vm1838_vm15, 1.0, %v2843_v20 }
 0x510   : > { %v1807_v37 = vadd.f32 %v1803_v58, %v1794_v24  ;;  %v2038_v1 = vsel %vm2034_vm1, 1.0, %v2843_v20  ;;  %vm1864_vm5 = vcmp.gt.f32.partialorder %v4451_v22, %v4382_v4  ;;  %vm2060_vm0 = vcmp.gt.f32.partialorder %v4593_v56, %v4385_v11 }
 0x511   : > { %v2108_v60 = vadd.f32 %v2104_v28, %v2095_v3  ;;  %v2003_v30 = vadd.f32 %v1999_v7, %v1990_v33  ;;  %v1855_v27 = vsel %vm1851_vm2, 1.0, %v2843_v20  ;;  %v2051_v9 = vsel %vm2047_vm4, 1.0, %v2843_v20 }
 0x512   : > { %v1820_v43 = vadd.f32 %v1816_v21, %v1807_v37  ;;  %vm1877_vm6 = vcmp.gt.f32.partialorder %v4454_v26, %v4382_v4  ;;  %vm2073_vm8 = vcmp.gt.f32.partialorder %v4596_v52, %v4385_v11  ;;  %v1868_v42 = vsel %vm1864_vm5, 1.0, %v2843_v20 }
 0x513   : > { %v2121_v6 = vadd.f32 %v2117_v25, %v2108_v60  ;;  %v2016_v46 = vadd.f32 %v2012_v31, %v2003_v30  ;;  %v2064_v22 = vsel %vm2060_vm0, 1.0, %v2843_v20  ;;  %vm1890_vm7 = vcmp.gt.f32.partialorder %v4459_v39, %v4382_v4 }
 0x514   : > { %v1833_v51 = vadd.f32 %v1829_v40, %v1820_v43  ;;  %vm2086_vm10 = vcmp.gt.f32.partialorder %v4609_v62, %v4385_v11  ;;  %v1881_v54 = vsel %vm1877_vm6, 1.0, %v2843_v20  ;;  %v2077_v26 = vsel %vm2073_vm8, 1.0, %v2843_v20 }
 0x515   : > { %vm2125_vm3 = vcmp.lt.f32.partialorder %v2121_v6, 19.0  ;;  %v2029_v10 = vadd.f32 %v2025_v23, %v2016_v46  ;;  %vm1903_vm11 = vcmp.gt.f32.partialorder %v4464_v41, %v4382_v4  ;;  %vm2099_vm9 = vcmp.gt.f32.partialorder %v4614_v63, %v4385_v11 }
 0x516   : > { %v2129_v18 = vsel %vm2125_vm3, %v4440_v13, 0.0  ;;  %2465 = vmatpush.msk.msra.mxu3 %vm2125_vm3, %v4440_v13  ;;  %v1846_v48 = vadd.f32 %v1842_v16, %v1833_v51  ;;  %v1894_v5 = vsel %vm1890_vm7, 1.0, %v2843_v20  ;;  %v2090_v39 = vsel %vm2086_vm10, 1.0, %v2843_v20 }
 0x517   : > { %2156 = vst [vmem:[%s4805_s21 + $0x10] sm:$0xff] %v2129_v18  ;;  %v2042_v35 = vadd.f32 %v2038_v1, %v2029_v10  ;;  %vm1916_vm13 = vcmp.gt.f32.partialorder %v4474_v17, %v4382_v4  ;;  %vm2112_vm14 = vcmp.gt.f32.partialorder %v4617_v55, %v4385_v11  ;;  %v1907_v61 = vsel %vm1903_vm11, 1.0, %v2843_v20 }
 0x518   : > { %v1859_v2 = vadd.f32 %v1855_v27, %v1846_v48  ;;  %v2103_v41 = vsel %vm2099_vm9, 1.0, %v2843_v20  ;;  %vm1929_vm15 = vcmp.gt.f32.partialorder %v4480_v49, %v4382_v4  ;;  %v1920_v36 = vsel %vm1916_vm13, 1.0, %v2843_v20 }
 0x519   : > { %v2055_v13 = vadd.f32 %v2051_v9, %v2042_v35  ;;  %v2116_v24 = vsel %vm2112_vm14, 1.0, %v2843_v20  ;;  %vm1942_vm1 = vcmp.gt.f32.partialorder %v4483_v14, %v4382_v4  ;;  %v1933_v33 = vsel %vm1929_vm15, 1.0, %v2843_v20 }
 0x51a   : > { %v1872_v34 = vadd.f32 %v1868_v42, %v1859_v2  ;;  %vm1955_vm2 = vcmp.gt.f32.partialorder %v4490_v15, %v4382_v4  ;;  %v1946_v49 = vsel %vm1942_vm1, 1.0, %v2843_v20  ;;  %vm1968_vm4 = vcmp.gt.f32.partialorder %v4493_v32, %v4382_v4 }
 0x51b   : > { %v2068_v44 = vadd.f32 %v2064_v22, %v2055_v13  ;;  %v1959_v14 = vsel %vm1955_vm2, 1.0, %v2843_v20  ;;  %vm1981_vm5 = vcmp.gt.f32.partialorder %v4508_v29, %v4382_v4  ;;  %v1972_v15 = vsel %vm1968_vm4, 1.0, %v2843_v20 }
 0x51c   : > { %v1885_v50 = vadd.f32 %v1881_v54, %v1872_v34  ;;  %vm1994_vm0 = vcmp.gt.f32.partialorder %v4511_v53, %v4382_v4  ;;  %v1985_v30 = vsel %vm1981_vm5, 1.0, %v2843_v20  ;;  %vm2007_vm6 = vcmp.gt.f32.partialorder %v4518_v57, %v4382_v4 }
 0x51d   : > { %v2081_v0 = vadd.f32 %v2077_v26, %v2068_v44  ;;  %v1998_v32 = vsel %vm1994_vm0, 1.0, %v2843_v20  ;;  %vm2020_vm8 = vcmp.gt.f32.partialorder %v4570_v47, %v4382_v4  ;;  %v2011_v29 = vsel %vm2007_vm6, 1.0, %v2843_v20 }
 0x51e   : > { %v1898_v45 = vadd.f32 %v1894_v5, %v1885_v50  ;;  %vm2033_vm7 = vcmp.gt.f32.partialorder %v4573_v12, %v4382_v4  ;;  %v2024_v53 = vsel %vm2020_vm8, 1.0, %v2843_v20  ;;  %vm2046_vm10 = vcmp.gt.f32.partialorder %v4578_v8, %v4382_v4 }
 0x51f   : > { %v2094_v19 = vadd.f32 %v2090_v39, %v2081_v0  ;;  %v2037_v57 = vsel %vm2033_vm7, 1.0, %v2843_v20  ;;  %vm2059_vm11 = vcmp.gt.f32.partialorder %v4593_v56, %v4382_v4  ;;  %v2050_v47 = vsel %vm2046_vm10, 1.0, %v2843_v20 }
 0x520   : > { %v1911_v38 = vadd.f32 %v1907_v61, %v1898_v45  ;;  %vm2072_vm9 = vcmp.gt.f32.partialorder %v4596_v52, %v4382_v4  ;;  %v2063_v12 = vsel %vm2059_vm11, 1.0, %v2843_v20  ;;  %vm2085_vm13 = vcmp.gt.f32.partialorder %v4609_v62, %v4382_v4 }
 0x521   : > { %v2107_v59 = vadd.f32 %v2103_v41, %v2094_v19  ;;  %v2076_v8 = vsel %vm2072_vm9, 1.0, %v2843_v20  ;;  %vm2098_vm14 = vcmp.gt.f32.partialorder %v4614_v63, %v4382_v4  ;;  %v2089_v56 = vsel %vm2085_vm13, 1.0, %v2843_v20  ;;  %v2582_v63 = vld [vmem:[%s5059_s6] sm:$0xff] }
 0x522   : > { %v1924_v3 = vadd.f32 %v1920_v36, %v1911_v38  ;;  %vm2111_vm15 = vcmp.gt.f32.partialorder %v4617_v55, %v4382_v4  ;;  %v2102_v52 = vsel %vm2098_vm14, 1.0, %v2843_v20 }
 0x523   : > { %v2120_v17 = vadd.f32 %v2116_v24, %v2107_v59  ;;  %v2115_v62 = vsel %vm2111_vm15, 1.0, %v2843_v20 }
 0x524   : > { %v1937_v58 = vadd.f32 %v1933_v33, %v1924_v3 }
 0x525   : > { %vm2124_vm3 = vcmp.lt.f32.partialorder %v2120_v17, 19.0 }
 0x526   : > { %v2128_v28 = vsel %vm2124_vm3, %v4385_v11, 0.0  ;;  %2466 = vmatpush.msk.msra.mxu3 %vm2124_vm3, %v4385_v11  ;;  %v1950_v7 = vadd.f32 %v1946_v49, %v1937_v58 }
 0x527   : > { %2155 = vst [vmem:[%s4805_s21 + $0x8] sm:$0xff] %v2128_v28 }
 0x528   : > { %v1963_v37 = vadd.f32 %v1959_v14, %v1950_v7 }
 0x52a   : > { %v1976_v60 = vadd.f32 %v1972_v15, %v1963_v37 }
 0x52c   : > { %v1989_v11 = vadd.f32 %v1985_v30, %v1976_v60 }
 0x52e   : > { %v2002_v21 = vadd.f32 %v1998_v32, %v1989_v11 }
 0x530   : > { %v2015_v25 = vadd.f32 %v2011_v29, %v2002_v21 }
 0x532   : > { %v2028_v31 = vadd.f32 %v2024_v53, %v2015_v25 }
 0x534   : > { %v2041_v43 = vadd.f32 %v2037_v57, %v2028_v31 }
 0x536   : > { %v2054_v6 = vadd.f32 %v2050_v47, %v2041_v43 }
 0x538   : > { %v2067_v46 = vadd.f32 %v2063_v12, %v2054_v6 }
 0x53a   : > { %v2080_v40 = vadd.f32 %v2076_v8, %v2067_v46 }
 0x53c   : > { %v2093_v23 = vadd.f32 %v2089_v56, %v2080_v40 }
 0x53e   : > { %v2106_v51 = vadd.f32 %v2102_v52, %v2093_v23 }
 0x540   : > { %v2119_v10 = vadd.f32 %v2115_v62, %v2106_v51 }
 0x542   : > { %vm2123_vm1 = vcmp.lt.f32.partialorder %v2119_v10, 19.0 }
 0x543   : > { %v2127_v16 = vsel %vm2123_vm1, %v4382_v4, 0.0  ;;  %2467 = vmatpush.msk.msra.mxu3 %vm2123_vm1, %v4382_v4 }
 0x544   : > { %2154 = vst [vmem:[%s4805_s21] sm:$0xff] %v2127_v16  ;;  %2468 = vmatmul.msk.f32.vlgmr.msra.gmra.mxu3 %vm1078_vm12, %v2582_v63 }
 0x545   : > { %2730 = shalt.err (!%p2727_p5)
}
 0x546   : > { %s2844_s17 = smov 128   ;;  %s2845_s28 = smov 256   ;;  %v5161_v4 = vld [vmem:[#allocation32_spill] sm:$0xff] }
 0x547   : > { %s2846_s25 = smov 8   ;;  %s5159_s22 = sld [smem:[#allocation44_spill]] }
 0x548   : > { %2487 = dma.vmem_to_hbm [thread:$0]  (%p2950_p11), %s2195_s23, 512, %s2197_s8, %s4972_s20, %s2844_s17, %s2845_s28, %s2846_s25  }
 0x549   : > { %s5160_s30 = sld [smem:[#allocation46_spill]]  ;;  %s498_s11 = scalar_lea.vmem [#allocation10], %s3058_s16 }
 0x54a   : > { %s2181_s9 = sshll.u32 %s498_s11, 4  ;;  %s2210_s0 = sshll.u32 %s3762_s26, 4  ;;  %s2182_s9 = int_to_ptr.vmem [resolvable:$true] %s2181_s9  ;;  %s5000_s0 = int_to_ptr.vmem [resolvable:$true] %s2210_s0 }
 0x54b   : > { %s2159_s23 = scalar_lea.sflag [#allocation4], %s3055_s10 }
 0x54d   : > { %s2179_s27 = scalar_lea.hbm %s5159_s22, %s2472_s15  ;;  %s2751_s29 = scalar_lea.hbm %s5159_s22, 16 }
 0x54e   : > { %s2183_s21 = sshll.u32 %s2179_s27, 4  ;;  %s2184_s21 = int_to_ptr.hbm [resolvable:$true] %s2183_s21 }
 0x54f   : > { %s2209_s12 = scalar_lea.hbm %s5160_s30, %s2472_s15  ;;  %s2745_s15 = sshra.s32 %s2184_s21, 4  ;;  %s2746_s15 = int_to_ptr.hbm [resolvable:$true] %s2745_s15 }
 0x550   : > { %s4996_s1 = sshll.u32 %s2209_s12, 4  ;;  %s2747_s16 = scalar_lea.hbm %s2746_s15, 8  ;;  %s2213_s1 = int_to_ptr.hbm [resolvable:$true] %s4996_s1 }
 0x551   : > { %p2748_p7 = scmp.ne.s32.totalorder %s2746_s15, %s2747_s16  ;;  %p2752_p0 = scmp.lt.s32.totalorder %s2746_s15, %s5159_s22 }
 0x552   : > { %p2753_p6 = scmp.lt.s32.totalorder %s2751_s29, %s2747_s16 }
 0x553   : > { %p2749_p8 = pnand %p2748_p7, %p2950_p11 }
 0x554   : > { %p2754_p13 = por %p2753_p6, %p2752_p0 }
 0x555   : > { %p2750_p10 = pneg %p2749_p8 }
 0x557   : > { %p2755_p1 = pnand %p2754_p13, %p2750_p10 }
 0x5c7   : > { %v2148_v20 = vpop.f32.mrf.mxu3 }
 0x5c8   : > { %v2149_v55 = vadd.f32 %v2148_v20, %v5161_v4 }
 0x5ca   : > { %2469 = vst [vmem:[%s3762_s26 + $0x10] sm:$0xff] %v2149_v55 }
 0x5cb   : > { %2153 = vst [vmem:[%s498_s11] sm:$0xff] %v2149_v55 }
 0x5cc   : > { %2758 = shalt.err (!%p2755_p1)
}
 0x5cd   : > { %2486 = dma.vmem_to_hbm [thread:$0]  (%p2950_p11), %s2182_s9, 128, %s2184_s21, %s2159_s23  }
 0x5ce   : > { %s2773_s10 = sshra.s32 %s2213_s1, 4  ;;  %s2779_s11 = scalar_lea.hbm %s5160_s30, 48  ;;  %s2774_s10 = int_to_ptr.hbm [resolvable:$true] %s2773_s10 }
 0x5cf   : > { %s2775_s26 = scalar_lea.hbm %s2774_s10, 24  ;;  %p2780_p5 = scmp.lt.s32.totalorder %s2774_s10, %s5160_s30 }
 0x5d0   : > { %p2776_p2 = scmp.ne.s32.totalorder %s2774_s10, %s2775_s26  ;;  %p2781_p7 = scmp.lt.s32.totalorder %s2779_s11, %s2775_s26 }
 0x5d2   : > { %p2777_p3 = pnand %p2776_p2, %p2950_p11  ;;  %p2782_p8 = por %p2781_p7, %p2780_p5 }
 0x5d4   : > { %p2778_p4 = pneg %p2777_p3 }
 0x5d6   : > { %p2783_p10 = pnand %p2782_p8, %p2778_p4 }
 0x5d8   : > { %2786 = shalt.err (!%p2783_p10)
}
 0x5d9   : > { %2488 = dma.vmem_to_hbm [thread:$0]  (%p2950_p11), %s5000_s0, 384, %s2213_s1, %s4972_s20, %s2844_s17, %s2845_s28, %s2846_s25  }
 0x5da PF: > { %s5162_s9 = sld [smem:[#allocation19_spill]]  ;;  %p2506_p0 = pnand %p2417_p9, %p2954_p12 }
 0x5db   : > { %s5164_s23 = sld [smem:[#allocation21_spill]] }
 0x5dc   : > { %p2507_p6 = pneg %p2506_p0 }
 0x5e0   : > { %s2227_s8 = sand.u32 1, %s5162_s9  }
 0x5e1   : > { %s2228_s18 = scalar_lea.sflag [#allocation4], %s2227_s8 }
 0x5e2   : > { %2816 = dma.done.wait (%p2507_p6), %s2228_s18, 128  }
 0x5e3   : > { %2818 = vsyncadd (%p2507_p6), %s2228_s18, 4294967168  ;;  %s5165_s24 = sadd.s32 4294967294, %s5164_s23  }
 0x5e4   : > { %s2237_s29 = sand.u32 1, %s5165_s24  }
 0x5e5   : > { %s2238_s27 = scalar_lea.sflag [#allocation12], %s2237_s29 }
 0x5e6   : > { %2820 = dma.done.wait (%p2507_p6), %s2238_s27, 896  }
 0x5e7   : > { %2822 = vsyncadd (%p2507_p6), %s2238_s27, 4294966400  ;;  %s5166_s16 = sld [smem:[#allocation22_spill]]  ;;  %s5169_s13 = smov %s2829_s14 }
 0x5e8   : > { %s5167_s0 = sld [smem:[#allocation20_spill]] }
 0x5e9   : > { %s5168_s15 = sld [smem:[#allocation23_spill]] }
 0x5ed   : > { %p33_p11 = scmp.ge.s32.totalorder %s5166_s16, 4  }
 0x5ee   : > { %s5170_s14 = smov %s5167_s0 }
 0x5ef   :  { %35 = sbr.rel (!%p33_p11) target bundleno = 17 (0x11), region = 168 }
 0x5f4   :  { %2254 = vsyncpa [#allocation3], 1 }
 0x5f5   :  { %2256 = vsyncpa [#allocation3 + $0x1], 1 }
 0x5f6   :  { %2257 = vsyncpa [#allocation6], 1 }
 0x5f7   :  { %2259 = vsyncpa [#allocation6 + $0x1], 1 }
 0x5f8   :  { %2260 = vsyncpa [#allocation9], 1 }
 0x5f9   :  { %2262 = vsyncpa [#allocation9 + $0x1], 1 }
 0x5fa   :  { %2263 = vsyncpa [#allocation4], 1 }
 0x5fb   :  { %2265 = vsyncpa [#allocation4 + $0x1], 1 }
 0x5fc   :  { %2266 = vsyncpa [#allocation12], 1 }
 0x5fd   :  { %2268 = vsyncpa [#allocation12 + $0x1], 1 }

</bundles_post_ra>
